<compile_context>
chip_gen: v6e
topology: v6e:2x2x1
jax: 0.10.0
libtpu: 0.0.40
codegen_flags: <defaults>
</compile_context>

<pallas_src>
import functools

import jax
import jax.numpy as jnp
from jax.experimental import pallas as pl
from jax.experimental.pallas import tpu as pltpu

BN_EPS = 1e-5
C_PAD = 128  # lane-dense channel padding (true conv Cout = 40, fc out = 10)


def _round_up(x, m):
    return ((x + m - 1) // m) * m


# ----------------------------------------------------------------------------
# Fused conv (im2col-GEMM) + BatchNorm(training) + ReLU Pallas kernel
# ----------------------------------------------------------------------------
def _conv_bn_relu_kernel(p_ref, w_ref, gamma_ref, beta_ref, o_ref, *, m_true):
    # Single pass: matmul once, keep y resident in VMEM, reduce sum and
    # sum-of-squares from it, fold BN into per-channel scale/shift, apply
    # affine + ReLU, store bf16.
    y = jnp.dot(p_ref[...], w_ref[...], preferred_element_type=jnp.float32)
    inv_m = 1.0 / m_true  # biased variance over the TRUE rows (padded rows are 0)
    mean = jnp.sum(y, axis=0, keepdims=True) * inv_m
    # E[x^2] - E[x]^2 can go slightly negative in f32 -> clamp (review concern).
    var = jnp.maximum(
        jnp.sum(y * y, axis=0, keepdims=True) * inv_m - mean * mean, 0.0
    )
    scale = gamma_ref[...] * jax.lax.rsqrt(var + BN_EPS)
    shift = beta_ref[...] - mean * scale
    o_ref[...] = jnp.maximum(y * scale + shift, 0.0).astype(o_ref.dtype)


def conv_bn_relu(patches, w_bf16, gamma, beta):
    """patches: (M, K) im2col rows; w_bf16: (K, 128) bf16 (zero pad lanes).
    Returns (M, 128) bf16 of relu(batchnorm(conv(x))) with training-mode batch
    statistics computed over the true M rows, all in one fused kernel."""
    M, K = patches.shape
    C = w_bf16.shape[1]
    m_pad = _round_up(M, 8)  # sublane alignment only
    p = patches.astype(jnp.bfloat16)
    if m_pad != M:
        # zero rows are exact no-ops for sum / sum-of-squares (no conv bias)
        p = jnp.pad(p, ((0, m_pad - M), (0, 0)))

    out = pl.pallas_call(
        functools.partial(_conv_bn_relu_kernel, m_true=float(M)),
        out_shape=jax.ShapeDtypeStruct((m_pad, C), jnp.bfloat16),
        grid=(1,),
        in_specs=[
            pl.BlockSpec((m_pad, K), lambda i: (0, 0)),
            pl.BlockSpec((K, C), lambda i: (0, 0)),
            pl.BlockSpec((1, C), lambda i: (0, 0)),
            pl.BlockSpec((1, C), lambda i: (0, 0)),
        ],
        out_specs=pl.BlockSpec((m_pad, C), lambda i: (0, 0)),
        compiler_params=pltpu.CompilerParams(
            dimension_semantics=("arbitrary",)
        ),
    )(p, w_bf16, gamma, beta)
    return out if m_pad == M else out[:M]


# ----------------------------------------------------------------------------
# Plain-JAX glue (data movement only)
# ----------------------------------------------------------------------------
def _im2col(x, kh, kw):
    # x: [B, H, W, C] -> patches [B*OH*OW, kh*kw*C] with (i, j) outer, C inner
    B, H, W, C = x.shape
    OH, OW = H - kh + 1, W - kw + 1
    cols = []
    for i in range(kh):
        for j in range(kw):
            cols.append(jax.lax.slice(x, (0, i, j, 0), (B, i + OH, j + OW, C)))
    p = jnp.stack(cols, axis=3)  # [B, OH, OW, kh*kw, C]
    return p.reshape(B * OH * OW, kh * kw * C), (B, OH, OW)


def _maxpool2x2(x):
    # F.max_pool2d(x, 2, 2): floor division -> drop trailing odd row/col
    B, H, W, C = x.shape
    H2, W2 = (H // 2) * 2, (W // 2) * 2
    x = x[:, :H2, :W2, :]
    x = x.reshape(B, H2 // 2, 2, W2 // 2, 2, C)
    return jnp.max(x, axis=(2, 4))


# ----------------------------------------------------------------------------
# NetBN params + forward
# ----------------------------------------------------------------------------
def init_params(key, num_channels=1):
    k1, k2, k3, k4 = jax.random.split(key, 4)
    co = 40
    w1 = 0.1 * jax.random.normal(k1, (3, 3, num_channels, co), jnp.float32)
    w2 = 0.05 * jax.random.normal(k2, (3, 3, co, co), jnp.float32)
    # fc weight rows are generated directly in NHWC (h, w, c) flatten order.
    wf = 0.02 * jax.random.normal(k3, (5, 5, co, 10), jnp.float32)
    bf = 0.01 * jax.random.normal(k4, (10,), jnp.float32)

    def pad_cout(a):  # pad last (output-channel) dim 40 -> 128 with zeros
        return jnp.pad(a, [(0, 0)] * (a.ndim - 1) + [(0, C_PAD - a.shape[-1])])

    def pad_vec(v):  # (co,) -> (1, C_PAD)
        return jnp.pad(v.reshape(1, co), ((0, 0), (0, C_PAD - co)))

    # conv1: K = 9*Cin rows, Cout padded to 128 zero lanes.
    w1p = pad_cout(w1.reshape(9 * num_channels, co)).astype(jnp.bfloat16)
    # conv2: input channels padded 40 -> 128 with ZERO rows so the conv1/pool
    # activation keeps all 128 lanes (no channel-slice copies). K = 9*128.
    w2_full = jnp.pad(w2, ((0, 0), (0, 0), (0, C_PAD - co), (0, 0)))
    w2p = pad_cout(w2_full.reshape(9 * C_PAD, co)).astype(jnp.bfloat16)
    # fc: zero rows for the padded channels -> flatten needs no slice either.
    wf_full = jnp.pad(wf, ((0, 0), (0, 0), (0, C_PAD - co), (0, 0)))
    wfp = wf_full.reshape(5 * 5 * C_PAD, 10)

    return {
        "w1": w1p,
        "g1": pad_vec(jnp.ones((co,), jnp.float32)),
        "be1": pad_vec(jnp.zeros((co,), jnp.float32)),
        "w2": w2p,
        "g2": pad_vec(jnp.ones((co,), jnp.float32)),
        "be2": pad_vec(jnp.zeros((co,), jnp.float32)),
        "wf": wfp,
        "bf": bf,
    }


def net_bn_forward(x_nchw, params):
    # x_nchw: [B, C, 28, 28]  (28x28 is implied by fc in_features = 5*5*40)
    x = jnp.transpose(x_nchw, (0, 2, 3, 1)).astype(jnp.float32)  # -> NHWC

    # conv1 + bn1 + relu (one fused Pallas kernel), maxpool (XLA glue)
    p, (B, OH, OW) = _im2col(x, 3, 3)                        # 28 -> 26, K = 9*Cin
    y = conv_bn_relu(p, params["w1"], params["g1"], params["be1"])   # bf16
    y = _maxpool2x2(y.reshape(B, OH, OW, C_PAD))             # 26 -> 13

    # conv2 + bn2 + relu + maxpool; all 128 (zeroed) lanes carried through, so
    # there is no channel-slice HBM copy between the layers.
    p, (B, OH, OW) = _im2col(y, 3, 3)                        # 13 -> 11, K = 9*128
    y = conv_bn_relu(p, params["w2"], params["g2"], params["be2"])   # bf16
    y = _maxpool2x2(y.reshape(B, OH, OW, C_PAD))             # 11 -> 5

    # fc: plain jnp.dot per perf review (a (2, 3200)x(3200, 10) matmul is pure
    # pallas_call launch overhead at batch 2); padded-channel weight rows are
    # zero so no slice of the flattened activation is needed.
    y = y.reshape(B, 5 * 5 * C_PAD).astype(jnp.float32)
    return jnp.dot(y, params["wf"]) + params["bf"]


if __name__ == "__main__":
    key = jax.random.PRNGKey(0)
    k_in, k_par = jax.random.split(key)
    # batch=2, num_channels=1, spatial=28 (required so that flatten == 5*5*40)
    x = jax.random.normal(k_in, (2, 1, 28, 28), jnp.float32)
    params = init_params(k_par, num_channels=1)

    fwd = jax.jit(net_bn_forward)
    out = jax.block_until_ready(fwd(x, params))
    assert out.shape == (2, 10) and out.dtype == jnp.float32
    assert bool(jnp.all(jnp.isfinite(out)))
    print("KERNEL_OK")
</pallas_src>

<mosaic_0001>
module attributes {stable_mosaic.version = 11 : i64} {
  func.func @_conv_bn_relu_kernel(%arg0: i32, %arg1: memref<1352x9xbf16, #tpu.memory_space<vmem>>, %arg2: memref<9x128xbf16, #tpu.memory_space<vmem>>, %arg3: memref<1x128xf32, #tpu.memory_space<vmem>>, %arg4: memref<1x128xf32, #tpu.memory_space<vmem>>, %arg5: memref<1352x128xbf16, #tpu.memory_space<vmem>>) attributes {dimension_semantics = [#tpu.dimension_semantics<arbitrary>], iteration_bounds = array<i64: 1>, scalar_prefetch = 0 : i64, scratch_operands = 0 : i64, tpu.core_type = #tpu.core_type<tc>, window_params = [{pipeline_mode = #tpu.pipeline_mode<synchronous>, transform_indices = @transform_0, window_bounds = array<i64: 1352, 9>}, {pipeline_mode = #tpu.pipeline_mode<synchronous>, transform_indices = @transform_1, window_bounds = array<i64: 9, 128>}, {pipeline_mode = #tpu.pipeline_mode<synchronous>, transform_indices = @transform_2, window_bounds = array<i64: 1, 128>}, {pipeline_mode = #tpu.pipeline_mode<synchronous>, transform_indices = @transform_3, window_bounds = array<i64: 1, 128>}, {pipeline_mode = #tpu.pipeline_mode<synchronous>, transform_indices = @transform_4, window_bounds = array<i64: 1352, 128>}]} {
    %c0 = arith.constant 0 : index
    %c0_0 = arith.constant 0 : index
    %0 = vector.load %arg1[%c0, %c0_0] : memref<1352x9xbf16, #tpu.memory_space<vmem>>, vector<1352x9xbf16>
    %c0_1 = arith.constant 0 : index
    %c0_2 = arith.constant 0 : index
    %1 = vector.load %arg2[%c0_1, %c0_2] : memref<9x128xbf16, #tpu.memory_space<vmem>>, vector<9x128xbf16>
    %cst = arith.constant dense<0.000000e+00> : vector<1352x128xf32>
    %2 = tpu.matmul %0, %1, %cst {dimension_numbers = #tpu.dot_dimension_numbers<[1], [0], [0], [1], [0, 0, 1, 1], [], []>} : vector<1352x9xbf16>, vector<9x128xbf16>, vector<1352x128xf32> -> vector<1352x128xf32>
    %cst_3 = arith.constant dense<0.000000e+00> : vector<128xf32>
    %3 = vector.multi_reduction <add>, %2, %cst_3 [0] : vector<1352x128xf32> to vector<128xf32>
    %4 = vector.shape_cast %3 : vector<128xf32> to vector<1x128xf32>
    %cst_4 = arith.constant 7.396450e-04 : f32
    %5 = vector.broadcast %cst_4 : f32 to vector<1x128xf32>
    %6 = arith.mulf %4, %5 : vector<1x128xf32>
    %7 = arith.mulf %2, %2 : vector<1352x128xf32>
    %cst_5 = arith.constant dense<0.000000e+00> : vector<128xf32>
    %8 = vector.multi_reduction <add>, %7, %cst_5 [0] : vector<1352x128xf32> to vector<128xf32>
    %9 = vector.shape_cast %8 : vector<128xf32> to vector<1x128xf32>
    %cst_6 = arith.constant 7.396450e-04 : f32
    %10 = vector.broadcast %cst_6 : f32 to vector<1x128xf32>
    %11 = arith.mulf %9, %10 : vector<1x128xf32>
    %12 = arith.mulf %6, %6 : vector<1x128xf32>
    %13 = arith.subf %11, %12 : vector<1x128xf32>
    %cst_7 = arith.constant 0.000000e+00 : f32
    %14 = vector.broadcast %cst_7 : f32 to vector<1x128xf32>
    %15 = arith.maximumf %13, %14 : vector<1x128xf32>
    %c0_8 = arith.constant 0 : index
    %c0_9 = arith.constant 0 : index
    %16 = vector.load %arg3[%c0_8, %c0_9] : memref<1x128xf32, #tpu.memory_space<vmem>>, vector<1x128xf32>
    %cst_10 = arith.constant 9.99999974E-6 : f32
    %17 = vector.broadcast %cst_10 : f32 to vector<1x128xf32>
    %18 = arith.addf %15, %17 : vector<1x128xf32>
    %19 = math.rsqrt %18 : vector<1x128xf32>
    %20 = arith.mulf %16, %19 : vector<1x128xf32>
    %c0_11 = arith.constant 0 : index
    %c0_12 = arith.constant 0 : index
    %21 = vector.load %arg4[%c0_11, %c0_12] : memref<1x128xf32, #tpu.memory_space<vmem>>, vector<1x128xf32>
    %22 = arith.mulf %6, %20 : vector<1x128xf32>
    %23 = arith.subf %21, %22 : vector<1x128xf32>
    %24 = vector.broadcast %20 : vector<1x128xf32> to vector<1352x128xf32>
    %25 = arith.mulf %2, %24 : vector<1352x128xf32>
    %26 = vector.broadcast %23 : vector<1x128xf32> to vector<1352x128xf32>
    %27 = arith.addf %25, %26 : vector<1352x128xf32>
    %cst_13 = arith.constant 0.000000e+00 : f32
    %28 = vector.broadcast %cst_13 : f32 to vector<1352x128xf32>
    %29 = arith.maximumf %27, %28 : vector<1352x128xf32>
    %30 = arith.truncf %29 : vector<1352x128xf32> to vector<1352x128xbf16>
    %c0_14 = arith.constant 0 : index
    %c0_15 = arith.constant 0 : index
    %31 = vector.load %arg5[%c0_14, %c0_15] : memref<1352x128xbf16, #tpu.memory_space<vmem>>, vector<1352x128xbf16>
    tpu.vector_store %arg5[%c0_14, %c0_15], %30 {strides = array<i32>} : memref<1352x128xbf16, #tpu.memory_space<vmem>>, vector<1352x128xbf16>,
    return
  }
  func.func @transform_0(%arg0: i32) -> (i32, i32) {
    %c0_i32 = arith.constant 0 : i32
    %c0_i32_0 = arith.constant 0 : i32
    %c0_i32_1 = arith.constant 0 : i32
    return %c0_i32, %c0_i32_0 : i32, i32
  }
  func.func @transform_1(%arg0: i32) -> (i32, i32) {
    %c0_i32 = arith.constant 0 : i32
    %c0_i32_0 = arith.constant 0 : i32
    %c0_i32_1 = arith.constant 0 : i32
    return %c0_i32, %c0_i32_0 : i32, i32
  }
  func.func @transform_2(%arg0: i32) -> (i32, i32) {
    %c0_i32 = arith.constant 0 : i32
    %c0_i32_0 = arith.constant 0 : i32
    %c0_i32_1 = arith.constant 0 : i32
    return %c0_i32, %c0_i32_0 : i32, i32
  }
  func.func @transform_3(%arg0: i32) -> (i32, i32) {
    %c0_i32 = arith.constant 0 : i32
    %c0_i32_0 = arith.constant 0 : i32
    %c0_i32_1 = arith.constant 0 : i32
    return %c0_i32, %c0_i32_0 : i32, i32
  }
  func.func @transform_4(%arg0: i32) -> (i32, i32) {
    %c0_i32 = arith.constant 0 : i32
    %c0_i32_0 = arith.constant 0 : i32
    %c0_i32_1 = arith.constant 0 : i32
    return %c0_i32, %c0_i32_0 : i32, i32
  }
}

module attributes {stable_mosaic.version = 11 : i64} {
  func.func @_conv_bn_relu_kernel(%arg0: i32, %arg1: memref<248x1152xbf16, #tpu.memory_space<vmem>>, %arg2: memref<1152x128xbf16, #tpu.memory_space<vmem>>, %arg3: memref<1x128xf32, #tpu.memory_space<vmem>>, %arg4: memref<1x128xf32, #tpu.memory_space<vmem>>, %arg5: memref<248x128xbf16, #tpu.memory_space<vmem>>) attributes {dimension_semantics = [#tpu.dimension_semantics<arbitrary>], iteration_bounds = array<i64: 1>, scalar_prefetch = 0 : i64, scratch_operands = 0 : i64, tpu.core_type = #tpu.core_type<tc>, window_params = [{pipeline_mode = #tpu.pipeline_mode<synchronous>, transform_indices = @transform_0, window_bounds = array<i64: 248, 1152>}, {pipeline_mode = #tpu.pipeline_mode<synchronous>, transform_indices = @transform_1, window_bounds = array<i64: 1152, 128>}, {pipeline_mode = #tpu.pipeline_mode<synchronous>, transform_indices = @transform_2, window_bounds = array<i64: 1, 128>}, {pipeline_mode = #tpu.pipeline_mode<synchronous>, transform_indices = @transform_3, window_bounds = array<i64: 1, 128>}, {pipeline_mode = #tpu.pipeline_mode<synchronous>, transform_indices = @transform_4, window_bounds = array<i64: 248, 128>}]} {
    %c0 = arith.constant 0 : index
    %c0_0 = arith.constant 0 : index
    %0 = vector.load %arg1[%c0, %c0_0] : memref<248x1152xbf16, #tpu.memory_space<vmem>>, vector<248x1152xbf16>
    %c0_1 = arith.constant 0 : index
    %c0_2 = arith.constant 0 : index
    %1 = vector.load %arg2[%c0_1, %c0_2] : memref<1152x128xbf16, #tpu.memory_space<vmem>>, vector<1152x128xbf16>
    %cst = arith.constant dense<0.000000e+00> : vector<248x128xf32>
    %2 = tpu.matmul %0, %1, %cst {dimension_numbers = #tpu.dot_dimension_numbers<[1], [0], [0], [1], [0, 0, 1, 1], [], []>} : vector<248x1152xbf16>, vector<1152x128xbf16>, vector<248x128xf32> -> vector<248x128xf32>
    %cst_3 = arith.constant dense<0.000000e+00> : vector<128xf32>
    %3 = vector.multi_reduction <add>, %2, %cst_3 [0] : vector<248x128xf32> to vector<128xf32>
    %4 = vector.shape_cast %3 : vector<128xf32> to vector<1x128xf32>
    %cst_4 = arith.constant 0.00413223123 : f32
    %5 = vector.broadcast %cst_4 : f32 to vector<1x128xf32>
    %6 = arith.mulf %4, %5 : vector<1x128xf32>
    %7 = arith.mulf %2, %2 : vector<248x128xf32>
    %cst_5 = arith.constant dense<0.000000e+00> : vector<128xf32>
    %8 = vector.multi_reduction <add>, %7, %cst_5 [0] : vector<248x128xf32> to vector<128xf32>
    %9 = vector.shape_cast %8 : vector<128xf32> to vector<1x128xf32>
    %cst_6 = arith.constant 0.00413223123 : f32
    %10 = vector.broadcast %cst_6 : f32 to vector<1x128xf32>
    %11 = arith.mulf %9, %10 : vector<1x128xf32>
    %12 = arith.mulf %6, %6 : vector<1x128xf32>
    %13 = arith.subf %11, %12 : vector<1x128xf32>
    %cst_7 = arith.constant 0.000000e+00 : f32
    %14 = vector.broadcast %cst_7 : f32 to vector<1x128xf32>
    %15 = arith.maximumf %13, %14 : vector<1x128xf32>
    %c0_8 = arith.constant 0 : index
    %c0_9 = arith.constant 0 : index
    %16 = vector.load %arg3[%c0_8, %c0_9] : memref<1x128xf32, #tpu.memory_space<vmem>>, vector<1x128xf32>
    %cst_10 = arith.constant 9.99999974E-6 : f32
    %17 = vector.broadcast %cst_10 : f32 to vector<1x128xf32>
    %18 = arith.addf %15, %17 : vector<1x128xf32>
    %19 = math.rsqrt %18 : vector<1x128xf32>
    %20 = arith.mulf %16, %19 : vector<1x128xf32>
    %c0_11 = arith.constant 0 : index
    %c0_12 = arith.constant 0 : index
    %21 = vector.load %arg4[%c0_11, %c0_12] : memref<1x128xf32, #tpu.memory_space<vmem>>, vector<1x128xf32>
    %22 = arith.mulf %6, %20 : vector<1x128xf32>
    %23 = arith.subf %21, %22 : vector<1x128xf32>
    %24 = vector.broadcast %20 : vector<1x128xf32> to vector<248x128xf32>
    %25 = arith.mulf %2, %24 : vector<248x128xf32>
    %26 = vector.broadcast %23 : vector<1x128xf32> to vector<248x128xf32>
    %27 = arith.addf %25, %26 : vector<248x128xf32>
    %cst_13 = arith.constant 0.000000e+00 : f32
    %28 = vector.broadcast %cst_13 : f32 to vector<248x128xf32>
    %29 = arith.maximumf %27, %28 : vector<248x128xf32>
    %30 = arith.truncf %29 : vector<248x128xf32> to vector<248x128xbf16>
    %c0_14 = arith.constant 0 : index
    %c0_15 = arith.constant 0 : index
    %31 = vector.load %arg5[%c0_14, %c0_15] : memref<248x128xbf16, #tpu.memory_space<vmem>>, vector<248x128xbf16>
    tpu.vector_store %arg5[%c0_14, %c0_15], %30 {strides = array<i32>} : memref<248x128xbf16, #tpu.memory_space<vmem>>, vector<248x128xbf16>,
    return
  }
  func.func @transform_0(%arg0: i32) -> (i32, i32) {
    %c0_i32 = arith.constant 0 : i32
    %c0_i32_0 = arith.constant 0 : i32
    %c0_i32_1 = arith.constant 0 : i32
    return %c0_i32, %c0_i32_0 : i32, i32
  }
  func.func @transform_1(%arg0: i32) -> (i32, i32) {
    %c0_i32 = arith.constant 0 : i32
    %c0_i32_0 = arith.constant 0 : i32
    %c0_i32_1 = arith.constant 0 : i32
    return %c0_i32, %c0_i32_0 : i32, i32
  }
  func.func @transform_2(%arg0: i32) -> (i32, i32) {
    %c0_i32 = arith.constant 0 : i32
    %c0_i32_0 = arith.constant 0 : i32
    %c0_i32_1 = arith.constant 0 : i32
    return %c0_i32, %c0_i32_0 : i32, i32
  }
  func.func @transform_3(%arg0: i32) -> (i32, i32) {
    %c0_i32 = arith.constant 0 : i32
    %c0_i32_0 = arith.constant 0 : i32
    %c0_i32_1 = arith.constant 0 : i32
    return %c0_i32, %c0_i32_0 : i32, i32
  }
  func.func @transform_4(%arg0: i32) -> (i32, i32) {
    %c0_i32 = arith.constant 0 : i32
    %c0_i32_0 = arith.constant 0 : i32
    %c0_i32_1 = arith.constant 0 : i32
    return %c0_i32, %c0_i32_0 : i32, i32
  }
}

</mosaic_0001>

<bundles_post_ra>
// kernel: net_bn_forward.2
= control target key start
LH: loop header
LB: loop body
LE: loop exit
PB: predicated region body
PF: predicated region fallthrough
CT: control target
= control target key end

     0   :  { %vm873_vm0 = vcmask 1043456   ;;  %vm874_vm1 = vcmask 1044480   ;;  %v5023_v0 = vmov 0.0   ;;  %v5024_v2 = vmov 65535   ;;  %s8549_s1 = inlined_call_operand.vmem [shape: bf16[9,128], index: 1, kind: input, shape index: {}]   ;;  %s8550_s0 = inlined_call_operand.vmem [shape: bf16[1352,9], index: 0, kind: input, shape index: {}]   ;;  %s8551_s2 = inlined_call_operand.vmem [shape: f32[1,128], index: 2, kind: input, shape index: {}]   ;;  %s8552_s3 = inlined_call_operand.vmem [shape: f32[1,128], index: 3, kind: input, shape index: {}]   ;;  %s8553_s4 = inlined_call_operand.vmem [shape: bf16[1352,128], index: 4, kind: output, shape index: {}]  }
   0x1   :  { %4588 = vmatprep.subr.bf16.mxu0 %v5023_v0  ;;  %v4935_v1 = vld [vmem:[%s8549_s1] sm:$0x1f]   ;;  %4930 = vmatprep.subr.bf16.mxu1 %v5023_v0  ;;  %v875_v3 = vsel %vm873_vm0, 4294967295, %v5024_v2  ;;  %vm5025_vm2 = vmmov 0   ;;  %vm617_vm3 = vcmask 72704   ;;  %v4937_v7 = vld [vmem:[%s8550_s0 + $0x8] sm:$0xff]  }
   0x2   :  { %v876_v4 = vsel %vm874_vm1, %v875_v3, 0  ;;  %4590 = vmatprep.mubr.msk.bf16.mxu0 %vm5025_vm2, %v5023_v0  ;;  %4762 = vmatprep.mubr.msk.bf16.mxu1 %vm5025_vm2, %v5023_v0  ;;  %v4936_v6 = vld [vmem:[%s8550_s0] sm:$0xff]   ;;  %v4938_v8 = vld [vmem:[%s8550_s0 + $0x10] sm:$0xff]   ;;  %v4939_v9 = vld [vmem:[%s8550_s0 + $0x18] sm:$0xff]  }
   0x3   :  { %v878_v5 = vand.u32 %v4935_v1, %v876_v4  ;;  %v4940_v10 = vld [vmem:[%s8550_s0 + $0x20] sm:$0xff]   ;;  %v4941_v11 = vld [vmem:[%s8550_s0 + $0x28] sm:$0xff]   ;;  %v4958_v12 = vld [vmem:[%s8550_s0 + $0x158] sm:$0xff]  }
   0x4   :  { %v4942_v13 = vld [vmem:[%s8550_s0 + $0x30] sm:$0xff]   ;;  %v4960_v14 = vld [vmem:[%s8550_s0 + $0x160] sm:$0xff]   ;;  %v4943_v15 = vld [vmem:[%s8550_s0 + $0x38] sm:$0xff]  }
   0x5   :  { %4589 = vmatpush3.bf16.msra.mxu0 %v878_v5  ;;  %4931 = vmatpush3.bf16.msra.mxu1 %v878_v5  ;;  %v4962_v16 = vld [vmem:[%s8550_s0 + $0x168] sm:$0xff]   ;;  %v4944_v17 = vld [vmem:[%s8550_s0 + $0x40] sm:$0xff]   ;;  %v4964_v18 = vld [vmem:[%s8550_s0 + $0x170] sm:$0xff]  }
   0x6   :  { %v4945_v19 = vld [vmem:[%s8550_s0 + $0x48] sm:$0xff]   ;;  %v4966_v20 = vld [vmem:[%s8550_s0 + $0x178] sm:$0xff]   ;;  %v4946_v21 = vld [vmem:[%s8550_s0 + $0x50] sm:$0xff]  }
   0x7   :  { %v4968_v22 = vld [vmem:[%s8550_s0 + $0x180] sm:$0xff]   ;;  %v4947_v23 = vld [vmem:[%s8550_s0 + $0x58] sm:$0xff]   ;;  %v4970_v24 = vld [vmem:[%s8550_s0 + $0x188] sm:$0xff]  }
   0x8   :  { %4591 = vmatmul.mubr.msk.bf16.vlgmr.msra.gmra.mxu0 %vm617_vm3, %v4936_v6  ;;  %4763 = vmatmul.mubr.msk.bf16.vlgmr.msra.gmra.mxu1 %vm617_vm3, %v4958_v12  ;;  %v4948_v25 = vld [vmem:[%s8550_s0 + $0x60] sm:$0xff]   ;;  %v4972_v26 = vld [vmem:[%s8550_s0 + $0x190] sm:$0xff]   ;;  %v4949_v27 = vld [vmem:[%s8550_s0 + $0x68] sm:$0xff]  }
   0x9   :  { %4594 = vmatprep.mubr.msk.bf16.mxu0 %vm5025_vm2, %v5023_v0  ;;  %4766 = vmatprep.mubr.msk.bf16.mxu1 %vm5025_vm2, %v5023_v0  ;;  %v4974_v28 = vld [vmem:[%s8550_s0 + $0x198] sm:$0xff]   ;;  %v4950_v29 = vld [vmem:[%s8550_s0 + $0x70] sm:$0xff]   ;;  %v4976_v30 = vld [vmem:[%s8550_s0 + $0x1a0] sm:$0xff]  }
   0xa   :  { %v4951_v31 = vld [vmem:[%s8550_s0 + $0x78] sm:$0xff]   ;;  %v4978_v32 = vld [vmem:[%s8550_s0 + $0x1a8] sm:$0xff]   ;;  %v4952_v33 = vld [vmem:[%s8550_s0 + $0x80] sm:$0xff]  }
   0xb   :  { %v4980_v34 = vld [vmem:[%s8550_s0 + $0x1b0] sm:$0xff]   ;;  %v4953_v35 = vld [vmem:[%s8550_s0 + $0x88] sm:$0xff]   ;;  %v4982_v36 = vld [vmem:[%s8550_s0 + $0x1b8] sm:$0xff]  }
   0xc   :  { %v4954_v37 = vld [vmem:[%s8550_s0 + $0x90] sm:$0xff]   ;;  %v4984_v38 = vld [vmem:[%s8550_s0 + $0x1c0] sm:$0xff]   ;;  %v4955_v39 = vld [vmem:[%s8550_s0 + $0x98] sm:$0xff]  }
   0xd   :  { %v4986_v40 = vld [vmem:[%s8550_s0 + $0x1c8] sm:$0xff]   ;;  %v4956_v41 = vld [vmem:[%s8550_s0 + $0xa0] sm:$0xff]   ;;  %v4988_v42 = vld [vmem:[%s8550_s0 + $0x1d0] sm:$0xff]  }
   0xe   :  { %v4957_v43 = vld [vmem:[%s8550_s0 + $0xa8] sm:$0xff]   ;;  %v4990_v44 = vld [vmem:[%s8550_s0 + $0x1d8] sm:$0xff]   ;;  %v4959_v45 = vld [vmem:[%s8550_s0 + $0xb0] sm:$0xff]  }
   0xf   :  { %v4992_v46 = vld [vmem:[%s8550_s0 + $0x1e0] sm:$0xff]   ;;  %v4961_v47 = vld [vmem:[%s8550_s0 + $0xb8] sm:$0xff]   ;;  %v4994_v48 = vld [vmem:[%s8550_s0 + $0x1e8] sm:$0xff]  }
  0x10   :  { %4595 = vmatmul.mubr.msk.bf16.gmra.mxu0 %vm617_vm3, %v4937_v7  ;;  %4767 = vmatmul.mubr.msk.bf16.gmra.mxu1 %vm617_vm3, %v4960_v14  ;;  %v4963_v49 = vld [vmem:[%s8550_s0 + $0xc0] sm:$0xff]   ;;  %v4996_v52 = vld [vmem:[%s8550_s0 + $0x1f0] sm:$0xff]   ;;  %v4965_v54 = vld [vmem:[%s8550_s0 + $0xc8] sm:$0xff]  }
  0x11   :  { %4598 = vmatprep.mubr.msk.bf16.mxu0 %vm5025_vm2, %v5023_v0  ;;  %4770 = vmatprep.mubr.msk.bf16.mxu1 %vm5025_vm2, %v5023_v0  ;;  %v4998_v58 = vld [vmem:[%s8550_s0 + $0x1f8] sm:$0xff]   ;;  %v4967_v60 = vld [vmem:[%s8550_s0 + $0xd0] sm:$0xff]   ;;  %v5000_v1 = vld [vmem:[%s8550_s0 + $0x200] sm:$0xff]  }
  0x12   :  { %v4969_v3 = vld [vmem:[%s8550_s0 + $0xd8] sm:$0xff]   ;;  %v5001_v7 = vld [vmem:[%s8550_s0 + $0x208] sm:$0xff]  }
  0x18   :  { %4599 = vmatmul.mubr.msk.bf16.gmra.mxu0 %vm617_vm3, %v4938_v8  ;;  %4771 = vmatmul.mubr.msk.bf16.gmra.mxu1 %vm617_vm3, %v4962_v16 }
  0x19   :  { %4602 = vmatprep.mubr.msk.bf16.mxu0 %vm5025_vm2, %v5023_v0  ;;  %4774 = vmatprep.mubr.msk.bf16.mxu1 %vm5025_vm2, %v5023_v0 }
  0x20   :  { %4603 = vmatmul.mubr.msk.bf16.gmra.mxu0 %vm617_vm3, %v4939_v9  ;;  %4775 = vmatmul.mubr.msk.bf16.gmra.mxu1 %vm617_vm3, %v4964_v18  ;;  %v4971_v9 = vld [vmem:[%s8550_s0 + $0xe0] sm:$0xff]  }
  0x21   :  { %4606 = vmatprep.mubr.msk.bf16.mxu0 %vm5025_vm2, %v5023_v0  ;;  %4778 = vmatprep.mubr.msk.bf16.mxu1 %vm5025_vm2, %v5023_v0 }
  0x28   :  { %4607 = vmatmul.mubr.msk.bf16.gmra.mxu0 %vm617_vm3, %v4940_v10  ;;  %4779 = vmatmul.mubr.msk.bf16.gmra.mxu1 %vm617_vm3, %v4966_v20 }
  0x29   :  { %4610 = vmatprep.mubr.msk.bf16.mxu0 %vm5025_vm2, %v5023_v0  ;;  %4782 = vmatprep.mubr.msk.bf16.mxu1 %vm5025_vm2, %v5023_v0 }
  0x30   :  { %4611 = vmatmul.mubr.msk.bf16.gmra.mxu0 %vm617_vm3, %v4941_v11  ;;  %4783 = vmatmul.mubr.msk.bf16.gmra.mxu1 %vm617_vm3, %v4968_v22 }
  0x31   :  { %4614 = vmatprep.mubr.msk.bf16.mxu0 %vm5025_vm2, %v5023_v0  ;;  %4786 = vmatprep.mubr.msk.bf16.mxu1 %vm5025_vm2, %v5023_v0 }
  0x38   :  { %4615 = vmatmul.mubr.msk.bf16.gmra.mxu0 %vm617_vm3, %v4942_v13  ;;  %4787 = vmatmul.mubr.msk.bf16.gmra.mxu1 %vm617_vm3, %v4970_v24  ;;  %v5002_v13 = vld [vmem:[%s8550_s0 + $0x210] sm:$0xff]  }
  0x39   :  { %4618 = vmatprep.mubr.msk.bf16.mxu0 %vm5025_vm2, %v5023_v0  ;;  %4790 = vmatprep.mubr.msk.bf16.mxu1 %vm5025_vm2, %v5023_v0 }
  0x40   :  { %4619 = vmatmul.mubr.msk.bf16.gmra.mxu0 %vm617_vm3, %v4943_v15  ;;  %4791 = vmatmul.mubr.msk.bf16.gmra.mxu1 %vm617_vm3, %v4972_v26  ;;  %v4973_v15 = vld [vmem:[%s8550_s0 + $0xe8] sm:$0xff]  }
  0x41   :  { %4622 = vmatprep.mubr.msk.bf16.mxu0 %vm5025_vm2, %v5023_v0  ;;  %4794 = vmatprep.mubr.msk.bf16.mxu1 %vm5025_vm2, %v5023_v0 }
  0x48   :  { %4623 = vmatmul.mubr.msk.bf16.gmra.mxu0 %vm617_vm3, %v4944_v17  ;;  %4795 = vmatmul.mubr.msk.bf16.gmra.mxu1 %vm617_vm3, %v4974_v28 }
  0x49   :  { %4626 = vmatprep.mubr.msk.bf16.mxu0 %vm5025_vm2, %v5023_v0  ;;  %4798 = vmatprep.mubr.msk.bf16.mxu1 %vm5025_vm2, %v5023_v0 }
  0x50   :  { %4627 = vmatmul.mubr.msk.bf16.gmra.mxu0 %vm617_vm3, %v4945_v19  ;;  %4799 = vmatmul.mubr.msk.bf16.gmra.mxu1 %vm617_vm3, %v4976_v30  ;;  %v5003_v19 = vld [vmem:[%s8550_s0 + $0x218] sm:$0xff]  }
  0x51   :  { %4630 = vmatprep.mubr.msk.bf16.mxu0 %vm5025_vm2, %v5023_v0  ;;  %4802 = vmatprep.mubr.msk.bf16.mxu1 %vm5025_vm2, %v5023_v0 }
  0x58   :  { %4631 = vmatmul.mubr.msk.bf16.gmra.mxu0 %vm617_vm3, %v4946_v21  ;;  %4803 = vmatmul.mubr.msk.bf16.gmra.mxu1 %vm617_vm3, %v4978_v32  ;;  %v4975_v21 = vld [vmem:[%s8550_s0 + $0xf0] sm:$0xff]  }
  0x59   :  { %4634 = vmatprep.mubr.msk.bf16.mxu0 %vm5025_vm2, %v5023_v0  ;;  %4806 = vmatprep.mubr.msk.bf16.mxu1 %vm5025_vm2, %v5023_v0 }
  0x60   :  { %4635 = vmatmul.mubr.msk.bf16.gmra.mxu0 %vm617_vm3, %v4947_v23  ;;  %4807 = vmatmul.mubr.msk.bf16.gmra.mxu1 %vm617_vm3, %v4980_v34 }
  0x61   :  { %4638 = vmatprep.mubr.msk.bf16.mxu0 %vm5025_vm2, %v5023_v0  ;;  %4810 = vmatprep.mubr.msk.bf16.mxu1 %vm5025_vm2, %v5023_v0 }
  0x68   :  { %4639 = vmatmul.mubr.msk.bf16.gmra.mxu0 %vm617_vm3, %v4948_v25  ;;  %4811 = vmatmul.mubr.msk.bf16.gmra.mxu1 %vm617_vm3, %v4982_v36 }
  0x69   :  { %4642 = vmatprep.mubr.msk.bf16.mxu0 %vm5025_vm2, %v5023_v0  ;;  %4814 = vmatprep.mubr.msk.bf16.mxu1 %vm5025_vm2, %v5023_v0 }
  0x70   :  { %4643 = vmatmul.mubr.msk.bf16.gmra.mxu0 %vm617_vm3, %v4949_v27  ;;  %4815 = vmatmul.mubr.msk.bf16.gmra.mxu1 %vm617_vm3, %v4984_v38 }
  0x71   :  { %4646 = vmatprep.mubr.msk.bf16.mxu0 %vm5025_vm2, %v5023_v0  ;;  %4818 = vmatprep.mubr.msk.bf16.mxu1 %vm5025_vm2, %v5023_v0 }
  0x78   :  { %4647 = vmatmul.mubr.msk.bf16.gmra.mxu0 %vm617_vm3, %v4950_v29  ;;  %4819 = vmatmul.mubr.msk.bf16.gmra.mxu1 %vm617_vm3, %v4986_v40  ;;  %v5004_v29 = vld [vmem:[%s8550_s0 + $0x220] sm:$0xff]  }
  0x79   :  { %4650 = vmatprep.mubr.msk.bf16.mxu0 %vm5025_vm2, %v5023_v0  ;;  %4822 = vmatprep.mubr.msk.bf16.mxu1 %vm5025_vm2, %v5023_v0 }
  0x80   :  { %4651 = vmatmul.mubr.msk.bf16.gmra.mxu0 %vm617_vm3, %v4951_v31  ;;  %4823 = vmatmul.mubr.msk.bf16.gmra.mxu1 %vm617_vm3, %v4988_v42  ;;  %v4977_v31 = vld [vmem:[%s8550_s0 + $0xf8] sm:$0xff]  }
  0x81   :  { %4654 = vmatprep.mubr.msk.bf16.mxu0 %vm5025_vm2, %v5023_v0  ;;  %4826 = vmatprep.mubr.msk.bf16.mxu1 %vm5025_vm2, %v5023_v0 }
  0x88   :  { %4655 = vmatmul.mubr.msk.bf16.gmra.mxu0 %vm617_vm3, %v4952_v33  ;;  %4827 = vmatmul.mubr.msk.bf16.gmra.mxu1 %vm617_vm3, %v4990_v44 }
  0x89   :  { %4658 = vmatprep.mubr.msk.bf16.mxu0 %vm5025_vm2, %v5023_v0  ;;  %4830 = vmatprep.mubr.msk.bf16.mxu1 %vm5025_vm2, %v5023_v0 }
  0x90   :  { %4659 = vmatmul.mubr.msk.bf16.gmra.mxu0 %vm617_vm3, %v4953_v35  ;;  %4831 = vmatmul.mubr.msk.bf16.gmra.mxu1 %vm617_vm3, %v4992_v46 }
  0x91   :  { %4662 = vmatprep.mubr.msk.bf16.mxu0 %vm5025_vm2, %v5023_v0  ;;  %4834 = vmatprep.mubr.msk.bf16.mxu1 %vm5025_vm2, %v5023_v0 }
  0x98   :  { %4663 = vmatmul.mubr.msk.bf16.gmra.mxu0 %vm617_vm3, %v4954_v37  ;;  %4835 = vmatmul.mubr.msk.bf16.gmra.mxu1 %vm617_vm3, %v4994_v48 }
  0x99   :  { %4666 = vmatprep.mubr.msk.bf16.mxu0 %vm5025_vm2, %v5023_v0  ;;  %4838 = vmatprep.mubr.msk.bf16.mxu1 %vm5025_vm2, %v5023_v0 }
  0xa0   :  { %4667 = vmatmul.mubr.msk.bf16.gmra.mxu0 %vm617_vm3, %v4955_v39  ;;  %4839 = vmatmul.mubr.msk.bf16.gmra.mxu1 %vm617_vm3, %v4996_v52  ;;  %v5005_v39 = vld [vmem:[%s8550_s0 + $0x228] sm:$0xff]  }
  0xa1   :  { %4670 = vmatprep.mubr.msk.bf16.mxu0 %vm5025_vm2, %v5023_v0  ;;  %4842 = vmatprep.mubr.msk.bf16.mxu1 %vm5025_vm2, %v5023_v0  ;;  %v4981_v52 = vld [vmem:[%s8550_s0 + $0x108] sm:$0xff]  }
  0xa8   :  { %4671 = vmatmul.mubr.msk.bf16.gmra.mxu0 %vm617_vm3, %v4956_v41  ;;  %4843 = vmatmul.mubr.msk.bf16.gmra.mxu1 %vm617_vm3, %v4998_v58  ;;  %v4979_v41 = vld [vmem:[%s8550_s0 + $0x100] sm:$0xff]  }
  0xa9   :  { %4674 = vmatprep.mubr.msk.bf16.mxu0 %vm5025_vm2, %v5023_v0  ;;  %4846 = vmatprep.mubr.msk.bf16.mxu1 %vm5025_vm2, %v5023_v0 }
  0xb0   :  { %4675 = vmatmul.mubr.msk.bf16.gmra.mxu0 %vm617_vm3, %v4957_v43  ;;  %4847 = vmatmul.mubr.msk.bf16.gmra.mxu1 %vm617_vm3, %v5000_v1  ;;  %v5007_v1 = vld [vmem:[%s8550_s0 + $0x238] sm:$0xff]  }
  0xb1   :  { %4678 = vmatprep.mubr.msk.bf16.mxu0 %vm5025_vm2, %v5023_v0  ;;  %4850 = vmatprep.mubr.msk.bf16.mxu1 %vm5025_vm2, %v5023_v0 }
  0xb8   :  { %4679 = vmatmul.mubr.msk.bf16.gmra.mxu0 %vm617_vm3, %v4959_v45  ;;  %4851 = vmatmul.mubr.msk.bf16.gmra.mxu1 %vm617_vm3, %v5001_v7 }
  0xb9   :  { %4682 = vmatprep.mubr.msk.bf16.mxu0 %vm5025_vm2, %v5023_v0  ;;  %4854 = vmatprep.mubr.msk.bf16.mxu1 %vm5025_vm2, %v5023_v0 }
  0xc0   :  { %4683 = vmatmul.mubr.msk.bf16.gmra.mxu0 %vm617_vm3, %v4961_v47  ;;  %4855 = vmatmul.mubr.msk.bf16.gmra.mxu1 %vm617_vm3, %v5002_v13 }
  0xc1   :  { %4686 = vmatprep.mubr.msk.bf16.mxu0 %vm5025_vm2, %v5023_v0  ;;  %4858 = vmatprep.mubr.msk.bf16.mxu1 %vm5025_vm2, %v5023_v0 }
  0xc8   :  { %v5321_v50 = vpop.f32.mrf.mxu0  ;;  %4687 = vmatmul.mubr.msk.bf16.gmra.mxu0 %vm617_vm3, %v4963_v49  ;;  %v5414_v22 = vpop.f32.mrf.mxu1  ;;  %4859 = vmatmul.mubr.msk.bf16.gmra.mxu1 %vm617_vm3, %v5003_v19  ;;  %v5006_v49 = vld [vmem:[%s8550_s0 + $0x230] sm:$0xff]   ;;  %v4985_v19 = vld [vmem:[%s8550_s0 + $0x118] sm:$0xff]  }
  0xc9   :  { %8857 = vst [vmem:[#allocation2_spill] sm:$0xff] %v5321_v50  ;;  %4690 = vmatprep.mubr.msk.bf16.mxu0 %vm5025_vm2, %v5023_v0  ;;  %8869 = vst [vmem:[#allocation14_spill] sm:$0xff] %v5414_v22  ;;  %4862 = vmatprep.mubr.msk.bf16.mxu1 %vm5025_vm2, %v5023_v0 }
  0xca   :  { %v4592_v51 = vpop.f32.mrf.mxu0  ;;  %v4764_v24 = vpop.f32.mrf.mxu1 }
  0xcc   :  { %v5329_v53 = vpop.f32.mrf.mxu0  ;;  %v5422_v26 = vpop.f32.mrf.mxu1 }
  0xcd   :  { %8858 = vst [vmem:[#allocation3_spill] sm:$0xff] %v5329_v53  ;;  %8871 = vst [vmem:[#allocation16_spill] sm:$0xff] %v5422_v26 }
  0xce   :  { %v4593_v55 = vpop.f32.mrf.mxu0  ;;  %v4765_v28 = vpop.f32.mrf.mxu1 }
  0xd0   :  { %v5337_v56 = vpop.f32.mrf.mxu0  ;;  %4691 = vmatmul.mubr.msk.bf16.gmra.mxu0 %vm617_vm3, %v4965_v54  ;;  %v5434_v32 = vpop.f32.mrf.mxu1  ;;  %4863 = vmatmul.mubr.msk.bf16.gmra.mxu1 %vm617_vm3, %v5004_v29 }
  0xd1   :  { %8859 = vst [vmem:[#allocation4_spill] sm:$0xff] %v5337_v56  ;;  %4694 = vmatprep.mubr.msk.bf16.mxu0 %vm5025_vm2, %v5023_v0  ;;  %8873 = vst [vmem:[#allocation18_spill] sm:$0xff] %v5434_v32  ;;  %4866 = vmatprep.mubr.msk.bf16.mxu1 %vm5025_vm2, %v5023_v0 }
  0xd2   :  { %v4596_v57 = vpop.f32.mrf.mxu0  ;;  %v4768_v34 = vpop.f32.mrf.mxu1 }
  0xd4   :  { %v5345_v59 = vpop.f32.mrf.mxu0  ;;  %v5442_v36 = vpop.f32.mrf.mxu1 }
  0xd5   :  { %8860 = vst [vmem:[#allocation5_spill] sm:$0xff] %v5345_v59  ;;  %8875 = vst [vmem:[#allocation20_spill] sm:$0xff] %v5442_v36 }
  0xd6   :  { %v4597_v61 = vpop.f32.mrf.mxu0  ;;  %v4769_v38 = vpop.f32.mrf.mxu1 }
  0xd8   :  { %v5353_v62 = vpop.f32.mrf.mxu0  ;;  %4695 = vmatmul.mubr.msk.bf16.gmra.mxu0 %vm617_vm3, %v4967_v60  ;;  %v5454_v42 = vpop.f32.mrf.mxu1  ;;  %4867 = vmatmul.mubr.msk.bf16.gmra.mxu1 %vm617_vm3, %v5005_v39 }
  0xd9   :  { %8861 = vst [vmem:[#allocation6_spill] sm:$0xff] %v5353_v62  ;;  %4698 = vmatprep.mubr.msk.bf16.mxu0 %vm5025_vm2, %v5023_v0  ;;  %8877 = vst [vmem:[#allocation22_spill] sm:$0xff] %v5454_v42  ;;  %4870 = vmatprep.mubr.msk.bf16.mxu1 %vm5025_vm2, %v5023_v0 }
  0xda   :  { %v4600_v63 = vpop.f32.mrf.mxu0  ;;  %v4772_v44 = vpop.f32.mrf.mxu1 }
  0xdc   :  { %v5361_v2 = vpop.f32.mrf.mxu0  ;;  %v5462_v46 = vpop.f32.mrf.mxu1 }
  0xdd   :  { %8862 = vst [vmem:[#allocation7_spill] sm:$0xff] %v5361_v2  ;;  %8879 = vst [vmem:[#allocation24_spill] sm:$0xff] %v5462_v46 }
  0xde   :  { %v4601_v4 = vpop.f32.mrf.mxu0  ;;  %v4773_v48 = vpop.f32.mrf.mxu1 }
  0xdf   :  { %v4983_v4 = vld [vmem:[%s8550_s0 + $0x110] sm:$0xff]  }
  0xe0   :  { %v5369_v5 = vpop.f32.mrf.mxu0  ;;  %4699 = vmatmul.mubr.msk.bf16.gmra.mxu0 %vm617_vm3, %v4969_v3  ;;  %v5474_v54 = vpop.f32.mrf.mxu1  ;;  %4871 = vmatmul.mubr.msk.bf16.gmra.mxu1 %vm617_vm3, %v5006_v49  ;;  %v5010_v49 = vld [vmem:[%s8550_s0 + $0x250] sm:$0xff]  }
  0xe1   :  { %8863 = vst [vmem:[#allocation8_spill] sm:$0xff] %v5369_v5  ;;  %4702 = vmatprep.mubr.msk.bf16.mxu0 %vm5025_vm2, %v5023_v0  ;;  %8881 = vst [vmem:[#allocation26_spill] sm:$0xff] %v5474_v54  ;;  %4874 = vmatprep.mubr.msk.bf16.mxu1 %vm5025_vm2, %v5023_v0 }
  0xe2   :  { %v4604_v6 = vpop.f32.mrf.mxu0  ;;  %v4776_v57 = vpop.f32.mrf.mxu1 }
  0xe4   :  { %v5377_v8 = vpop.f32.mrf.mxu0  ;;  %v5482_v60 = vpop.f32.mrf.mxu1 }
  0xe5   :  { %8864 = vst [vmem:[#allocation9_spill] sm:$0xff] %v5377_v8  ;;  %8883 = vst [vmem:[#allocation28_spill] sm:$0xff] %v5482_v60 }
  0xe6   :  { %v4605_v10 = vpop.f32.mrf.mxu0  ;;  %v4777_v63 = vpop.f32.mrf.mxu1 }
  0xe8   :  { %v5385_v11 = vpop.f32.mrf.mxu0  ;;  %4703 = vmatmul.mubr.msk.bf16.gmra.mxu0 %vm617_vm3, %v4971_v9  ;;  %v5494_v6 = vpop.f32.mrf.mxu1  ;;  %4875 = vmatmul.mubr.msk.bf16.gmra.mxu1 %vm617_vm3, %v5007_v1 }
  0xe9   :  { %8865 = vst [vmem:[#allocation10_spill] sm:$0xff] %v5385_v11  ;;  %4706 = vmatprep.mubr.msk.bf16.mxu0 %vm5025_vm2, %v5023_v0  ;;  %8885 = vst [vmem:[#allocation30_spill] sm:$0xff] %v5494_v6  ;;  %4878 = vmatprep.mubr.msk.bf16.mxu1 %vm5025_vm2, %v5023_v0 }
  0xea   :  { %v4608_v12 = vpop.f32.mrf.mxu0  ;;  %v4780_v9 = vpop.f32.mrf.mxu1 }
  0xec   :  { %v5393_v14 = vpop.f32.mrf.mxu0  ;;  %v5502_v12 = vpop.f32.mrf.mxu1 }
  0xed   :  { %8866 = vst [vmem:[#allocation11_spill] sm:$0xff] %v5393_v14  ;;  %8887 = vst [vmem:[#allocation32_spill] sm:$0xff] %v5502_v12 }
  0xee   :  { %v4609_v16 = vpop.f32.mrf.mxu0 }
  0xef   :  { %v5008_v16 = vld [vmem:[%s8550_s0 + $0x240] sm:$0xff]  }
  0xf0   :  { %v5401_v17 = vpop.f32.mrf.mxu0  ;;  %4707 = vmatmul.mubr.msk.bf16.gmra.mxu0 %vm617_vm3, %v4973_v15  ;;  %v4781_v15 = vpop.f32.mrf.mxu1  ;;  %4879 = vmatmul.mubr.msk.bf16.gmra.mxu1 %vm617_vm3, %v5008_v16  ;;  %v4991_v16 = vld [vmem:[%s8550_s0 + $0x130] sm:$0xff]  }
  0xf1   :  { %8867 = vst [vmem:[#allocation12_spill] sm:$0xff] %v5401_v17  ;;  %4710 = vmatprep.mubr.msk.bf16.mxu0 %vm5025_vm2, %v5023_v0  ;;  %4882 = vmatprep.mubr.msk.bf16.mxu1 %vm5025_vm2, %v5023_v0 }
  0xf2   :  { %v4612_v18 = vpop.f32.mrf.mxu0 }
  0xf4   :  { %v5409_v20 = vpop.f32.mrf.mxu0 }
  0xf5   :  { %8868 = vst [vmem:[#allocation13_spill] sm:$0xff] %v5409_v20 }
  0xf6   :  { %v4613_v23 = vpop.f32.mrf.mxu0 }
  0xf8   :  { %v5419_v25 = vpop.f32.mrf.mxu0  ;;  %4711 = vmatmul.mubr.msk.bf16.gmra.mxu0 %vm617_vm3, %v4975_v21  ;;  %v5514_v21 = vpop.f32.mrf.mxu1 }
  0xf9   :  { %8870 = vst [vmem:[#allocation15_spill] sm:$0xff] %v5419_v25  ;;  %4714 = vmatprep.mubr.msk.bf16.mxu0 %vm5025_vm2, %v5023_v0  ;;  %8889 = vst [vmem:[#allocation34_spill] sm:$0xff] %v5514_v21 }
  0xfa   :  { %v4616_v27 = vpop.f32.mrf.mxu0  ;;  %v4784_v24 = vpop.f32.mrf.mxu1 }
  0xfc   :  { %v5429_v30 = vpop.f32.mrf.mxu0  ;;  %v5522_v28 = vpop.f32.mrf.mxu1 }
  0xfd   :  { %8872 = vst [vmem:[#allocation17_spill] sm:$0xff] %v5429_v30  ;;  %8891 = vst [vmem:[#allocation36_spill] sm:$0xff] %v5522_v28 }
  0xfe   :  { %v4617_v33 = vpop.f32.mrf.mxu0 }
  0xff   :  { %v5009_v33 = vld [vmem:[%s8550_s0 + $0x248] sm:$0xff]  }
 0x100   :  { %v5439_v35 = vpop.f32.mrf.mxu0  ;;  %4715 = vmatmul.mubr.msk.bf16.gmra.mxu0 %vm617_vm3, %v4977_v31  ;;  %v4785_v31 = vpop.f32.mrf.mxu1  ;;  %4883 = vmatmul.mubr.msk.bf16.gmra.mxu1 %vm617_vm3, %v5009_v33 }
 0x101   :  { %8874 = vst [vmem:[#allocation19_spill] sm:$0xff] %v5439_v35  ;;  %4718 = vmatprep.mubr.msk.bf16.mxu0 %vm5025_vm2, %v5023_v0  ;;  %4886 = vmatprep.mubr.msk.bf16.mxu1 %vm5025_vm2, %v5023_v0 }
 0x102   :  { %v4620_v37 = vpop.f32.mrf.mxu0  ;;  %v5534_v38 = vpop.f32.mrf.mxu1 }
 0x103   :  { %v4987_v37 = vld [vmem:[%s8550_s0 + $0x120] sm:$0xff]   ;;  %8893 = vst [vmem:[#allocation38_spill] sm:$0xff] %v5534_v38  ;;  %v5019_v38 = vld [vmem:[%s8550_s0 + $0x298] sm:$0xff]  }
 0x104   :  { %v5449_v40 = vpop.f32.mrf.mxu0 }
 0x105   :  { %8876 = vst [vmem:[#allocation21_spill] sm:$0xff] %v5449_v40 }
 0x106   :  { %v4621_v43 = vpop.f32.mrf.mxu0 }
 0x108   :  { %v5459_v45 = vpop.f32.mrf.mxu0  ;;  %4719 = vmatmul.mubr.msk.bf16.gmra.mxu0 %vm617_vm3, %v4979_v41  ;;  %v4788_v41 = vpop.f32.mrf.mxu1  ;;  %4887 = vmatmul.mubr.msk.bf16.gmra.mxu1 %vm617_vm3, %v5010_v49 }
 0x109   :  { %8878 = vst [vmem:[#allocation23_spill] sm:$0xff] %v5459_v45  ;;  %4722 = vmatprep.mubr.msk.bf16.mxu0 %vm5025_vm2, %v5023_v0  ;;  %4890 = vmatprep.mubr.msk.bf16.mxu1 %vm5025_vm2, %v5023_v0 }
 0x10a   :  { %v4624_v47 = vpop.f32.mrf.mxu0  ;;  %v5542_v44 = vpop.f32.mrf.mxu1 }
 0x10b   :  { %8895 = vst [vmem:[#allocation40_spill] sm:$0xff] %v5542_v44 }
 0x10c   :  { %v5469_v51 = vpop.f32.mrf.mxu0  ;;  %v4789_v48 = vpop.f32.mrf.mxu1 }
 0x10d   :  { %8880 = vst [vmem:[#allocation25_spill] sm:$0xff] %v5469_v51 }
 0x10e   :  { %v4625_v55 = vpop.f32.mrf.mxu0  ;;  %v5554_v57 = vpop.f32.mrf.mxu1 }
 0x10f   :  { %v4989_v55 = vld [vmem:[%s8550_s0 + $0x128] sm:$0xff]   ;;  %8897 = vst [vmem:[#allocation42_spill] sm:$0xff] %v5554_v57  ;;  %v5018_v57 = vld [vmem:[%s8550_s0 + $0x290] sm:$0xff]  }
 0x110   :  { %v5479_v58 = vpop.f32.mrf.mxu0  ;;  %4723 = vmatmul.mubr.msk.bf16.gmra.mxu0 %vm617_vm3, %v4981_v52  ;;  %v4792_v63 = vpop.f32.mrf.mxu1 }
 0x111   :  { %8882 = vst [vmem:[#allocation27_spill] sm:$0xff] %v5479_v58  ;;  %4726 = vmatprep.mubr.msk.bf16.mxu0 %vm5025_vm2, %v5023_v0 }
 0x112   :  { %v4628_v61 = vpop.f32.mrf.mxu0 }
 0x114   :  { %v5489_v3 = vpop.f32.mrf.mxu0 }
 0x115   :  { %8884 = vst [vmem:[#allocation29_spill] sm:$0xff] %v5489_v3 }
 0x116   :  { %v4629_v7 = vpop.f32.mrf.mxu0 }
 0x118   :  { %v5499_v10 = vpop.f32.mrf.mxu0  ;;  %4727 = vmatmul.mubr.msk.bf16.gmra.mxu0 %vm617_vm3, %v4983_v4  ;;  %v5562_v4 = vpop.f32.mrf.mxu1 }
 0x119   :  { %8886 = vst [vmem:[#allocation31_spill] sm:$0xff] %v5499_v10  ;;  %4730 = vmatprep.mubr.msk.bf16.mxu0 %vm5025_vm2, %v5023_v0  ;;  %8899 = vst [vmem:[#allocation44_spill] sm:$0xff] %v5562_v4 }
 0x11a   :  { %v4632_v13 = vpop.f32.mrf.mxu0  ;;  %v4793_v9 = vpop.f32.mrf.mxu1 }
 0x11b   :  { %v5011_v13 = vld [vmem:[%s8550_s0 + $0x258] sm:$0xff]  }
 0x11c   :  { %v5509_v18 = vpop.f32.mrf.mxu0  ;;  %4891 = vmatmul.mubr.msk.bf16.gmra.mxu1 %vm617_vm3, %v5011_v13  ;;  %v5013_v13 = vld [vmem:[%s8550_s0 + $0x268] sm:$0xff]  }
 0x11d   :  { %8888 = vst [vmem:[#allocation33_spill] sm:$0xff] %v5509_v18  ;;  %4894 = vmatprep.mubr.msk.bf16.mxu1 %vm5025_vm2, %v5023_v0 }
 0x11e   :  { %v4633_v23 = vpop.f32.mrf.mxu0 }
 0x120   :  { %v5519_v27 = vpop.f32.mrf.mxu0  ;;  %4731 = vmatmul.mubr.msk.bf16.gmra.mxu0 %vm617_vm3, %v4985_v19  ;;  %v5574_v19 = vpop.f32.mrf.mxu1 }
 0x121   :  { %8890 = vst [vmem:[#allocation35_spill] sm:$0xff] %v5519_v27  ;;  %4734 = vmatprep.mubr.msk.bf16.mxu0 %vm5025_vm2, %v5023_v0  ;;  %8901 = vst [vmem:[#allocation46_spill] sm:$0xff] %v5574_v19  ;;  %v5017_v19 = vld [vmem:[%s8550_s0 + $0x288] sm:$0xff]  }
 0x122   :  { %v4636_v29 = vpop.f32.mrf.mxu0  ;;  %v4796_v24 = vpop.f32.mrf.mxu1 }
 0x124   :  { %v5529_v34 = vpop.f32.mrf.mxu0  ;;  %v5582_v31 = vpop.f32.mrf.mxu1 }
 0x125   :  { %8892 = vst [vmem:[#allocation37_spill] sm:$0xff] %v5529_v34  ;;  %8903 = vst [vmem:[#allocation48_spill] sm:$0xff] %v5582_v31  ;;  %v5016_v31 = vld [vmem:[%s8550_s0 + $0x280] sm:$0xff]  }
 0x126   :  { %v4637_v39 = vpop.f32.mrf.mxu0 }
 0x127   :  { %v5012_v39 = vld [vmem:[%s8550_s0 + $0x260] sm:$0xff]  }
 0x128   :  { %v5539_v43 = vpop.f32.mrf.mxu0  ;;  %4735 = vmatmul.mubr.msk.bf16.gmra.mxu0 %vm617_vm3, %v4987_v37  ;;  %v4797_v37 = vpop.f32.mrf.mxu1  ;;  %4895 = vmatmul.mubr.msk.bf16.gmra.mxu1 %vm617_vm3, %v5012_v39 }
 0x129   :  { %8894 = vst [vmem:[#allocation39_spill] sm:$0xff] %v5539_v43  ;;  %4738 = vmatprep.mubr.msk.bf16.mxu0 %vm5025_vm2, %v5023_v0  ;;  %4898 = vmatprep.mubr.msk.bf16.mxu1 %vm5025_vm2, %v5023_v0 }
 0x12a   :  { %v4640_v47 = vpop.f32.mrf.mxu0  ;;  %v5594_v48 = vpop.f32.mrf.mxu1 }
 0x12b   :  { %v4993_v47 = vld [vmem:[%s8550_s0 + $0x138] sm:$0xff]   ;;  %8905 = vst [vmem:[#allocation50_spill] sm:$0xff] %v5594_v48 }
 0x12c   :  { %v5549_v52 = vpop.f32.mrf.mxu0 }
 0x12d   :  { %8896 = vst [vmem:[#allocation41_spill] sm:$0xff] %v5549_v52 }
 0x12e   :  { %v4641_v61 = vpop.f32.mrf.mxu0 }
 0x130   :  { %v5559_v1 = vpop.f32.mrf.mxu0  ;;  %4739 = vmatmul.mubr.msk.bf16.gmra.mxu0 %vm617_vm3, %v4989_v55  ;;  %v4800_v55 = vpop.f32.mrf.mxu1  ;;  %4899 = vmatmul.mubr.msk.bf16.gmra.mxu1 %vm617_vm3, %v5013_v13  ;;  %v4997_v13 = vld [vmem:[%s8550_s0 + $0x148] sm:$0xff]  }
 0x131   :  { %8898 = vst [vmem:[#allocation43_spill] sm:$0xff] %v5559_v1  ;;  %4742 = vmatprep.mubr.msk.bf16.mxu0 %vm5025_vm2, %v5023_v0  ;;  %4902 = vmatprep.mubr.msk.bf16.mxu1 %vm5025_vm2, %v5023_v0 }
 0x132   :  { %v4644_v7 = vpop.f32.mrf.mxu0  ;;  %v5602_v63 = vpop.f32.mrf.mxu1 }
 0x133   :  { %8907 = vst [vmem:[#allocation52_spill] sm:$0xff] %v5602_v63 }
 0x134   :  { %v5569_v15 = vpop.f32.mrf.mxu0  ;;  %v4801_v9 = vpop.f32.mrf.mxu1 }
 0x135   :  { %8900 = vst [vmem:[#allocation45_spill] sm:$0xff] %v5569_v15 }
 0x136   :  { %v4645_v23 = vpop.f32.mrf.mxu0  ;;  %v5614_v24 = vpop.f32.mrf.mxu1 }
 0x137   :  { %v4995_v23 = vld [vmem:[%s8550_s0 + $0x140] sm:$0xff]   ;;  %8909 = vst [vmem:[#allocation54_spill] sm:$0xff] %v5614_v24 }
 0x138   :  { %v5579_v29 = vpop.f32.mrf.mxu0  ;;  %4743 = vmatmul.mubr.msk.bf16.gmra.mxu0 %vm617_vm3, %v4991_v16  ;;  %v4804_v37 = vpop.f32.mrf.mxu1 }
 0x139   :  { %8902 = vst [vmem:[#allocation47_spill] sm:$0xff] %v5579_v29  ;;  %4746 = vmatprep.mubr.msk.bf16.mxu0 %vm5025_vm2, %v5023_v0 }
 0x13a   :  { %v4648_v33 = vpop.f32.mrf.mxu0 }
 0x13c   :  { %v5589_v41 = vpop.f32.mrf.mxu0 }
 0x13d   :  { %8904 = vst [vmem:[#allocation49_spill] sm:$0xff] %v5589_v41 }
 0x13e   :  { %v4649_v49 = vpop.f32.mrf.mxu0 }
 0x140   :  { %v5599_v61 = vpop.f32.mrf.mxu0  ;;  %4747 = vmatmul.mubr.msk.bf16.gmra.mxu0 %vm617_vm3, %v4993_v47  ;;  %v5622_v47 = vpop.f32.mrf.mxu1 }
 0x141   :  { %8906 = vst [vmem:[#allocation51_spill] sm:$0xff] %v5599_v61  ;;  %4750 = vmatprep.mubr.msk.bf16.mxu0 %vm5025_vm2, %v5023_v0  ;;  %8911 = vst [vmem:[#allocation56_spill] sm:$0xff] %v5622_v47 }
 0x142   :  { %v4652_v7 = vpop.f32.mrf.mxu0  ;;  %v4805_v55 = vpop.f32.mrf.mxu1 }
 0x143   :  { %v5014_v7 = vld [vmem:[%s8550_s0 + $0x270] sm:$0xff]  }
 0x144   :  { %v5609_v16 = vpop.f32.mrf.mxu0  ;;  %4903 = vmatmul.mubr.msk.bf16.gmra.mxu1 %vm617_vm3, %v5014_v7  ;;  %v5015_v7 = vld [vmem:[%s8550_s0 + $0x278] sm:$0xff]  }
 0x145   :  { %8908 = vst [vmem:[#allocation53_spill] sm:$0xff] %v5609_v16  ;;  %4906 = vmatprep.mubr.msk.bf16.mxu1 %vm5025_vm2, %v5023_v0 }
 0x146   :  { %v4653_v33 = vpop.f32.mrf.mxu0 }
 0x147   :  { %v5634_v33 = vpop.f32.mrf.mxu1 }
 0x148   :  { %v5619_v39 = vpop.f32.mrf.mxu0  ;;  %4751 = vmatmul.mubr.msk.bf16.gmra.mxu0 %vm617_vm3, %v4995_v23  ;;  %8913 = vst [vmem:[#allocation58_spill] sm:$0xff] %v5634_v33 }
 0x149   :  { %8910 = vst [vmem:[#allocation55_spill] sm:$0xff] %v5619_v39  ;;  %4754 = vmatprep.mubr.msk.bf16.mxu0 %vm5025_vm2, %v5023_v0  ;;  %v4808_v37 = vpop.f32.mrf.mxu1 }
 0x14a   :  { %v4656_v49 = vpop.f32.mrf.mxu0 }
 0x14b   :  { %v5642_v55 = vpop.f32.mrf.mxu1 }
 0x14c   :  { %v5629_v9 = vpop.f32.mrf.mxu0  ;;  %8915 = vst [vmem:[#allocation60_spill] sm:$0xff] %v5642_v55  ;;  %4907 = vmatmul.mubr.msk.bf16.gmra.mxu1 %vm617_vm3, %v5015_v7 }
 0x14d   :  { %8912 = vst [vmem:[#allocation57_spill] sm:$0xff] %v5629_v9  ;;  %v4809_v24 = vpop.f32.mrf.mxu1  ;;  %4910 = vmatprep.mubr.msk.bf16.mxu1 %vm5025_vm2, %v5023_v0 }
 0x14e   :  { %v4657_v23 = vpop.f32.mrf.mxu0 }
 0x14f   :  { %v4999_v23 = vld [vmem:[%s8550_s0 + $0x150] sm:$0xff]   ;;  %v5654_v37 = vpop.f32.mrf.mxu1 }
 0x150   :  { %v5639_v49 = vpop.f32.mrf.mxu0  ;;  %4755 = vmatmul.mubr.msk.bf16.gmra.mxu0 %vm617_vm3, %v4997_v13  ;;  %8917 = vst [vmem:[#allocation62_spill] sm:$0xff] %v5654_v37 }
 0x151   :  { %8914 = vst [vmem:[#allocation59_spill] sm:$0xff] %v5639_v49  ;;  %4758 = vmatprep.mubr.msk.bf16.mxu0 %vm5025_vm2, %v5023_v0 }
 0x152   :  { %v4660_v47 = vpop.f32.mrf.mxu0 }
 0x153   :  { %v4812_v47 = vpop.f32.mrf.mxu1 }
 0x154   :  { %v5649_v33 = vpop.f32.mrf.mxu0  ;;  %4911 = vmatmul.mubr.msk.bf16.gmra.mxu1 %vm617_vm3, %v5016_v31 }
 0x155   :  { %8916 = vst [vmem:[#allocation61_spill] sm:$0xff] %v5649_v33  ;;  %v5662_v55 = vpop.f32.mrf.mxu1  ;;  %4914 = vmatprep.mubr.msk.bf16.mxu1 %vm5025_vm2, %v5023_v0 }
 0x156   :  { %v4661_v13 = vpop.f32.mrf.mxu0  ;;  %8919 = vst [vmem:[#allocation64_spill] sm:$0xff] %v5662_v55 }
 0x157   :  { %v4813_v48 = vpop.f32.mrf.mxu1 }
 0x158   :  { %v5659_v24 = vpop.f32.mrf.mxu0  ;;  %4759 = vmatmul.mubr.msk.bf16.gmra.mxu0 %vm617_vm3, %v4999_v23 }
 0x159   :  { %8918 = vst [vmem:[#allocation63_spill] sm:$0xff] %v5659_v24  ;;  %v5669_v7 = vpop.f32.mrf.mxu1 }
 0x15a   :  { %v4664_v63 = vpop.f32.mrf.mxu0  ;;  %8921 = vst [vmem:[#allocation66_spill] sm:$0xff] %v5669_v7 }
 0x15b   :  { %v4816_v47 = vpop.f32.mrf.mxu1 }
 0x15c   :  { %v5667_v37 = vpop.f32.mrf.mxu0  ;;  %4915 = vmatmul.mubr.msk.bf16.gmra.mxu1 %vm617_vm3, %v5017_v19 }
 0x15d   :  { %8920 = vst [vmem:[#allocation65_spill] sm:$0xff] %v5667_v37  ;;  %v5676_v55 = vpop.f32.mrf.mxu1  ;;  %4918 = vmatprep.mubr.msk.bf16.mxu1 %vm5025_vm2, %v5023_v0 }
 0x15e   :  { %v4665_v13 = vpop.f32.mrf.mxu0  ;;  %8923 = vst [vmem:[#allocation68_spill] sm:$0xff] %v5676_v55 }
 0x15f   :  { %v4817_v63 = vpop.f32.mrf.mxu1 }
 0x160   :  { %v5674_v23 = vpop.f32.mrf.mxu0 }
 0x161   :  { %8922 = vst [vmem:[#allocation67_spill] sm:$0xff] %v5674_v23  ;;  %v5683_v7 = vpop.f32.mrf.mxu1 }
 0x162   :  { %v4668_v48 = vpop.f32.mrf.mxu0  ;;  %8925 = vst [vmem:[#allocation70_spill] sm:$0xff] %v5683_v7 }
 0x163   :  { %v4820_v13 = vpop.f32.mrf.mxu1 }
 0x164   :  { %v5681_v4 = vpop.f32.mrf.mxu0  ;;  %4919 = vmatmul.mubr.msk.bf16.gmra.mxu1 %vm617_vm3, %v5018_v57 }
 0x165   :  { %8924 = vst [vmem:[#allocation69_spill] sm:$0xff] %v5681_v4  ;;  %v5690_v55 = vpop.f32.mrf.mxu1  ;;  %4922 = vmatprep.mubr.msk.bf16.mxu1 %vm5025_vm2, %v5023_v0 }
 0x166   :  { %v4669_v31 = vpop.f32.mrf.mxu0  ;;  %8927 = vst [vmem:[#allocation72_spill] sm:$0xff] %v5690_v55 }
 0x167   :  { %v4821_v63 = vpop.f32.mrf.mxu1 }
 0x168   :  { %v5688_v47 = vpop.f32.mrf.mxu0 }
 0x169   :  { %8926 = vst [vmem:[#allocation71_spill] sm:$0xff] %v5688_v47  ;;  %v5697_v7 = vpop.f32.mrf.mxu1 }
 0x16a   :  { %v4672_v48 = vpop.f32.mrf.mxu0  ;;  %8929 = vst [vmem:[#allocation74_spill] sm:$0xff] %v5697_v7  ;;  %v1768_v7 = vmul.f32 %v5329_v53, %v5329_v53 }
 0x16b   :  { %v4824_v31 = vpop.f32.mrf.mxu1 }
 0x16c   :  { %v5695_v44 = vpop.f32.mrf.mxu0  ;;  %4923 = vmatmul.mubr.msk.bf16.gmra.mxu1 %vm617_vm3, %v5019_v38  ;;  %v1592_v31 = vadd.f32 %v5329_v53, %v5321_v50  ;;  %v1770_v38 = vmul.f32 %v5345_v59, %v5345_v59 }
 0x16d   :  { %8928 = vst [vmem:[#allocation73_spill] sm:$0xff] %v5695_v44  ;;  %v5704_v55 = vpop.f32.mrf.mxu1  ;;  %4926 = vmatprep.mubr.msk.bf16.mxu1 %vm5025_vm2, %v5023_v0 }
 0x16e   :  { %v4673_v19 = vpop.f32.mrf.mxu0  ;;  %8931 = vst [vmem:[#allocation76_spill] sm:$0xff] %v5704_v55  ;;  %v1593_v12 = vadd.f32 %v1592_v31, %v5337_v56  ;;  %v1772_v31 = vmul.f32 %v5361_v2, %v5361_v2 }
 0x16f   :  { %v4825_v63 = vpop.f32.mrf.mxu1  ;;  %v1767_v19 = vmul.f32 %v5321_v50, %v5321_v50  ;;  %v1771_v50 = vmul.f32 %v5353_v62, %v5353_v62 }
 0x170   :  { %v5702_v13 = vpop.f32.mrf.mxu0  ;;  %v1594_v53 = vadd.f32 %v1593_v12, %v5345_v59 }
 0x171   :  { %8930 = vst [vmem:[#allocation75_spill] sm:$0xff] %v5702_v13  ;;  %v5713_v57 = vpop.f32.mrf.mxu1  ;;  %v1936_v21 = vadd.f32 %v1768_v7, %v1767_v19 }
 0x172   :  { %v4676_v48 = vpop.f32.mrf.mxu0  ;;  %8933 = vst [vmem:[#allocation78_spill] sm:$0xff] %v5713_v57  ;;  %v1595_v19 = vadd.f32 %v1594_v53, %v5353_v62 }
 0x173   :  { %v1769_v48 = vmul.f32 %v5337_v56, %v5337_v56  ;;  %v4828_v55 = vpop.f32.mrf.mxu1 }
 0x174   :  { %v5711_v28 = vpop.f32.mrf.mxu0  ;;  %v5020_v55 = vld [vmem:[%s8550_s0 + $0x2a0] ss:$0 sps:$4 sm:$0xff]  }
 0x175   :  { %8932 = vst [vmem:[#allocation77_spill] sm:$0xff] %v5711_v28  ;;  %v5729_v6 = vpop.f32.mrf.mxu1  ;;  %v1937_v60 = vadd.f32 %v1936_v21, %v1769_v48  ;;  %4927 = vmatmul.mubr.msk.bf16.gmra.mxu1 %vm617_vm3, %v5020_v55  ;;  %v1773_v48 = vmul.f32 %v5369_v5, %v5369_v5  ;;  %v1775_v55 = vmul.f32 %v5385_v11, %v5385_v11 }
 0x176   :  { %v4677_v63 = vpop.f32.mrf.mxu0 }
 0x177   :  { %v4829_v0 = vpop.f32.mrf.mxu1  ;;  %v1938_v7 = vadd.f32 %v1937_v60, %v1770_v38  ;;  %v1774_v38 = vmul.f32 %v5377_v8, %v5377_v8 }
 0x178   :  { %v5727_v57 = vpop.f32.mrf.mxu0 }
 0x179   :  { %8934 = vst [vmem:[#allocation79_spill] sm:$0xff] %v5727_v57  ;;  %v5742_v21 = vpop.f32.mrf.mxu1  ;;  %v1939_v12 = vadd.f32 %v1938_v7, %v1771_v50 }
 0x17a   :  { %v4680_v54 = vpop.f32.mrf.mxu0  ;;  %8936 = vst [vmem:[#allocation81_spill] sm:$0xff] %v5742_v21 }
 0x17b   :  { %v1596_v54 = vadd.f32 %v1595_v19, %v5361_v2  ;;  %v4832_v59 = vpop.f32.mrf.mxu1  ;;  %v1940_v60 = vadd.f32 %v1939_v12, %v1772_v31  ;;  %v1776_v31 = vmul.f32 %v5393_v14, %v5393_v14  ;;  %v8992_v2 = vld [vmem:[#allocation34_spill] sm:$0xff] }
 0x17c   :  { %v5740_v63 = vpop.f32.mrf.mxu0 }
 0x17d   :  { %8935 = vst [vmem:[#allocation80_spill] sm:$0xff] %v5740_v63  ;;  %v1597_v53 = vadd.f32 %v1596_v54, %v5369_v5  ;;  %v5753_v56 = vpop.f32.mrf.mxu1  ;;  %v1941_v21 = vadd.f32 %v1940_v60, %v1773_v48  ;;  %v1777_v60 = vmul.f32 %v5401_v17, %v5401_v17 }
 0x17e   :  { %v4681_v0 = vpop.f32.mrf.mxu0 }
 0x17f   :  { %v1598_v50 = vadd.f32 %v1597_v53, %v5377_v8  ;;  %v4833_v19 = vpop.f32.mrf.mxu1  ;;  %v1942_v0 = vadd.f32 %v1941_v21, %v1774_v38  ;;  %v1778_v38 = vmul.f32 %v5409_v20, %v5409_v20 }
 0x180   :  { %v5751_v62 = vpop.f32.mrf.mxu0 }
 0x181   :  { %8937 = vst [vmem:[#allocation82_spill] sm:$0xff] %v5751_v62  ;;  %v1599_v59 = vadd.f32 %v1598_v50, %v5385_v11  ;;  %v5763_v54 = vpop.f32.mrf.mxu1  ;;  %v1943_v5 = vadd.f32 %v1942_v0, %v1775_v55  ;;  %v1779_v0 = vmul.f32 %v5419_v25, %v5419_v25 }
 0x182   :  { %v4684_v7 = vpop.f32.mrf.mxu0 }
 0x183   :  { %v1600_v48 = vadd.f32 %v1599_v59, %v5393_v14  ;;  %v4836_v8 = vpop.f32.mrf.mxu1  ;;  %v1944_v7 = vadd.f32 %v1943_v5, %v1776_v31 }
 0x184   :  { %v5761_v12 = vpop.f32.mrf.mxu0  ;;  %v1780_v8 = vmul.f32 %v5429_v30, %v5429_v30 }
 0x185   :  { %8938 = vst [vmem:[#allocation83_spill] sm:$0xff] %v5761_v12  ;;  %v1601_v21 = vadd.f32 %v1600_v48, %v5401_v17  ;;  %v5773_v19 = vpop.f32.mrf.mxu1  ;;  %v1945_v11 = vadd.f32 %v1944_v7, %v1777_v60  ;;  %v1781_v7 = vmul.f32 %v5439_v35, %v5439_v35 }
 0x186   :  { %v4685_v53 = vpop.f32.mrf.mxu0 }
 0x187   :  { %v1602_v55 = vadd.f32 %v1601_v21, %v5409_v20  ;;  %v4837_v14 = vpop.f32.mrf.mxu1  ;;  %v1946_v53 = vadd.f32 %v1945_v11, %v1778_v38 }
 0x188   :  { %v5771_v50 = vpop.f32.mrf.mxu0  ;;  %v1782_v14 = vmul.f32 %v5449_v40, %v5449_v40 }
 0x189   :  { %8939 = vst [vmem:[#allocation84_spill] sm:$0xff] %v5771_v50  ;;  %v1603_v5 = vadd.f32 %v1602_v55, %v5419_v25  ;;  %v5783_v48 = vpop.f32.mrf.mxu1  ;;  %v1947_v17 = vadd.f32 %v1946_v53, %v1779_v0  ;;  %v1783_v53 = vmul.f32 %v5459_v45, %v5459_v45 }
 0x18a   :  { %v4688_v59 = vpop.f32.mrf.mxu0 }
 0x18b   :  { %v1604_v60 = vadd.f32 %v1603_v5, %v5429_v30  ;;  %v4840_v20 = vpop.f32.mrf.mxu1  ;;  %v1948_v59 = vadd.f32 %v1947_v17, %v1780_v8 }
 0x18c   :  { %v5781_v31 = vpop.f32.mrf.mxu0  ;;  %v1784_v20 = vmul.f32 %v5469_v51, %v5469_v51 }
 0x18d   :  { %8940 = vst [vmem:[#allocation85_spill] sm:$0xff] %v5781_v31  ;;  %v1605_v11 = vadd.f32 %v1604_v60, %v5439_v35  ;;  %v5793_v55 = vpop.f32.mrf.mxu1  ;;  %v1949_v25 = vadd.f32 %v1948_v59, %v1781_v7  ;;  %v1785_v59 = vmul.f32 %v5479_v58, %v5479_v58 }
 0x18e   :  { %v4689_v21 = vpop.f32.mrf.mxu0 }
 0x18f   :  { %v1606_v0 = vadd.f32 %v1605_v11, %v5449_v40  ;;  %v4841_v30 = vpop.f32.mrf.mxu1  ;;  %v1950_v21 = vadd.f32 %v1949_v25, %v1782_v14 }
 0x190   :  { %v5791_v38 = vpop.f32.mrf.mxu0  ;;  %v1786_v30 = vmul.f32 %v5489_v3, %v5489_v3 }
 0x191   :  { %8941 = vst [vmem:[#allocation86_spill] sm:$0xff] %v5791_v38  ;;  %v1607_v17 = vadd.f32 %v1606_v0, %v5459_v45  ;;  %v5803_v60 = vpop.f32.mrf.mxu1  ;;  %v1951_v35 = vadd.f32 %v1950_v21, %v1783_v53  ;;  %v1787_v21 = vmul.f32 %v5499_v10, %v5499_v10 }
 0x192   :  { %v4692_v5 = vpop.f32.mrf.mxu0 }
 0x193   :  { %v1608_v7 = vadd.f32 %v1607_v17, %v5469_v51  ;;  %v4844_v40 = vpop.f32.mrf.mxu1  ;;  %v1952_v5 = vadd.f32 %v1951_v35, %v1784_v20 }
 0x194   :  { %v5801_v8 = vpop.f32.mrf.mxu0  ;;  %v1788_v40 = vmul.f32 %v5509_v18, %v5509_v18 }
 0x195   :  { %8942 = vst [vmem:[#allocation87_spill] sm:$0xff] %v5801_v8  ;;  %v1609_v25 = vadd.f32 %v1608_v7, %v5479_v58  ;;  %v5813_v0 = vpop.f32.mrf.mxu1  ;;  %v1953_v45 = vadd.f32 %v1952_v5, %v1785_v59  ;;  %v1789_v5 = vmul.f32 %v5519_v27, %v5519_v27 }
 0x196   :  { %v4693_v11 = vpop.f32.mrf.mxu0 }
 0x197   :  { %v1610_v53 = vadd.f32 %v1609_v25, %v5489_v3  ;;  %v4845_v51 = vpop.f32.mrf.mxu1  ;;  %v1954_v11 = vadd.f32 %v1953_v45, %v1786_v30 }
 0x198   :  { %v5811_v14 = vpop.f32.mrf.mxu0  ;;  %v1790_v51 = vmul.f32 %v5529_v34, %v5529_v34 }
 0x199   :  { %8943 = vst [vmem:[#allocation88_spill] sm:$0xff] %v5811_v14  ;;  %v1611_v35 = vadd.f32 %v1610_v53, %v5499_v10  ;;  %v5823_v7 = vpop.f32.mrf.mxu1  ;;  %v1955_v58 = vadd.f32 %v1954_v11, %v1787_v21  ;;  %v1791_v11 = vmul.f32 %v5539_v43, %v5539_v43 }
 0x19a   :  { %v4696_v17 = vpop.f32.mrf.mxu0 }
 0x19b   :  { %v1612_v59 = vadd.f32 %v1611_v35, %v5509_v18  ;;  %v4848_v3 = vpop.f32.mrf.mxu1  ;;  %v1956_v17 = vadd.f32 %v1955_v58, %v1788_v40 }
 0x19c   :  { %v5821_v20 = vpop.f32.mrf.mxu0  ;;  %v1792_v3 = vmul.f32 %v5549_v52, %v5549_v52 }
 0x19d   :  { %8944 = vst [vmem:[#allocation89_spill] sm:$0xff] %v5821_v20  ;;  %v1613_v45 = vadd.f32 %v1612_v59, %v5519_v27  ;;  %v5833_v53 = vpop.f32.mrf.mxu1  ;;  %v1957_v10 = vadd.f32 %v1956_v17, %v1789_v5  ;;  %v1793_v17 = vmul.f32 %v5559_v1, %v5559_v1 }
 0x19e   :  { %v4697_v25 = vpop.f32.mrf.mxu0 }
 0x19f   :  { %v1614_v21 = vadd.f32 %v1613_v45, %v5529_v34  ;;  %v4849_v18 = vpop.f32.mrf.mxu1  ;;  %v1958_v25 = vadd.f32 %v1957_v10, %v1790_v51 }
 0x1a0   :  { %v5831_v30 = vpop.f32.mrf.mxu0  ;;  %v1794_v18 = vmul.f32 %v5569_v15, %v5569_v15 }
 0x1a1   :  { %8945 = vst [vmem:[#allocation90_spill] sm:$0xff] %v5831_v30  ;;  %v1615_v58 = vadd.f32 %v1614_v21, %v5539_v43  ;;  %v5843_v59 = vpop.f32.mrf.mxu1  ;;  %v1959_v27 = vadd.f32 %v1958_v25, %v1791_v11  ;;  %v1795_v25 = vmul.f32 %v5579_v29, %v5579_v29 }
 0x1a2   :  { %v4700_v35 = vpop.f32.mrf.mxu0 }
 0x1a3   :  { %v1616_v5 = vadd.f32 %v1615_v58, %v5549_v52  ;;  %v4852_v34 = vpop.f32.mrf.mxu1  ;;  %v1960_v35 = vadd.f32 %v1959_v27, %v1792_v3 }
 0x1a4   :  { %v5841_v40 = vpop.f32.mrf.mxu0  ;;  %v1796_v34 = vmul.f32 %v5589_v41, %v5589_v41 }
 0x1a5   :  { %8946 = vst [vmem:[#allocation91_spill] sm:$0xff] %v5841_v40  ;;  %v1617_v10 = vadd.f32 %v1616_v5, %v5559_v1  ;;  %v5853_v21 = vpop.f32.mrf.mxu1  ;;  %v1961_v43 = vadd.f32 %v1960_v35, %v1793_v17  ;;  %v1797_v35 = vmul.f32 %v5599_v61, %v5599_v61 }
 0x1a6   :  { %v4701_v45 = vpop.f32.mrf.mxu0 }
 0x1a7   :  { %v1618_v11 = vadd.f32 %v1617_v10, %v5569_v15  ;;  %v4853_v52 = vpop.f32.mrf.mxu1  ;;  %v1962_v45 = vadd.f32 %v1961_v43, %v1794_v18 }
 0x1a8   :  { %v5851_v51 = vpop.f32.mrf.mxu0  ;;  %v1798_v52 = vmul.f32 %v5609_v16, %v5609_v16 }
 0x1a9   :  { %8947 = vst [vmem:[#allocation92_spill] sm:$0xff] %v5851_v51  ;;  %v1619_v27 = vadd.f32 %v1618_v11, %v5579_v29  ;;  %v5863_v5 = vpop.f32.mrf.mxu1  ;;  %v1963_v1 = vadd.f32 %v1962_v45, %v1795_v25  ;;  %v1799_v45 = vmul.f32 %v5619_v39, %v5619_v39 }
 0x1aa   :  { %v4704_v58 = vpop.f32.mrf.mxu0 }
 0x1ab   :  { %v1620_v17 = vadd.f32 %v1619_v27, %v5589_v41  ;;  %v4856_v15 = vpop.f32.mrf.mxu1  ;;  %v1964_v58 = vadd.f32 %v1963_v1, %v1796_v34 }
 0x1ac   :  { %v5861_v3 = vpop.f32.mrf.mxu0  ;;  %v1800_v15 = vmul.f32 %v5629_v9, %v5629_v9 }
 0x1ad   :  { %8948 = vst [vmem:[#allocation93_spill] sm:$0xff] %v5861_v3  ;;  %v1621_v43 = vadd.f32 %v1620_v17, %v5599_v61  ;;  %v5873_v11 = vpop.f32.mrf.mxu1  ;;  %v1965_v29 = vadd.f32 %v1964_v58, %v1797_v35  ;;  %v1801_v58 = vmul.f32 %v5639_v49, %v5639_v49 }
 0x1ae   :  { %v4705_v10 = vpop.f32.mrf.mxu0 }
 0x1af   :  { %v1622_v25 = vadd.f32 %v1621_v43, %v5609_v16  ;;  %v4857_v41 = vpop.f32.mrf.mxu1  ;;  %v1966_v10 = vadd.f32 %v1965_v29, %v1798_v52 }
 0x1b0   :  { %v5871_v18 = vpop.f32.mrf.mxu0  ;;  %v1802_v41 = vmul.f32 %v5649_v33, %v5649_v33 }
 0x1b1   :  { %8949 = vst [vmem:[#allocation94_spill] sm:$0xff] %v5871_v18  ;;  %v1623_v1 = vadd.f32 %v1622_v25, %v5619_v39  ;;  %v5883_v17 = vpop.f32.mrf.mxu1  ;;  %v1967_v61 = vadd.f32 %v1966_v10, %v1799_v45  ;;  %v1803_v10 = vmul.f32 %v5659_v24, %v5659_v24 }
 0x1b2   :  { %v4708_v27 = vpop.f32.mrf.mxu0 }
 0x1b3   :  { %v1624_v35 = vadd.f32 %v1623_v1, %v5629_v9  ;;  %v4860_v16 = vpop.f32.mrf.mxu1  ;;  %v1968_v27 = vadd.f32 %v1967_v61, %v1800_v15 }
 0x1b4   :  { %v5881_v34 = vpop.f32.mrf.mxu0  ;;  %v1804_v16 = vmul.f32 %v5667_v37, %v5667_v37 }
 0x1b5   :  { %8950 = vst [vmem:[#allocation95_spill] sm:$0xff] %v5881_v34  ;;  %v1625_v29 = vadd.f32 %v1624_v35, %v5639_v49  ;;  %v5893_v25 = vpop.f32.mrf.mxu1  ;;  %v1969_v39 = vadd.f32 %v1968_v27, %v1801_v58  ;;  %v1805_v27 = vmul.f32 %v5674_v23, %v5674_v23 }
 0x1b6   :  { %v4709_v43 = vpop.f32.mrf.mxu0 }
 0x1b7   :  { %v1626_v45 = vadd.f32 %v1625_v29, %v5649_v33  ;;  %v4861_v9 = vpop.f32.mrf.mxu1  ;;  %v1970_v43 = vadd.f32 %v1969_v39, %v1802_v41 }
 0x1b8   :  { %v5891_v52 = vpop.f32.mrf.mxu0  ;;  %v1806_v9 = vmul.f32 %v5681_v4, %v5681_v4 }
 0x1b9   :  { %8951 = vst [vmem:[#allocation96_spill] sm:$0xff] %v5891_v52  ;;  %v1627_v61 = vadd.f32 %v1626_v45, %v5659_v24  ;;  %v5903_v35 = vpop.f32.mrf.mxu1  ;;  %v1971_v49 = vadd.f32 %v1970_v43, %v1803_v10  ;;  %v1807_v43 = vmul.f32 %v5688_v47, %v5688_v47 }
 0x1ba   :  { %v4712_v1 = vpop.f32.mrf.mxu0 }
 0x1bb   :  { %v1628_v58 = vadd.f32 %v1627_v61, %v5667_v37  ;;  %v4864_v33 = vpop.f32.mrf.mxu1  ;;  %v1972_v1 = vadd.f32 %v1971_v49, %v1804_v16  ;;  %v1808_v49 = vmul.f32 %v5695_v44, %v5695_v44 }
 0x1bc   :  { %v5901_v15 = vpop.f32.mrf.mxu0 }
 0x1bd   :  { %8952 = vst [vmem:[#allocation97_spill] sm:$0xff] %v5901_v15  ;;  %v1629_v39 = vadd.f32 %v1628_v58, %v5674_v23  ;;  %v5913_v45 = vpop.f32.mrf.mxu1  ;;  %v1973_v24 = vadd.f32 %v1972_v1, %v1805_v27  ;;  %v1809_v1 = vmul.f32 %v5702_v13, %v5702_v13 }
 0x1be   :  { %v4713_v29 = vpop.f32.mrf.mxu0 }
 0x1bf   :  { %v1630_v10 = vadd.f32 %v1629_v39, %v5681_v4  ;;  %v4865_v37 = vpop.f32.mrf.mxu1  ;;  %v1974_v29 = vadd.f32 %v1973_v24, %v1806_v9  ;;  %v1810_v24 = vmul.f32 %v5711_v28, %v5711_v28 }
 0x1c0   :  { %v5911_v41 = vpop.f32.mrf.mxu0 }
 0x1c1   :  { %8953 = vst [vmem:[#allocation98_spill] sm:$0xff] %v5911_v41  ;;  %v1631_v33 = vadd.f32 %v1630_v10, %v5688_v47  ;;  %v5923_v58 = vpop.f32.mrf.mxu1  ;;  %v1975_v23 = vadd.f32 %v1974_v29, %v1807_v43  ;;  %v1811_v29 = vmul.f32 %v5727_v57, %v5727_v57 }
 0x1c2   :  { %v4716_v61 = vpop.f32.mrf.mxu0 }
 0x1c3   :  { %v1632_v27 = vadd.f32 %v1631_v33, %v5695_v44  ;;  %v4868_v4 = vpop.f32.mrf.mxu1  ;;  %v1976_v61 = vadd.f32 %v1975_v23, %v1808_v49  ;;  %v1812_v23 = vmul.f32 %v5740_v63, %v5740_v63 }
 0x1c4   :  { %v5921_v16 = vpop.f32.mrf.mxu0 }
 0x1c5   :  { %8954 = vst [vmem:[#allocation99_spill] sm:$0xff] %v5921_v16  ;;  %v1633_v37 = vadd.f32 %v1632_v27, %v5702_v13  ;;  %v5933_v10 = vpop.f32.mrf.mxu1  ;;  %v1977_v47 = vadd.f32 %v1976_v61, %v1809_v1  ;;  %v1813_v61 = vmul.f32 %v5751_v62, %v5751_v62 }
 0x1c6   :  { %v4717_v39 = vpop.f32.mrf.mxu0 }
 0x1c7   :  { %v1634_v43 = vadd.f32 %v1633_v37, %v5711_v28  ;;  %v4869_v44 = vpop.f32.mrf.mxu1  ;;  %v1978_v39 = vadd.f32 %v1977_v47, %v1810_v24  ;;  %v1814_v47 = vmul.f32 %v5761_v12, %v5761_v12 }
 0x1c8   :  { %v5931_v9 = vpop.f32.mrf.mxu0 }
 0x1c9   :  { %8955 = vst [vmem:[#allocation100_spill] sm:$0xff] %v5931_v9  ;;  %v1635_v4 = vadd.f32 %v1634_v43, %v5727_v57  ;;  %v5943_v27 = vpop.f32.mrf.mxu1  ;;  %v1979_v13 = vadd.f32 %v1978_v39, %v1811_v29  ;;  %v1815_v39 = vmul.f32 %v5771_v50, %v5771_v50 }
 0x1ca   :  { %v4720_v33 = vpop.f32.mrf.mxu0 }
 0x1cb   :  { %v1636_v1 = vadd.f32 %v1635_v4, %v5740_v63  ;;  %v4872_v28 = vpop.f32.mrf.mxu1  ;;  %v1980_v33 = vadd.f32 %v1979_v13, %v1812_v23  ;;  %v1816_v13 = vmul.f32 %v5781_v31, %v5781_v31 }
 0x1cc   :  { %v5941_v49 = vpop.f32.mrf.mxu0 }
 0x1cd   :  { %8956 = vst [vmem:[#allocation101_spill] sm:$0xff] %v5941_v49  ;;  %v1637_v44 = vadd.f32 %v1636_v1, %v5751_v62  ;;  %v5953_v43 = vpop.f32.mrf.mxu1  ;;  %v1981_v57 = vadd.f32 %v1980_v33, %v1813_v61  ;;  %v1817_v33 = vmul.f32 %v5791_v38, %v5791_v38 }
 0x1ce   :  { %v4721_v37 = vpop.f32.mrf.mxu0 }
 0x1cf   :  { %v1638_v29 = vadd.f32 %v1637_v44, %v5761_v12  ;;  %v4873_v63 = vpop.f32.mrf.mxu1  ;;  %v1982_v37 = vadd.f32 %v1981_v57, %v1814_v47 }
 0x1d0   :  { %v5951_v24 = vpop.f32.mrf.mxu0  ;;  %v1818_v63 = vmul.f32 %v5801_v8, %v5801_v8 }
 0x1d1   :  { %8957 = vst [vmem:[#allocation102_spill] sm:$0xff] %v5951_v24  ;;  %v1639_v28 = vadd.f32 %v1638_v29, %v5771_v50  ;;  %v5963_v1 = vpop.f32.mrf.mxu1  ;;  %v1983_v62 = vadd.f32 %v1982_v37, %v1815_v39  ;;  %v1819_v37 = vmul.f32 %v5811_v14, %v5811_v14 }
 0x1d2   :  { %v4724_v4 = vpop.f32.mrf.mxu0 }
 0x1d3   :  { %v1640_v61 = vadd.f32 %v1639_v28, %v5781_v31  ;;  %v4876_v12 = vpop.f32.mrf.mxu1  ;;  %v1984_v4 = vadd.f32 %v1983_v62, %v1816_v13 }
 0x1d4   :  { %v5961_v23 = vpop.f32.mrf.mxu0  ;;  %v1820_v12 = vmul.f32 %v5821_v20, %v5821_v20 }
 0x1d5   :  { %8958 = vst [vmem:[#allocation103_spill] sm:$0xff] %v5961_v23  ;;  %v1641_v57 = vadd.f32 %v1640_v61, %v5791_v38  ;;  %v5973_v29 = vpop.f32.mrf.mxu1  ;;  %v1985_v50 = vadd.f32 %v1984_v4, %v1817_v33  ;;  %v1821_v4 = vmul.f32 %v5831_v30, %v5831_v30 }
 0x1d6   :  { %v4725_v44 = vpop.f32.mrf.mxu0 }
 0x1d7   :  { %v1642_v39 = vadd.f32 %v1641_v57, %v5801_v8  ;;  %v4877_v31 = vpop.f32.mrf.mxu1  ;;  %v1986_v44 = vadd.f32 %v1985_v50, %v1818_v63 }
 0x1d8   :  { %v5971_v47 = vpop.f32.mrf.mxu0  ;;  %v1822_v31 = vmul.f32 %v5841_v40, %v5841_v40 }
 0x1d9   :  { %8959 = vst [vmem:[#allocation104_spill] sm:$0xff] %v5971_v47  ;;  %v1643_v62 = vadd.f32 %v1642_v39, %v5811_v14  ;;  %v5983_v61 = vpop.f32.mrf.mxu1  ;;  %v1987_v38 = vadd.f32 %v1986_v44, %v1819_v37  ;;  %v1823_v44 = vmul.f32 %v5851_v51, %v5851_v51 }
 0x1da   :  { %v4728_v28 = vpop.f32.mrf.mxu0 }
 0x1db   :  { %v1644_v33 = vadd.f32 %v1643_v62, %v5821_v20  ;;  %v4880_v8 = vpop.f32.mrf.mxu1  ;;  %v1988_v28 = vadd.f32 %v1987_v38, %v1820_v12 }
 0x1dc   :  { %v5981_v13 = vpop.f32.mrf.mxu0  ;;  %v1824_v8 = vmul.f32 %v5861_v3, %v5861_v3 }
 0x1dd   :  { %8960 = vst [vmem:[#allocation105_spill] sm:$0xff] %v5981_v13  ;;  %v1645_v50 = vadd.f32 %v1644_v33, %v5831_v30  ;;  %v5993_v39 = vpop.f32.mrf.mxu1  ;;  %v1989_v14 = vadd.f32 %v1988_v28, %v1821_v4  ;;  %v1825_v28 = vmul.f32 %v5871_v18, %v5871_v18 }
 0x1de   :  { %v4729_v57 = vpop.f32.mrf.mxu0 }
 0x1df   :  { %v1646_v37 = vadd.f32 %v1645_v50, %v5841_v40  ;;  %v4881_v20 = vpop.f32.mrf.mxu1  ;;  %v1990_v57 = vadd.f32 %v1989_v14, %v1822_v31 }
 0x1e0   :  { %v5991_v63 = vpop.f32.mrf.mxu0  ;;  %v1826_v20 = vmul.f32 %v5881_v34, %v5881_v34 }
 0x1e1   :  { %8961 = vst [vmem:[#allocation106_spill] sm:$0xff] %v5991_v63  ;;  %v1647_v38 = vadd.f32 %v1646_v37, %v5851_v51  ;;  %v6003_v33 = vpop.f32.mrf.mxu1  ;;  %v1991_v30 = vadd.f32 %v1990_v57, %v1823_v44  ;;  %v1827_v57 = vmul.f32 %v5891_v52, %v5891_v52 }
 0x1e2   :  { %v4732_v62 = vpop.f32.mrf.mxu0 }
 0x1e3   :  { %v1648_v4 = vadd.f32 %v1647_v38, %v5861_v3  ;;  %v4884_v40 = vpop.f32.mrf.mxu1  ;;  %v1992_v62 = vadd.f32 %v1991_v30, %v1824_v8 }
 0x1e4   :  { %v6001_v12 = vpop.f32.mrf.mxu0  ;;  %v1828_v40 = vmul.f32 %v5901_v15, %v5901_v15 }
 0x1e5   :  { %8962 = vst [vmem:[#allocation107_spill] sm:$0xff] %v6001_v12  ;;  %v1649_v14 = vadd.f32 %v1648_v4, %v5871_v18  ;;  %v6013_v37 = vpop.f32.mrf.mxu1  ;;  %v1993_v51 = vadd.f32 %v1992_v62, %v1825_v28  ;;  %v1829_v62 = vmul.f32 %v5911_v41, %v5911_v41 }
 0x1e6   :  { %v4733_v50 = vpop.f32.mrf.mxu0 }
 0x1e7   :  { %v1650_v44 = vadd.f32 %v1649_v14, %v5881_v34  ;;  %v4885_v3 = vpop.f32.mrf.mxu1  ;;  %v1994_v50 = vadd.f32 %v1993_v51, %v1826_v20 }
 0x1e8   :  { %v6011_v31 = vpop.f32.mrf.mxu0  ;;  %v1830_v3 = vmul.f32 %v5921_v16, %v5921_v16 }
 0x1e9   :  { %8963 = vst [vmem:[#allocation108_spill] sm:$0xff] %v6011_v31  ;;  %v1651_v30 = vadd.f32 %v1650_v44, %v5891_v52  ;;  %v6023_v4 = vpop.f32.mrf.mxu1  ;;  %v1995_v18 = vadd.f32 %v1994_v50, %v1827_v57  ;;  %v1831_v50 = vmul.f32 %v5931_v9, %v5931_v9 }
 0x1ea   :  { %v4736_v38 = vpop.f32.mrf.mxu0 }
 0x1eb   :  { %v1652_v28 = vadd.f32 %v1651_v30, %v5901_v15  ;;  %v4888_v34 = vpop.f32.mrf.mxu1  ;;  %v1996_v38 = vadd.f32 %v1995_v18, %v1828_v40 }
 0x1ec   :  { %v6021_v8 = vpop.f32.mrf.mxu0  ;;  %v1832_v34 = vmul.f32 %v5941_v49, %v5941_v49 }
 0x1ed   :  { %8964 = vst [vmem:[#allocation109_spill] sm:$0xff] %v6021_v8  ;;  %v1653_v51 = vadd.f32 %v1652_v28, %v5911_v41  ;;  %v6033_v44 = vpop.f32.mrf.mxu1  ;;  %v1997_v52 = vadd.f32 %v1996_v38, %v1829_v62  ;;  %v1833_v38 = vmul.f32 %v5951_v24, %v5951_v24 }
 0x1ee   :  { %v4737_v14 = vpop.f32.mrf.mxu0 }
 0x1ef   :  { %v1654_v57 = vadd.f32 %v1653_v51, %v5921_v16  ;;  %v4889_v15 = vpop.f32.mrf.mxu1  ;;  %v1998_v14 = vadd.f32 %v1997_v52, %v1830_v3 }
 0x1f0   :  { %v6031_v20 = vpop.f32.mrf.mxu0  ;;  %v1834_v15 = vmul.f32 %v5961_v23, %v5961_v23 }
 0x1f1   :  { %8965 = vst [vmem:[#allocation110_spill] sm:$0xff] %v6031_v20  ;;  %v1655_v18 = vadd.f32 %v1654_v57, %v5931_v9  ;;  %v6043_v28 = vpop.f32.mrf.mxu1  ;;  %v1999_v41 = vadd.f32 %v1998_v14, %v1831_v50  ;;  %v1835_v14 = vmul.f32 %v5971_v47, %v5971_v47 }
 0x1f2   :  { %v4740_v30 = vpop.f32.mrf.mxu0 }
 0x1f3   :  { %v1656_v62 = vadd.f32 %v1655_v18, %v5941_v49  ;;  %v4892_v16 = vpop.f32.mrf.mxu1  ;;  %v2000_v30 = vadd.f32 %v1999_v41, %v1832_v34 }
 0x1f4   :  { %v6041_v40 = vpop.f32.mrf.mxu0  ;;  %v1836_v16 = vmul.f32 %v5981_v13, %v5981_v13 }
 0x1f5   :  { %8966 = vst [vmem:[#allocation111_spill] sm:$0xff] %v6041_v40  ;;  %v1657_v52 = vadd.f32 %v1656_v62, %v5951_v24  ;;  %v6053_v57 = vpop.f32.mrf.mxu1  ;;  %v2001_v9 = vadd.f32 %v2000_v30, %v1833_v38  ;;  %v1837_v30 = vmul.f32 %v5991_v63, %v5991_v63 }
 0x1f6   :  { %v4741_v51 = vpop.f32.mrf.mxu0 }
 0x1f7   :  { %v1658_v50 = vadd.f32 %v1657_v52, %v5961_v23  ;;  %v4893_v49 = vpop.f32.mrf.mxu1  ;;  %v2002_v51 = vadd.f32 %v2001_v9, %v1834_v15 }
 0x1f8   :  { %v6051_v3 = vpop.f32.mrf.mxu0  ;;  %v1838_v49 = vmul.f32 %v6001_v12, %v6001_v12 }
 0x1f9   :  { %8967 = vst [vmem:[#allocation112_spill] sm:$0xff] %v6051_v3  ;;  %v1659_v41 = vadd.f32 %v1658_v50, %v5971_v47  ;;  %v6063_v62 = vpop.f32.mrf.mxu1  ;;  %v2003_v24 = vadd.f32 %v2002_v51, %v1835_v14  ;;  %v1839_v51 = vmul.f32 %v6011_v31, %v6011_v31 }
 0x1fa   :  { %v4744_v18 = vpop.f32.mrf.mxu0 }
 0x1fb   :  { %v1660_v38 = vadd.f32 %v1659_v41, %v5981_v13  ;;  %v4896_v23 = vpop.f32.mrf.mxu1  ;;  %v2004_v18 = vadd.f32 %v2003_v24, %v1836_v16 }
 0x1fc   :  { %v6061_v34 = vpop.f32.mrf.mxu0  ;;  %v1840_v23 = vmul.f32 %v6021_v8, %v6021_v8 }
 0x1fd   :  { %8968 = vst [vmem:[#allocation113_spill] sm:$0xff] %v6061_v34  ;;  %v1661_v9 = vadd.f32 %v1660_v38, %v5991_v63  ;;  %v6073_v50 = vpop.f32.mrf.mxu1  ;;  %v2005_v47 = vadd.f32 %v2004_v18, %v1837_v30  ;;  %v1841_v18 = vmul.f32 %v6031_v20, %v6031_v20 }
 0x1fe   :  { %v4745_v52 = vpop.f32.mrf.mxu0 }
 0x1ff   :  { %v1662_v14 = vadd.f32 %v1661_v9, %v6001_v12  ;;  %v4897_v13 = vpop.f32.mrf.mxu1  ;;  %v2006_v52 = vadd.f32 %v2005_v47, %v1838_v49 }
 0x200   :  { %v6071_v15 = vpop.f32.mrf.mxu0  ;;  %v1842_v13 = vmul.f32 %v6041_v40, %v6041_v40 }
 0x201   :  { %8969 = vst [vmem:[#allocation114_spill] sm:$0xff] %v6071_v15  ;;  %v1663_v24 = vadd.f32 %v1662_v14, %v6011_v31  ;;  %v6083_v38 = vpop.f32.mrf.mxu1  ;;  %v2007_v63 = vadd.f32 %v2006_v52, %v1839_v51  ;;  %v1843_v52 = vmul.f32 %v6051_v3, %v6051_v3 }
 0x202   :  { %v4748_v41 = vpop.f32.mrf.mxu0 }
 0x203   :  { %v1664_v30 = vadd.f32 %v1663_v24, %v6021_v8  ;;  %v4900_v12 = vpop.f32.mrf.mxu1  ;;  %v2008_v41 = vadd.f32 %v2007_v63, %v1840_v23 }
 0x204   :  { %v6081_v16 = vpop.f32.mrf.mxu0  ;;  %v1844_v12 = vmul.f32 %v6061_v34, %v6061_v34 }
 0x205   :  { %8970 = vst [vmem:[#allocation115_spill] sm:$0xff] %v6081_v16  ;;  %v1665_v47 = vadd.f32 %v1664_v30, %v6031_v20  ;;  %v6093_v14 = vpop.f32.mrf.mxu1  ;;  %v2009_v31 = vadd.f32 %v2008_v41, %v1841_v18  ;;  %v1845_v41 = vmul.f32 %v6071_v15, %v6071_v15 }
 0x206   :  { %v4749_v9 = vpop.f32.mrf.mxu0  ;;  %8972 = vst [vmem:[#allocation117_spill] sm:$0xff] %v6093_v14 }
 0x207   :  { %v1666_v51 = vadd.f32 %v1665_v47, %v6041_v40  ;;  %v4901_v8 = vpop.f32.mrf.mxu1  ;;  %v2010_v9 = vadd.f32 %v2009_v31, %v1842_v13 }
 0x208   :  { %v6091_v49 = vpop.f32.mrf.mxu0  ;;  %v1846_v8 = vmul.f32 %v6081_v16, %v6081_v16 }
 0x209   :  { %8971 = vst [vmem:[#allocation116_spill] sm:$0xff] %v6091_v49  ;;  %v1667_v63 = vadd.f32 %v1666_v51, %v6051_v3  ;;  %v6103_v30 = vpop.f32.mrf.mxu1  ;;  %v2011_v20 = vadd.f32 %v2010_v9, %v1843_v52  ;;  %v1847_v9 = vmul.f32 %v6091_v49, %v6091_v49 }
 0x20a   :  { %v4752_v24 = vpop.f32.mrf.mxu0  ;;  %8974 = vst [vmem:[#allocation119_spill] sm:$0xff] %v6103_v30 }
 0x20b   :  { %v1668_v18 = vadd.f32 %v1667_v63, %v6061_v34  ;;  %v4904_v40 = vpop.f32.mrf.mxu1  ;;  %v2012_v24 = vadd.f32 %v2011_v20, %v1844_v12 }
 0x20c   :  { %v6101_v23 = vpop.f32.mrf.mxu0 }
 0x20d   :  { %8973 = vst [vmem:[#allocation118_spill] sm:$0xff] %v6101_v23  ;;  %v1669_v31 = vadd.f32 %v1668_v18, %v6071_v15  ;;  %v6113_v51 = vpop.f32.mrf.mxu1  ;;  %v2013_v3 = vadd.f32 %v2012_v24, %v1845_v41  ;;  %v1848_v40 = vmul.f32 %v6101_v23, %v6101_v23 }
 0x20e   :  { %v4753_v47 = vpop.f32.mrf.mxu0  ;;  %8976 = vst [vmem:[#allocation121_spill] sm:$0xff] %v6113_v51 }
 0x20f   :  { %v1670_v52 = vadd.f32 %v1669_v31, %v6081_v16  ;;  %v4905_v34 = vpop.f32.mrf.mxu1  ;;  %v2014_v47 = vadd.f32 %v2013_v3, %v1846_v8 }
 0x210   :  { %v6111_v13 = vpop.f32.mrf.mxu0 }
 0x211   :  { %8975 = vst [vmem:[#allocation120_spill] sm:$0xff] %v6111_v13  ;;  %v1671_v20 = vadd.f32 %v1670_v52, %v6091_v49  ;;  %v6123_v18 = vpop.f32.mrf.mxu1  ;;  %v2015_v15 = vadd.f32 %v2014_v47, %v1847_v9  ;;  %v1849_v24 = vmul.f32 %v6111_v13, %v6111_v13 }
 0x212   :  { %v4756_v63 = vpop.f32.mrf.mxu0  ;;  %8978 = vst [vmem:[#allocation123_spill] sm:$0xff] %v6123_v18 }
 0x213   :  { %v1672_v41 = vadd.f32 %v1671_v20, %v6101_v23  ;;  %v4908_v16 = vpop.f32.mrf.mxu1  ;;  %v2016_v63 = vadd.f32 %v2015_v15, %v1848_v40 }
 0x214   :  { %v6121_v12 = vpop.f32.mrf.mxu0 }
 0x215   :  { %8977 = vst [vmem:[#allocation122_spill] sm:$0xff] %v6121_v12  ;;  %v1673_v3 = vadd.f32 %v1672_v41, %v6111_v13  ;;  %v1850_v34 = vmul.f32 %v6121_v12, %v6121_v12  ;;  %v6133_v52 = vpop.f32.mrf.mxu1  ;;  %v2017_v49 = vadd.f32 %v2016_v63, %v1849_v24 }
 0x216   :  { %v4757_v31 = vpop.f32.mrf.mxu0  ;;  %8980 = vst [vmem:[#allocation125_spill] sm:$0xff] %v6133_v52 }
 0x217   :  { %v1674_v9 = vadd.f32 %v1673_v3, %v6121_v12  ;;  %v4909_v23 = vpop.f32.mrf.mxu1  ;;  %v2018_v31 = vadd.f32 %v2017_v49, %v1850_v34  ;;  %v1853_v12 = vmul.f32 %v5414_v22, %v5414_v22 }
 0x218   :  { %v6131_v8 = vpop.f32.mrf.mxu0 }
 0x219   :  { %8979 = vst [vmem:[#allocation124_spill] sm:$0xff] %v6131_v8  ;;  %v1851_v47 = vmul.f32 %v6131_v8, %v6131_v8  ;;  %v1675_v15 = vadd.f32 %v1674_v9, %v6131_v8  ;;  %v6141_v40 = vpop.f32.mrf.mxu1  ;;  %v1854_v9 = vmul.f32 %v5422_v26, %v5422_v26  ;;  %v8989_v8 = vld [vmem:[#allocation30_spill] sm:$0xff] }
 0x21a   :  { %v4760_v20 = vpop.f32.mrf.mxu0  ;;  %8982 = vst [vmem:[#allocation127_spill] sm:$0xff] %v6141_v40 }
 0x21b   :  { %v2019_v41 = vadd.f32 %v2018_v31, %v1851_v47  ;;  %v4912_v3 = vpop.f32.mrf.mxu1 }
 0x21c   :  { %v6139_v16 = vpop.f32.mrf.mxu0 }
 0x21d   :  { %8981 = vst [vmem:[#allocation126_spill] sm:$0xff] %v6139_v16  ;;  %v1676_v13 = vadd.f32 %v1675_v15, %v6139_v16  ;;  %v1852_v24 = vmul.f32 %v6139_v16, %v6139_v16  ;;  %v6149_v34 = vpop.f32.mrf.mxu1  ;;  %v1855_v15 = vmul.f32 %v5434_v32, %v5434_v32 }
 0x21e   :  { %v4761_v63 = vpop.f32.mrf.mxu0  ;;  %8983 = vst [vmem:[#allocation128_spill] sm:$0xff] %v6149_v34 }
 0x21f   :  { %v1677_v23 = vadd.f32 %v1676_v13, %v5414_v22  ;;  %v2020_v49 = vadd.f32 %v2019_v41, %v1852_v24  ;;  %v4913_v31 = vpop.f32.mrf.mxu1  ;;  %v1856_v13 = vmul.f32 %v5442_v36, %v5442_v36 }
 0x221   :  { %v1678_v47 = vadd.f32 %v1677_v23, %v5422_v26  ;;  %v2021_v20 = vadd.f32 %v2020_v49, %v1853_v12  ;;  %v6157_v16 = vpop.f32.mrf.mxu1  ;;  %v1857_v23 = vmul.f32 %v5454_v42, %v5454_v42  ;;  %v8986_v26 = vld [vmem:[#allocation26_spill] sm:$0xff] }
 0x222   :  { %8984 = vst [vmem:[#allocation129_spill] sm:$0xff] %v6157_v16 }
 0x223   :  { %v1679_v63 = vadd.f32 %v1678_v47, %v5434_v32  ;;  %v2022_v3 = vadd.f32 %v2021_v20, %v1854_v9  ;;  %v4916_v22 = vpop.f32.mrf.mxu1  ;;  %v1858_v9 = vmul.f32 %v5462_v46, %v5462_v46 }
 0x225   :  { %v1680_v41 = vadd.f32 %v1679_v63, %v5442_v36  ;;  %v2023_v24 = vadd.f32 %v2022_v3, %v1855_v15  ;;  %v6165_v31 = vpop.f32.mrf.mxu1  ;;  %v1859_v63 = vmul.f32 %v8986_v26, %v8986_v26  ;;  %v8988_v36 = vld [vmem:[#allocation28_spill] sm:$0xff] }
 0x226   :  { %8985 = vst [vmem:[#allocation130_spill] sm:$0xff] %v6165_v31 }
 0x227   :  { %v1681_v12 = vadd.f32 %v1680_v41, %v5454_v42  ;;  %v2024_v49 = vadd.f32 %v2023_v24, %v1856_v13  ;;  %v4917_v32 = vpop.f32.mrf.mxu1  ;;  %v1860_v13 = vmul.f32 %v8988_v36, %v8988_v36 }
 0x229   :  { %v1682_v47 = vadd.f32 %v1681_v12, %v5462_v46  ;;  %v2025_v20 = vadd.f32 %v2024_v49, %v1857_v23  ;;  %v6173_v3 = vpop.f32.mrf.mxu1  ;;  %v1861_v12 = vmul.f32 %v8989_v8, %v8989_v8  ;;  %v8991_v46 = vld [vmem:[#allocation32_spill] sm:$0xff] }
 0x22a   :  { %8987 = vst [vmem:[#allocation131_spill] sm:$0xff] %v6173_v3 }
 0x22b   :  { %v1683_v22 = vadd.f32 %v1682_v47, %v8986_v26  ;;  %v2026_v15 = vadd.f32 %v2025_v20, %v1858_v9  ;;  %v4920_v42 = vpop.f32.mrf.mxu1  ;;  %v1862_v9 = vmul.f32 %v8991_v46, %v8991_v46 }
 0x22d   :  { %v1684_v41 = vadd.f32 %v1683_v22, %v8988_v36  ;;  %v2027_v24 = vadd.f32 %v2026_v15, %v1859_v63  ;;  %v6181_v49 = vpop.f32.mrf.mxu1  ;;  %v1863_v22 = vmul.f32 %v8992_v2, %v8992_v2  ;;  %v8994_v36 = vld [vmem:[#allocation36_spill] sm:$0xff] }
 0x22e   :  { %8990 = vst [vmem:[#allocation132_spill] sm:$0xff] %v6181_v49  ;;  %v8995_v49 = vld [vmem:[#allocation38_spill] sm:$0xff] }
 0x22f   :  { %v1685_v32 = vadd.f32 %v1684_v41, %v8989_v8  ;;  %v2028_v23 = vadd.f32 %v2027_v24, %v1860_v13  ;;  %v4921_v26 = vpop.f32.mrf.mxu1  ;;  %v1864_v13 = vmul.f32 %v8994_v36, %v8994_v36 }
 0x231   :  { %v1686_v47 = vadd.f32 %v1685_v32, %v8991_v46  ;;  %v2029_v20 = vadd.f32 %v2028_v23, %v1861_v12  ;;  %v6189_v15 = vpop.f32.mrf.mxu1  ;;  %v1865_v32 = vmul.f32 %v8995_v49, %v8995_v49  ;;  %v8997_v46 = vld [vmem:[#allocation40_spill] sm:$0xff] }
 0x232   :  { %8993 = vst [vmem:[#allocation133_spill] sm:$0xff] %v6189_v15  ;;  %v8998_v15 = vld [vmem:[#allocation42_spill] sm:$0xff] }
 0x233   :  { %v1687_v42 = vadd.f32 %v1686_v47, %v8992_v2  ;;  %v2030_v63 = vadd.f32 %v2029_v20, %v1862_v9  ;;  %v4924_v8 = vpop.f32.mrf.mxu1  ;;  %v1866_v9 = vmul.f32 %v8997_v46, %v8997_v46 }
 0x235   :  { %v1688_v41 = vadd.f32 %v1687_v42, %v8994_v36  ;;  %v2031_v24 = vadd.f32 %v2030_v63, %v1863_v22  ;;  %v6197_v23 = vpop.f32.mrf.mxu1  ;;  %v1867_v42 = vmul.f32 %v8998_v15, %v8998_v15  ;;  %v9000_v36 = vld [vmem:[#allocation44_spill] sm:$0xff] }
 0x236   :  { %8996 = vst [vmem:[#allocation134_spill] sm:$0xff] %v6197_v23  ;;  %v9001_v23 = vld [vmem:[#allocation46_spill] sm:$0xff] }
 0x237   :  { %v1689_v26 = vadd.f32 %v1688_v41, %v8995_v49  ;;  %v2032_v12 = vadd.f32 %v2031_v24, %v1864_v13  ;;  %v4925_v2 = vpop.f32.mrf.mxu1  ;;  %v1868_v13 = vmul.f32 %v9000_v36, %v9000_v36 }
 0x239   :  { %v1690_v47 = vadd.f32 %v1689_v26, %v8997_v46  ;;  %v2033_v20 = vadd.f32 %v2032_v12, %v1865_v32  ;;  %v6205_v63 = vpop.f32.mrf.mxu1  ;;  %v1869_v26 = vmul.f32 %v9001_v23, %v9001_v23  ;;  %v9002_v46 = vld [vmem:[#allocation48_spill] sm:$0xff] }
 0x23a   :  { %8999 = vst [vmem:[#allocation135_spill] sm:$0xff] %v6205_v63  ;;  %v9003_v63 = vld [vmem:[#allocation50_spill] sm:$0xff] }
 0x23b   :  { %v1691_v8 = vadd.f32 %v1690_v47, %v8998_v15  ;;  %v2034_v22 = vadd.f32 %v2033_v20, %v1866_v9  ;;  %v4928_v49 = vpop.f32.mrf.mxu1  ;;  %v1870_v47 = vmul.f32 %v9002_v46, %v9002_v46  ;;  %v1871_v3 = vmul.f32 %v9003_v63, %v9003_v63 }
 0x23d   :  { %v1692_v41 = vadd.f32 %v1691_v8, %v9000_v36  ;;  %v2035_v24 = vadd.f32 %v2034_v22, %v1867_v42  ;;  %v1589_v12 = vpop.f32.mrf.mxu1  ;;  %v9004_v8 = vld [vmem:[#allocation52_spill] sm:$0xff] }
 0x23e   :  { %v1872_v22 = vmul.f32 %v9004_v8, %v9004_v8 }
 0x23f   :  { %v1693_v2 = vadd.f32 %v1692_v41, %v9001_v23  ;;  %v2036_v32 = vadd.f32 %v2035_v24, %v1868_v13  ;;  %v4929_v15 = vpop.f32.mrf.mxu1  ;;  %v9005_v24 = vld [vmem:[#allocation54_spill] sm:$0xff] }
 0x240   :  { %v1873_v12 = vmul.f32 %v9005_v24, %v9005_v24 }
 0x241   :  { %v1694_v9 = vadd.f32 %v1693_v2, %v9002_v46  ;;  %v2037_v20 = vadd.f32 %v2036_v32, %v1869_v26  ;;  %v9006_v26 = vld [vmem:[#allocation56_spill] sm:$0xff] }
 0x242   :  { %v1874_v15 = vmul.f32 %v9006_v26, %v9006_v26 }
 0x243   :  { %v1695_v42 = vadd.f32 %v1694_v9, %v9003_v63  ;;  %v2038_v49 = vadd.f32 %v2037_v20, %v1870_v47  ;;  %v9007_v9 = vld [vmem:[#allocation58_spill] sm:$0xff] }
 0x244   :  { %v1875_v47 = vmul.f32 %v9007_v9, %v9007_v9 }
 0x245   :  { %v1696_v41 = vadd.f32 %v1695_v42, %v9004_v8  ;;  %v2039_v13 = vadd.f32 %v2038_v49, %v1871_v3  ;;  %v9008_v42 = vld [vmem:[#allocation60_spill] sm:$0xff] }
 0x246   :  { %v1876_v3 = vmul.f32 %v9008_v42, %v9008_v42 }
 0x247   :  { %v1697_v23 = vadd.f32 %v1696_v41, %v9005_v24  ;;  %v2040_v2 = vadd.f32 %v2039_v13, %v1872_v22  ;;  %v9009_v41 = vld [vmem:[#allocation62_spill] sm:$0xff] }
 0x248   :  { %v1877_v22 = vmul.f32 %v9009_v41, %v9009_v41 }
 0x249   :  { %v1698_v32 = vadd.f32 %v1697_v23, %v9006_v26  ;;  %v2041_v46 = vadd.f32 %v2040_v2, %v1873_v12  ;;  %v9010_v23 = vld [vmem:[#allocation64_spill] sm:$0xff] }
 0x24a   :  { %v1878_v12 = vmul.f32 %v9010_v23, %v9010_v23 }
 0x24b   :  { %v1699_v20 = vadd.f32 %v1698_v32, %v9007_v9  ;;  %v2042_v63 = vadd.f32 %v2041_v46, %v1874_v15  ;;  %v9011_v32 = vld [vmem:[#allocation66_spill] sm:$0xff] }
 0x24c   :  { %v1879_v46 = vmul.f32 %v9011_v32, %v9011_v32 }
 0x24d   :  { %v1700_v49 = vadd.f32 %v1699_v20, %v9008_v42  ;;  %v2043_v8 = vadd.f32 %v2042_v63, %v1875_v47  ;;  %v9012_v20 = vld [vmem:[#allocation68_spill] sm:$0xff] }
 0x24e   :  { %v1880_v63 = vmul.f32 %v9012_v20, %v9012_v20 }
 0x24f   :  { %v1701_v13 = vadd.f32 %v1700_v49, %v9009_v41  ;;  %v2044_v24 = vadd.f32 %v2043_v8, %v1876_v3  ;;  %v9013_v49 = vld [vmem:[#allocation70_spill] sm:$0xff] }
 0x250   :  { %v1881_v8 = vmul.f32 %v9013_v49, %v9013_v49 }
 0x251   :  { %v1702_v2 = vadd.f32 %v1701_v13, %v9010_v23  ;;  %v2045_v26 = vadd.f32 %v2044_v24, %v1877_v22  ;;  %v9014_v13 = vld [vmem:[#allocation72_spill] sm:$0xff] }
 0x252   :  { %v1882_v24 = vmul.f32 %v9014_v13, %v9014_v13 }
 0x253   :  { %v1703_v15 = vadd.f32 %v1702_v2, %v9011_v32  ;;  %v2046_v9 = vadd.f32 %v2045_v26, %v1878_v12  ;;  %v9015_v2 = vld [vmem:[#allocation74_spill] sm:$0xff] }
 0x254   :  { %v1883_v26 = vmul.f32 %v9015_v2, %v9015_v2 }
 0x255   :  { %v2047_v47 = vadd.f32 %v2046_v9, %v1879_v46  ;;  %v1704_v42 = vadd.f32 %v1703_v15, %v9012_v20  ;;  %v9016_v46 = vld [vmem:[#allocation76_spill] sm:$0xff] }
 0x256   :  { %v1884_v15 = vmul.f32 %v9016_v46, %v9016_v46 }
 0x257   :  { %v1705_v3 = vadd.f32 %v1704_v42, %v9013_v49  ;;  %v2048_v41 = vadd.f32 %v2047_v47, %v1880_v63  ;;  %v9017_v42 = vld [vmem:[#allocation78_spill] sm:$0xff] }
 0x258   :  { %v1885_v63 = vmul.f32 %v9017_v42, %v9017_v42 }
 0x259   :  { %v1706_v22 = vadd.f32 %v1705_v3, %v9014_v13  ;;  %v2049_v23 = vadd.f32 %v2048_v41, %v1881_v8  ;;  %v1886_v41 = vmul.f32 %v5729_v6, %v5729_v6 }
 0x25b   :  { %v1707_v12 = vadd.f32 %v1706_v22, %v9015_v2  ;;  %v2050_v9 = vadd.f32 %v2049_v23, %v1882_v24  ;;  %v9018_v22 = vld [vmem:[#allocation81_spill] sm:$0xff] }
 0x25c   :  { %v1887_v23 = vmul.f32 %v9018_v22, %v9018_v22 }
 0x25d   :  { %v1708_v20 = vadd.f32 %v1707_v12, %v9016_v46  ;;  %v2051_v32 = vadd.f32 %v2050_v9, %v1883_v26  ;;  %v1888_v26 = vmul.f32 %v5753_v56, %v5753_v56 }
 0x25f   :  { %v1709_v47 = vadd.f32 %v1708_v20, %v9017_v42  ;;  %v2052_v49 = vadd.f32 %v2051_v32, %v1884_v15  ;;  %v1889_v32 = vmul.f32 %v5763_v54, %v5763_v54 }
 0x261   :  { %v1710_v8 = vadd.f32 %v1709_v47, %v5729_v6  ;;  %v2053_v3 = vadd.f32 %v2052_v49, %v1885_v63  ;;  %v1890_v49 = vmul.f32 %v5773_v19, %v5773_v19 }
 0x263   :  { %v1711_v24 = vadd.f32 %v1710_v8, %v9018_v22  ;;  %v2054_v2 = vadd.f32 %v2053_v3, %v1886_v41  ;;  %v1891_v41 = vmul.f32 %v5783_v48, %v5783_v48 }
 0x265   :  { %v1712_v12 = vadd.f32 %v1711_v24, %v5753_v56  ;;  %v2055_v9 = vadd.f32 %v2054_v2, %v1887_v23  ;;  %v1892_v2 = vmul.f32 %v5793_v55, %v5793_v55 }
 0x267   :  { %v1713_v20 = vadd.f32 %v1712_v12, %v5763_v54  ;;  %v2056_v15 = vadd.f32 %v2055_v9, %v1888_v26  ;;  %v1893_v26 = vmul.f32 %v5803_v60, %v5803_v60 }
 0x269   :  { %v1714_v63 = vadd.f32 %v1713_v20, %v5773_v19  ;;  %v2057_v47 = vadd.f32 %v2056_v15, %v1889_v32  ;;  %v1894_v32 = vmul.f32 %v5813_v0, %v5813_v0 }
 0x26b   :  { %v1715_v8 = vadd.f32 %v1714_v63, %v5783_v48  ;;  %v2058_v3 = vadd.f32 %v2057_v47, %v1890_v49  ;;  %v1895_v63 = vmul.f32 %v5823_v7, %v5823_v7 }
 0x26d   :  { %v1716_v23 = vadd.f32 %v1715_v8, %v5793_v55  ;;  %v2059_v24 = vadd.f32 %v2058_v3, %v1891_v41  ;;  %v1896_v3 = vmul.f32 %v5833_v53, %v5833_v53 }
 0x26f   :  { %v1717_v12 = vadd.f32 %v1716_v23, %v5803_v60  ;;  %v2060_v9 = vadd.f32 %v2059_v24, %v1892_v2  ;;  %v1897_v24 = vmul.f32 %v5843_v59, %v5843_v59 }
 0x271   :  { %v1718_v20 = vadd.f32 %v1717_v12, %v5813_v0  ;;  %v2061_v15 = vadd.f32 %v2060_v9, %v1893_v26  ;;  %v1898_v9 = vmul.f32 %v5853_v21, %v5853_v21 }
 0x273   :  { %v1719_v49 = vadd.f32 %v1718_v20, %v5823_v7  ;;  %v2062_v47 = vadd.f32 %v2061_v15, %v1894_v32  ;;  %v1899_v15 = vmul.f32 %v5863_v5, %v5863_v5 }
 0x275   :  { %v2063_v8 = vadd.f32 %v2062_v47, %v1895_v63  ;;  %v1720_v41 = vadd.f32 %v1719_v49, %v5833_v53  ;;  %v1900_v47 = vmul.f32 %v5873_v11, %v5873_v11 }
 0x277   :  { %v2064_v23 = vadd.f32 %v2063_v8, %v1896_v3  ;;  %v1721_v2 = vadd.f32 %v1720_v41, %v5843_v59  ;;  %v1901_v3 = vmul.f32 %v5883_v17, %v5883_v17 }
 0x279   :  { %v2065_v12 = vadd.f32 %v2064_v23, %v1897_v24  ;;  %v1722_v26 = vadd.f32 %v1721_v2, %v5853_v21  ;;  %v1902_v24 = vmul.f32 %v5893_v25, %v5893_v25 }
 0x27b   :  { %v2066_v20 = vadd.f32 %v2065_v12, %v1898_v9  ;;  %v1723_v32 = vadd.f32 %v1722_v26, %v5863_v5  ;;  %v1903_v9 = vmul.f32 %v5903_v35, %v5903_v35 }
 0x27d   :  { %v2067_v49 = vadd.f32 %v2066_v20, %v1899_v15  ;;  %v1724_v63 = vadd.f32 %v1723_v32, %v5873_v11  ;;  %v1904_v15 = vmul.f32 %v5913_v45, %v5913_v45 }
 0x27f   :  { %v2068_v8 = vadd.f32 %v2067_v49, %v1900_v47  ;;  %v1725_v41 = vadd.f32 %v1724_v63, %v5883_v17  ;;  %v1905_v47 = vmul.f32 %v5923_v58, %v5923_v58 }
 0x281   :  { %v2069_v23 = vadd.f32 %v2068_v8, %v1901_v3  ;;  %v1726_v2 = vadd.f32 %v1725_v41, %v5893_v25  ;;  %v1906_v3 = vmul.f32 %v5933_v10, %v5933_v10 }
 0x283   :  { %v2070_v12 = vadd.f32 %v2069_v23, %v1902_v24  ;;  %v1727_v26 = vadd.f32 %v1726_v2, %v5903_v35  ;;  %v1907_v24 = vmul.f32 %v5943_v27, %v5943_v27 }
 0x285   :  { %v2071_v20 = vadd.f32 %v2070_v12, %v1903_v9  ;;  %v1728_v32 = vadd.f32 %v1727_v26, %v5913_v45  ;;  %v1908_v9 = vmul.f32 %v5953_v43, %v5953_v43 }
 0x287   :  { %v2072_v49 = vadd.f32 %v2071_v20, %v1904_v15  ;;  %v1729_v63 = vadd.f32 %v1728_v32, %v5923_v58  ;;  %v1909_v15 = vmul.f32 %v5963_v1, %v5963_v1 }
 0x289   :  { %v2073_v8 = vadd.f32 %v2072_v49, %v1905_v47  ;;  %v1730_v41 = vadd.f32 %v1729_v63, %v5933_v10  ;;  %v1910_v47 = vmul.f32 %v5973_v29, %v5973_v29 }
 0x28b   :  { %v2074_v23 = vadd.f32 %v2073_v8, %v1906_v3  ;;  %v1731_v2 = vadd.f32 %v1730_v41, %v5943_v27  ;;  %v1911_v3 = vmul.f32 %v5983_v61, %v5983_v61 }
 0x28d   :  { %v2075_v12 = vadd.f32 %v2074_v23, %v1907_v24  ;;  %v1732_v26 = vadd.f32 %v1731_v2, %v5953_v43  ;;  %v1912_v24 = vmul.f32 %v5993_v39, %v5993_v39 }
 0x28f   :  { %v2076_v20 = vadd.f32 %v2075_v12, %v1908_v9  ;;  %v1733_v32 = vadd.f32 %v1732_v26, %v5963_v1  ;;  %v1913_v9 = vmul.f32 %v6003_v33, %v6003_v33 }
 0x291   :  { %v2077_v49 = vadd.f32 %v2076_v20, %v1909_v15  ;;  %v1734_v63 = vadd.f32 %v1733_v32, %v5973_v29  ;;  %v1914_v15 = vmul.f32 %v6013_v37, %v6013_v37 }
 0x293   :  { %v2078_v8 = vadd.f32 %v2077_v49, %v1910_v47  ;;  %v1735_v41 = vadd.f32 %v1734_v63, %v5983_v61  ;;  %v1915_v47 = vmul.f32 %v6023_v4, %v6023_v4 }
 0x295   :  { %v2079_v23 = vadd.f32 %v2078_v8, %v1911_v3  ;;  %v1736_v2 = vadd.f32 %v1735_v41, %v5993_v39  ;;  %v1916_v3 = vmul.f32 %v6033_v44, %v6033_v44 }
 0x297   :  { %v2080_v12 = vadd.f32 %v2079_v23, %v1912_v24  ;;  %v1737_v26 = vadd.f32 %v1736_v2, %v6003_v33  ;;  %v1917_v24 = vmul.f32 %v6043_v28, %v6043_v28 }
 0x299   :  { %v2081_v20 = vadd.f32 %v2080_v12, %v1913_v9  ;;  %v1738_v32 = vadd.f32 %v1737_v26, %v6013_v37  ;;  %v1918_v9 = vmul.f32 %v6053_v57, %v6053_v57 }
 0x29b   :  { %v2082_v49 = vadd.f32 %v2081_v20, %v1914_v15  ;;  %v1739_v63 = vadd.f32 %v1738_v32, %v6023_v4  ;;  %v1919_v15 = vmul.f32 %v6063_v62, %v6063_v62 }
 0x29d   :  { %v2083_v8 = vadd.f32 %v2082_v49, %v1915_v47  ;;  %v1740_v41 = vadd.f32 %v1739_v63, %v6033_v44  ;;  %v1920_v47 = vmul.f32 %v6073_v50, %v6073_v50 }
 0x29f   :  { %v2084_v23 = vadd.f32 %v2083_v8, %v1916_v3  ;;  %v1741_v2 = vadd.f32 %v1740_v41, %v6043_v28  ;;  %v1921_v3 = vmul.f32 %v6083_v38, %v6083_v38 }
 0x2a1   :  { %v2085_v12 = vadd.f32 %v2084_v23, %v1917_v24  ;;  %v1742_v26 = vadd.f32 %v1741_v2, %v6053_v57  ;;  %v1922_v24 = vmul.f32 %v6093_v14, %v6093_v14 }
 0x2a3   :  { %v2086_v20 = vadd.f32 %v2085_v12, %v1918_v9  ;;  %v1743_v32 = vadd.f32 %v1742_v26, %v6063_v62  ;;  %v1923_v9 = vmul.f32 %v6103_v30, %v6103_v30 }
 0x2a5   :  { %v2087_v49 = vadd.f32 %v2086_v20, %v1919_v15  ;;  %v1744_v63 = vadd.f32 %v1743_v32, %v6073_v50  ;;  %v1924_v15 = vmul.f32 %v6113_v51, %v6113_v51 }
 0x2a7   :  { %v2088_v8 = vadd.f32 %v2087_v49, %v1920_v47  ;;  %v1745_v41 = vadd.f32 %v1744_v63, %v6083_v38  ;;  %v1925_v47 = vmul.f32 %v6123_v18, %v6123_v18 }
 0x2a9   :  { %v2089_v23 = vadd.f32 %v2088_v8, %v1921_v3  ;;  %v1746_v2 = vadd.f32 %v1745_v41, %v6093_v14  ;;  %v1926_v3 = vmul.f32 %v6133_v52, %v6133_v52 }
 0x2ab   :  { %v2090_v12 = vadd.f32 %v2089_v23, %v1922_v24  ;;  %v1747_v26 = vadd.f32 %v1746_v2, %v6103_v30  ;;  %v1927_v24 = vmul.f32 %v6141_v40, %v6141_v40 }
 0x2ad   :  { %v2091_v20 = vadd.f32 %v2090_v12, %v1923_v9  ;;  %v1748_v32 = vadd.f32 %v1747_v26, %v6113_v51  ;;  %v1928_v9 = vmul.f32 %v6149_v34, %v6149_v34 }
 0x2af   :  { %v2092_v49 = vadd.f32 %v2091_v20, %v1924_v15  ;;  %v1749_v63 = vadd.f32 %v1748_v32, %v6123_v18  ;;  %v1929_v15 = vmul.f32 %v6157_v16, %v6157_v16 }
 0x2b1   :  { %v2093_v8 = vadd.f32 %v2092_v49, %v1925_v47  ;;  %v1750_v41 = vadd.f32 %v1749_v63, %v6133_v52  ;;  %v1930_v47 = vmul.f32 %v6165_v31, %v6165_v31 }
 0x2b3   :  { %v2094_v23 = vadd.f32 %v2093_v8, %v1926_v3  ;;  %v1751_v2 = vadd.f32 %v1750_v41, %v6141_v40  ;;  %v9019_v41 = vld [vmem:[#allocation131_spill] sm:$0xff] }
 0x2b5   :  { %v2095_v12 = vadd.f32 %v2094_v23, %v1927_v24  ;;  %v1752_v26 = vadd.f32 %v1751_v2, %v6149_v34  ;;  %v1931_v23 = vmul.f32 %v9019_v41, %v9019_v41  ;;  %v9020_v24 = vld [vmem:[#allocation132_spill] sm:$0xff] }
 0x2b7   :  { %v2096_v20 = vadd.f32 %v2095_v12, %v1928_v9  ;;  %v1753_v32 = vadd.f32 %v1752_v26, %v6157_v16  ;;  %v1932_v26 = vmul.f32 %v9020_v24, %v9020_v24  ;;  %v9021_v16 = vld [vmem:[#allocation133_spill] sm:$0xff] }
 0x2b9   :  { %v2097_v49 = vadd.f32 %v2096_v20, %v1929_v15  ;;  %v1754_v63 = vadd.f32 %v1753_v32, %v6165_v31  ;;  %v1933_v32 = vmul.f32 %v9021_v16, %v9021_v16  ;;  %v9022_v31 = vld [vmem:[#allocation134_spill] sm:$0xff] }
 0x2bb   :  { %v2098_v8 = vadd.f32 %v2097_v49, %v1930_v47  ;;  %v1755_v3 = vadd.f32 %v1754_v63, %v9019_v41  ;;  %v1934_v63 = vmul.f32 %v9022_v31, %v9022_v31  ;;  %v9023_v47 = vld [vmem:[#allocation135_spill] sm:$0xff] }
 0x2bd   :  { %v2099_v2 = vadd.f32 %v2098_v8, %v1931_v23  ;;  %v1756_v12 = vadd.f32 %v1755_v3, %v9020_v24  ;;  %v1935_v8 = vmul.f32 %v9023_v47, %v9023_v47 }
 0x2bf   :  { %v2100_v9 = vadd.f32 %v2099_v2, %v1932_v26  ;;  %v1757_v20 = vadd.f32 %v1756_v12, %v9021_v16 }
 0x2c1   :  { %v2101_v15 = vadd.f32 %v2100_v9, %v1933_v32  ;;  %v1758_v49 = vadd.f32 %v1757_v20, %v9022_v31 }
 0x2c3   :  { %v2102_v23 = vadd.f32 %v2101_v15, %v1934_v63  ;;  %v1759_v3 = vadd.f32 %v1758_v49, %v9023_v47  ;;  %v2122_v49 = vlaneseq }
 0x2c5   :  { %v1760_v41 = vrot.slane %v1759_v3, 4  ;;  %v2103_v24 = vadd.f32 %v2102_v23, %v1935_v8  ;;  %v6411_v8 = vshrl.u32 %v2122_v49, 7  ;;  %v9025_v23 = vld [vmem:[#allocation3_spill] sm:$0xff] }
 0x2c7   :  { %v1761_v2 = vadd.f32 %v1760_v41, %v1759_v3  ;;  %v2104_v26 = vrot.slane %v2103_v24, 4  ;;  %v2114_v41 = vld [vmem:[%s8551_s2] sm:$0x1] }
 0x2c9   :  { %v1762_v12 = vrot.slane %v1761_v2, 2  ;;  %v2105_v34 = vadd.f32 %v2104_v26, %v2103_v24  ;;  %v8715_v24 = vsub.s32 0, %v6411_v8 }
 0x2cb   :  { %v1763_v40 = vadd.f32 %v1762_v12, %v1761_v2  ;;  %v2106_v16 = vrot.slane %v2105_v34, 2  ;;  %v9026_v2 = vld [vmem:[#allocation4_spill] sm:$0xff] }
 0x2cd   :  { %v1764_v9 = vrot.slane %v1763_v40, 1  ;;  %v2107_v32 = vadd.f32 %v2106_v16, %v2105_v34  ;;  %v9024_v34 = vld [vmem:[#allocation2_spill] sm:$0xff] }
 0x2cf   :  { %v1765_v20 = vadd.f32 %v1764_v9, %v1763_v40  ;;  %v2108_v52 = vrot.slane %v2107_v32, 1  ;;  %v9028_v9 = vld [vmem:[#allocation6_spill] sm:$0xff] }
 0x2d1   :  { %v1766_v18 = vmul.f32 0.000739645, %v1765_v20  ;;  %v2109_v31 = vadd.f32 %v2108_v52, %v2107_v32  ;;  %v6420_v52 = vld [vmem:[%s8552_s3] sm:$0x1]  ;;  %v9029_v20 = vld [vmem:[#allocation7_spill] sm:$0xff] }
 0x2d3   :  { %v2110_v51 = vmul.f32 0.000739645, %v2109_v31  ;;  %v2111_v30 = vmul.f32 %v1766_v18, %v1766_v18 }
 0x2d5   :  { %v2112_v14 = vsub.f32 %v2110_v51, %v2111_v30  ;;  %v9040_v51 = vld [vmem:[#allocation15_spill] sm:$0xff] }
 0x2d7   :  { %v2113_v15 = vmax.f32 %v2112_v14, 0.0 }
 0x2d9   :  { %v2115_v63 = vadd.f32 1e-05, %v2113_v15 }
 0x2db   :  { %5021 = vrsqrt.f32 %v2115_v63  ;;  %v9030_v63 = vld [vmem:[#allocation8_spill] sm:$0xff] }
 0x2e8   :  { %v5022_v16 = vpop.eup %5021 }
 0x2e9   :  { %v2117_v40 = vmul.f32 %v5022_v16, %v2114_v41  ;;  %v9031_v41 = vld [vmem:[#allocation9_spill] sm:$0xff] }
 0x2eb   :  { %v6422_v30 = vmul.f32 %v2117_v40, %v1766_v18  ;;  %v6426_v14 = vrot.slane %v2117_v40, %v8715_v24  ;;  %v9027_v18 = vld [vmem:[#allocation5_spill] sm:$0xff]  ;;  %v9032_v40 = vld [vmem:[#allocation10_spill] sm:$0xff] }
 0x2ec   :  { %v9042_v24 = vld [vmem:[#allocation17_spill] sm:$0xff] }
 0x2ed   :  { %v6432_v31 = vmul.f32 %v6426_v14, %v9024_v34  ;;  %v6436_v3 = vmul.f32 %v6426_v14, %v9025_v23  ;;  %v6440_v26 = vmul.f32 %v6426_v14, %v9026_v2  ;;  %v6444_v12 = vmul.f32 %v6426_v14, %v9027_v18  ;;  %v9034_v23 = vld [vmem:[#allocation11_spill] sm:$0xff]  ;;  %v9036_v18 = vld [vmem:[#allocation12_spill] sm:$0xff] }
 0x2ee   :  { %v6448_v32 = vmul.f32 %v6426_v14, %v9028_v9  ;;  %v6452_v15 = vmul.f32 %v6426_v14, %v9029_v20  ;;  %v6456_v49 = vmul.f32 %v6426_v14, %v9030_v63  ;;  %v6460_v16 = vmul.f32 %v6426_v14, %v9031_v41  ;;  %v9038_v20 = vld [vmem:[#allocation13_spill] sm:$0xff] }
 0x2ef   :  { %v6464_v34 = vmul.f32 %v6426_v14, %v9032_v40  ;;  %v6468_v2 = vmul.f32 %v6426_v14, %v9034_v23  ;;  %v6472_v9 = vmul.f32 %v6426_v14, %v9036_v18  ;;  %v6476_v63 = vmul.f32 %v6426_v14, %v9038_v20 }
 0x2f0   :  { %v6480_v41 = vmul.f32 %v6426_v14, %v9040_v51  ;;  %v6484_v40 = vmul.f32 %v6426_v14, %v9042_v24 }
 0x2f1   :  { %9033 = vst [vmem:[#allocation44_spill] sm:$0xff] %v6464_v34  ;;  %9035 = vst [vmem:[#allocation72_spill] sm:$0xff] %v6468_v2  ;;  %v9044_v34 = vld [vmem:[#allocation19_spill] sm:$0xff]  ;;  %v9046_v2 = vld [vmem:[#allocation21_spill] sm:$0xff] }
 0x2f2   :  { %9037 = vst [vmem:[#allocation76_spill] sm:$0xff] %v6472_v9  ;;  %9039 = vst [vmem:[#allocation78_spill] sm:$0xff] %v6476_v63  ;;  %v6488_v23 = vmul.f32 %v6426_v14, %v9044_v34  ;;  %v6492_v18 = vmul.f32 %v6426_v14, %v9046_v2  ;;  %v9048_v9 = vld [vmem:[#allocation23_spill] sm:$0xff]  ;;  %v9050_v63 = vld [vmem:[#allocation25_spill] sm:$0xff] }
 0x2f3   :  { %9041 = vst [vmem:[#allocation81_spill] sm:$0xff] %v6480_v41  ;;  %9043 = vst [vmem:[#allocation135_spill] sm:$0xff] %v6484_v40  ;;  %v6496_v20 = vmul.f32 %v6426_v14, %v9048_v9  ;;  %v6500_v51 = vmul.f32 %v6426_v14, %v9050_v63  ;;  %v9052_v41 = vld [vmem:[#allocation27_spill] sm:$0xff]  ;;  %v9054_v40 = vld [vmem:[#allocation29_spill] sm:$0xff] }
 0x2f4   :  { %9045 = vst [vmem:[#allocation2_spill] sm:$0xff] %v6488_v23  ;;  %9047 = vst [vmem:[#allocation3_spill] sm:$0xff] %v6492_v18  ;;  %v6504_v24 = vmul.f32 %v6426_v14, %v9052_v41  ;;  %v6508_v34 = vmul.f32 %v6426_v14, %v9054_v40  ;;  %v9056_v23 = vld [vmem:[#allocation31_spill] sm:$0xff]  ;;  %v9058_v18 = vld [vmem:[#allocation33_spill] sm:$0xff] }
 0x2f5   :  { %9049 = vst [vmem:[#allocation4_spill] sm:$0xff] %v6496_v20  ;;  %9051 = vst [vmem:[#allocation5_spill] sm:$0xff] %v6500_v51  ;;  %v6512_v2 = vmul.f32 %v6426_v14, %v9056_v23  ;;  %v6516_v9 = vmul.f32 %v6426_v14, %v9058_v18  ;;  %v9060_v20 = vld [vmem:[#allocation35_spill] sm:$0xff]  ;;  %v9062_v51 = vld [vmem:[#allocation37_spill] sm:$0xff] }
 0x2f6   :  { %9053 = vst [vmem:[#allocation6_spill] sm:$0xff] %v6504_v24  ;;  %9055 = vst [vmem:[#allocation7_spill] sm:$0xff] %v6508_v34  ;;  %v6520_v63 = vmul.f32 %v6426_v14, %v9060_v20  ;;  %v6524_v41 = vmul.f32 %v6426_v14, %v9062_v51  ;;  %v9064_v24 = vld [vmem:[#allocation39_spill] sm:$0xff]  ;;  %v9066_v34 = vld [vmem:[#allocation41_spill] sm:$0xff] }
 0x2f7   :  { %9057 = vst [vmem:[#allocation8_spill] sm:$0xff] %v6512_v2  ;;  %9059 = vst [vmem:[#allocation9_spill] sm:$0xff] %v6516_v9  ;;  %v6528_v40 = vmul.f32 %v6426_v14, %v9064_v24  ;;  %v6532_v23 = vmul.f32 %v6426_v14, %v9066_v34  ;;  %v9068_v2 = vld [vmem:[#allocation43_spill] sm:$0xff]  ;;  %v9070_v9 = vld [vmem:[#allocation45_spill] sm:$0xff] }
 0x2f8   :  { %9061 = vst [vmem:[#allocation10_spill] sm:$0xff] %v6520_v63  ;;  %9063 = vst [vmem:[#allocation11_spill] sm:$0xff] %v6524_v41  ;;  %v6536_v18 = vmul.f32 %v6426_v14, %v9068_v2  ;;  %v6540_v20 = vmul.f32 %v6426_v14, %v9070_v9  ;;  %v9072_v63 = vld [vmem:[#allocation47_spill] sm:$0xff]  ;;  %v9074_v41 = vld [vmem:[#allocation49_spill] sm:$0xff] }
 0x2f9   :  { %9065 = vst [vmem:[#allocation12_spill] sm:$0xff] %v6528_v40  ;;  %9067 = vst [vmem:[#allocation13_spill] sm:$0xff] %v6532_v23  ;;  %v6544_v51 = vmul.f32 %v6426_v14, %v9072_v63  ;;  %v6548_v24 = vmul.f32 %v6426_v14, %v9074_v41  ;;  %v9076_v40 = vld [vmem:[#allocation51_spill] sm:$0xff]  ;;  %v9078_v23 = vld [vmem:[#allocation53_spill] sm:$0xff] }
 0x2fa   :  { %9069 = vst [vmem:[#allocation15_spill] sm:$0xff] %v6536_v18  ;;  %9071 = vst [vmem:[#allocation17_spill] sm:$0xff] %v6540_v20  ;;  %v6552_v34 = vmul.f32 %v6426_v14, %v9076_v40  ;;  %v6556_v2 = vmul.f32 %v6426_v14, %v9078_v23  ;;  %v9080_v18 = vld [vmem:[#allocation55_spill] sm:$0xff]  ;;  %v9082_v20 = vld [vmem:[#allocation57_spill] sm:$0xff] }
 0x2fb   :  { %9073 = vst [vmem:[#allocation19_spill] sm:$0xff] %v6544_v51  ;;  %9075 = vst [vmem:[#allocation21_spill] sm:$0xff] %v6548_v24  ;;  %v6560_v9 = vmul.f32 %v6426_v14, %v9080_v18  ;;  %v6564_v63 = vmul.f32 %v6426_v14, %v9082_v20  ;;  %v9084_v51 = vld [vmem:[#allocation59_spill] sm:$0xff]  ;;  %v9086_v24 = vld [vmem:[#allocation61_spill] sm:$0xff] }
 0x2fc   :  { %9077 = vst [vmem:[#allocation23_spill] sm:$0xff] %v6552_v34  ;;  %9079 = vst [vmem:[#allocation25_spill] sm:$0xff] %v6556_v2  ;;  %v6568_v41 = vmul.f32 %v6426_v14, %v9084_v51  ;;  %v6572_v40 = vmul.f32 %v6426_v14, %v9086_v24  ;;  %v9088_v34 = vld [vmem:[#allocation63_spill] sm:$0xff]  ;;  %v9090_v2 = vld [vmem:[#allocation65_spill] sm:$0xff] }
 0x2fd   :  { %9081 = vst [vmem:[#allocation27_spill] sm:$0xff] %v6560_v9  ;;  %9083 = vst [vmem:[#allocation29_spill] sm:$0xff] %v6564_v63  ;;  %v6576_v23 = vmul.f32 %v6426_v14, %v9088_v34  ;;  %v6580_v18 = vmul.f32 %v6426_v14, %v9090_v2  ;;  %v9092_v9 = vld [vmem:[#allocation67_spill] sm:$0xff]  ;;  %v9094_v63 = vld [vmem:[#allocation69_spill] sm:$0xff] }
 0x2fe   :  { %9085 = vst [vmem:[#allocation31_spill] sm:$0xff] %v6568_v41  ;;  %9087 = vst [vmem:[#allocation33_spill] sm:$0xff] %v6572_v40  ;;  %v6584_v20 = vmul.f32 %v6426_v14, %v9092_v9  ;;  %v6588_v51 = vmul.f32 %v6426_v14, %v9094_v63  ;;  %v9096_v41 = vld [vmem:[#allocation71_spill] sm:$0xff]  ;;  %v9098_v40 = vld [vmem:[#allocation73_spill] sm:$0xff] }
 0x2ff   :  { %9089 = vst [vmem:[#allocation35_spill] sm:$0xff] %v6576_v23  ;;  %9091 = vst [vmem:[#allocation37_spill] sm:$0xff] %v6580_v18  ;;  %v6592_v24 = vmul.f32 %v6426_v14, %v9096_v41  ;;  %v6596_v34 = vmul.f32 %v6426_v14, %v9098_v40  ;;  %v9100_v23 = vld [vmem:[#allocation75_spill] sm:$0xff]  ;;  %v9102_v18 = vld [vmem:[#allocation77_spill] sm:$0xff] }
 0x300   :  { %9093 = vst [vmem:[#allocation39_spill] sm:$0xff] %v6584_v20  ;;  %9095 = vst [vmem:[#allocation41_spill] sm:$0xff] %v6588_v51  ;;  %v6600_v2 = vmul.f32 %v6426_v14, %v9100_v23  ;;  %v6604_v9 = vmul.f32 %v6426_v14, %v9102_v18  ;;  %v9104_v20 = vld [vmem:[#allocation79_spill] sm:$0xff]  ;;  %v9106_v51 = vld [vmem:[#allocation80_spill] sm:$0xff] }
 0x301   :  { %9097 = vst [vmem:[#allocation43_spill] sm:$0xff] %v6592_v24  ;;  %9099 = vst [vmem:[#allocation45_spill] sm:$0xff] %v6596_v34  ;;  %v6608_v63 = vmul.f32 %v6426_v14, %v9104_v20  ;;  %v6612_v41 = vmul.f32 %v6426_v14, %v9106_v51  ;;  %v9108_v24 = vld [vmem:[#allocation82_spill] sm:$0xff]  ;;  %v9110_v34 = vld [vmem:[#allocation83_spill] sm:$0xff] }
 0x302   :  { %9101 = vst [vmem:[#allocation47_spill] sm:$0xff] %v6600_v2  ;;  %9103 = vst [vmem:[#allocation49_spill] sm:$0xff] %v6604_v9  ;;  %v6616_v40 = vmul.f32 %v6426_v14, %v9108_v24  ;;  %v6620_v23 = vmul.f32 %v6426_v14, %v9110_v34  ;;  %v9112_v2 = vld [vmem:[#allocation84_spill] sm:$0xff]  ;;  %v9114_v9 = vld [vmem:[#allocation85_spill] sm:$0xff] }
 0x303   :  { %9105 = vst [vmem:[#allocation51_spill] sm:$0xff] %v6608_v63  ;;  %9107 = vst [vmem:[#allocation53_spill] sm:$0xff] %v6612_v41  ;;  %v6624_v18 = vmul.f32 %v6426_v14, %v9112_v2  ;;  %v6628_v20 = vmul.f32 %v6426_v14, %v9114_v9  ;;  %v9116_v63 = vld [vmem:[#allocation86_spill] sm:$0xff]  ;;  %v9118_v41 = vld [vmem:[#allocation87_spill] sm:$0xff] }
 0x304   :  { %9109 = vst [vmem:[#allocation55_spill] sm:$0xff] %v6616_v40  ;;  %9111 = vst [vmem:[#allocation57_spill] sm:$0xff] %v6620_v23  ;;  %v6632_v51 = vmul.f32 %v6426_v14, %v9116_v63  ;;  %v6636_v24 = vmul.f32 %v6426_v14, %v9118_v41  ;;  %v9120_v40 = vld [vmem:[#allocation88_spill] sm:$0xff]  ;;  %v9122_v23 = vld [vmem:[#allocation89_spill] sm:$0xff] }
 0x305   :  { %9113 = vst [vmem:[#allocation59_spill] sm:$0xff] %v6624_v18  ;;  %9115 = vst [vmem:[#allocation61_spill] sm:$0xff] %v6628_v20  ;;  %v6640_v34 = vmul.f32 %v6426_v14, %v9120_v40  ;;  %v6644_v2 = vmul.f32 %v6426_v14, %v9122_v23  ;;  %v9124_v18 = vld [vmem:[#allocation90_spill] sm:$0xff]  ;;  %v9126_v20 = vld [vmem:[#allocation91_spill] sm:$0xff] }
 0x306   :  { %9117 = vst [vmem:[#allocation63_spill] sm:$0xff] %v6632_v51  ;;  %9119 = vst [vmem:[#allocation65_spill] sm:$0xff] %v6636_v24  ;;  %v6648_v9 = vmul.f32 %v6426_v14, %v9124_v18  ;;  %v6652_v63 = vmul.f32 %v6426_v14, %v9126_v20  ;;  %v9128_v51 = vld [vmem:[#allocation92_spill] sm:$0xff]  ;;  %v9130_v24 = vld [vmem:[#allocation93_spill] sm:$0xff] }
 0x307   :  { %9121 = vst [vmem:[#allocation67_spill] sm:$0xff] %v6640_v34  ;;  %9123 = vst [vmem:[#allocation69_spill] sm:$0xff] %v6644_v2  ;;  %v6656_v41 = vmul.f32 %v6426_v14, %v9128_v51  ;;  %v6660_v40 = vmul.f32 %v6426_v14, %v9130_v24  ;;  %v9132_v34 = vld [vmem:[#allocation94_spill] sm:$0xff]  ;;  %v9134_v2 = vld [vmem:[#allocation95_spill] sm:$0xff] }
 0x308   :  { %9125 = vst [vmem:[#allocation71_spill] sm:$0xff] %v6648_v9  ;;  %9127 = vst [vmem:[#allocation73_spill] sm:$0xff] %v6652_v63  ;;  %v6664_v23 = vmul.f32 %v6426_v14, %v9132_v34  ;;  %v6668_v18 = vmul.f32 %v6426_v14, %v9134_v2  ;;  %v9136_v9 = vld [vmem:[#allocation96_spill] sm:$0xff]  ;;  %v9138_v63 = vld [vmem:[#allocation97_spill] sm:$0xff] }
 0x309   :  { %9129 = vst [vmem:[#allocation75_spill] sm:$0xff] %v6656_v41  ;;  %9131 = vst [vmem:[#allocation77_spill] sm:$0xff] %v6660_v40  ;;  %v6672_v20 = vmul.f32 %v6426_v14, %v9136_v9  ;;  %v6676_v51 = vmul.f32 %v6426_v14, %v9138_v63  ;;  %v9140_v41 = vld [vmem:[#allocation98_spill] sm:$0xff]  ;;  %v9142_v40 = vld [vmem:[#allocation99_spill] sm:$0xff] }
 0x30a   :  { %9133 = vst [vmem:[#allocation79_spill] sm:$0xff] %v6664_v23  ;;  %9135 = vst [vmem:[#allocation80_spill] sm:$0xff] %v6668_v18  ;;  %v6680_v24 = vmul.f32 %v6426_v14, %v9140_v41  ;;  %v6684_v34 = vmul.f32 %v6426_v14, %v9142_v40  ;;  %v9144_v23 = vld [vmem:[#allocation100_spill] sm:$0xff]  ;;  %v9146_v18 = vld [vmem:[#allocation101_spill] sm:$0xff] }
 0x30b   :  { %9137 = vst [vmem:[#allocation82_spill] sm:$0xff] %v6672_v20  ;;  %9139 = vst [vmem:[#allocation83_spill] sm:$0xff] %v6676_v51  ;;  %v6688_v2 = vmul.f32 %v6426_v14, %v9144_v23  ;;  %v6692_v9 = vmul.f32 %v6426_v14, %v9146_v18  ;;  %v9148_v20 = vld [vmem:[#allocation102_spill] sm:$0xff]  ;;  %v9150_v51 = vld [vmem:[#allocation103_spill] sm:$0xff] }
 0x30c   :  { %9141 = vst [vmem:[#allocation84_spill] sm:$0xff] %v6680_v24  ;;  %9143 = vst [vmem:[#allocation85_spill] sm:$0xff] %v6684_v34  ;;  %v6696_v63 = vmul.f32 %v6426_v14, %v9148_v20  ;;  %v6700_v41 = vmul.f32 %v6426_v14, %v9150_v51  ;;  %v9152_v24 = vld [vmem:[#allocation104_spill] sm:$0xff]  ;;  %v9154_v34 = vld [vmem:[#allocation105_spill] sm:$0xff] }
 0x30d   :  { %9145 = vst [vmem:[#allocation86_spill] sm:$0xff] %v6688_v2  ;;  %9147 = vst [vmem:[#allocation87_spill] sm:$0xff] %v6692_v9  ;;  %v6704_v40 = vmul.f32 %v6426_v14, %v9152_v24  ;;  %v6708_v23 = vmul.f32 %v6426_v14, %v9154_v34  ;;  %v9156_v2 = vld [vmem:[#allocation106_spill] sm:$0xff]  ;;  %v9158_v9 = vld [vmem:[#allocation107_spill] sm:$0xff] }
 0x30e   :  { %9149 = vst [vmem:[#allocation88_spill] sm:$0xff] %v6696_v63  ;;  %9151 = vst [vmem:[#allocation89_spill] sm:$0xff] %v6700_v41  ;;  %v6712_v18 = vmul.f32 %v6426_v14, %v9156_v2  ;;  %v6716_v20 = vmul.f32 %v6426_v14, %v9158_v9  ;;  %v9160_v63 = vld [vmem:[#allocation108_spill] sm:$0xff]  ;;  %v9162_v41 = vld [vmem:[#allocation109_spill] sm:$0xff] }
 0x30f   :  { %9153 = vst [vmem:[#allocation90_spill] sm:$0xff] %v6704_v40  ;;  %9155 = vst [vmem:[#allocation91_spill] sm:$0xff] %v6708_v23  ;;  %v6720_v51 = vmul.f32 %v6426_v14, %v9160_v63  ;;  %v6724_v24 = vmul.f32 %v6426_v14, %v9162_v41  ;;  %v9164_v40 = vld [vmem:[#allocation110_spill] sm:$0xff]  ;;  %v9166_v23 = vld [vmem:[#allocation111_spill] sm:$0xff] }
 0x310   :  { %9157 = vst [vmem:[#allocation92_spill] sm:$0xff] %v6712_v18  ;;  %9159 = vst [vmem:[#allocation93_spill] sm:$0xff] %v6716_v20  ;;  %v6728_v34 = vmul.f32 %v6426_v14, %v9164_v40  ;;  %v6732_v2 = vmul.f32 %v6426_v14, %v9166_v23  ;;  %v9168_v18 = vld [vmem:[#allocation112_spill] sm:$0xff]  ;;  %v9170_v20 = vld [vmem:[#allocation113_spill] sm:$0xff] }
 0x311   :  { %9161 = vst [vmem:[#allocation94_spill] sm:$0xff] %v6720_v51  ;;  %9163 = vst [vmem:[#allocation95_spill] sm:$0xff] %v6724_v24  ;;  %v6736_v9 = vmul.f32 %v6426_v14, %v9168_v18  ;;  %v6740_v63 = vmul.f32 %v6426_v14, %v9170_v20  ;;  %v9172_v51 = vld [vmem:[#allocation114_spill] sm:$0xff]  ;;  %v9174_v24 = vld [vmem:[#allocation115_spill] sm:$0xff] }
 0x312   :  { %9165 = vst [vmem:[#allocation96_spill] sm:$0xff] %v6728_v34  ;;  %9167 = vst [vmem:[#allocation97_spill] sm:$0xff] %v6732_v2  ;;  %v6744_v41 = vmul.f32 %v6426_v14, %v9172_v51  ;;  %v6748_v40 = vmul.f32 %v6426_v14, %v9174_v24  ;;  %v9176_v34 = vld [vmem:[#allocation116_spill] sm:$0xff]  ;;  %v9178_v2 = vld [vmem:[#allocation118_spill] sm:$0xff] }
 0x313   :  { %9169 = vst [vmem:[#allocation98_spill] sm:$0xff] %v6736_v9  ;;  %9171 = vst [vmem:[#allocation99_spill] sm:$0xff] %v6740_v63  ;;  %v6752_v23 = vmul.f32 %v6426_v14, %v9176_v34  ;;  %v6756_v18 = vmul.f32 %v6426_v14, %v9178_v2  ;;  %v9180_v9 = vld [vmem:[#allocation120_spill] sm:$0xff]  ;;  %v9182_v63 = vld [vmem:[#allocation122_spill] sm:$0xff] }
 0x314   :  { %9173 = vst [vmem:[#allocation100_spill] sm:$0xff] %v6744_v41  ;;  %9175 = vst [vmem:[#allocation101_spill] sm:$0xff] %v6748_v40  ;;  %v6760_v20 = vmul.f32 %v6426_v14, %v9180_v9  ;;  %v6764_v51 = vmul.f32 %v6426_v14, %v9182_v63  ;;  %v9184_v41 = vld [vmem:[#allocation124_spill] sm:$0xff]  ;;  %v9186_v40 = vld [vmem:[#allocation126_spill] sm:$0xff] }
 0x315   :  { %9177 = vst [vmem:[#allocation102_spill] sm:$0xff] %v6752_v23  ;;  %9179 = vst [vmem:[#allocation103_spill] sm:$0xff] %v6756_v18  ;;  %v6768_v24 = vmul.f32 %v6426_v14, %v9184_v41  ;;  %v6772_v34 = vmul.f32 %v6426_v14, %v9186_v40  ;;  %v9188_v23 = vld [vmem:[#allocation14_spill] sm:$0xff]  ;;  %v9190_v18 = vld [vmem:[#allocation16_spill] sm:$0xff] }
 0x316   :  { %9181 = vst [vmem:[#allocation104_spill] sm:$0xff] %v6760_v20  ;;  %9183 = vst [vmem:[#allocation105_spill] sm:$0xff] %v6764_v51  ;;  %v6776_v2 = vmul.f32 %v6426_v14, %v9188_v23  ;;  %v6780_v9 = vmul.f32 %v6426_v14, %v9190_v18  ;;  %v9192_v20 = vld [vmem:[#allocation18_spill] sm:$0xff]  ;;  %v9194_v51 = vld [vmem:[#allocation20_spill] sm:$0xff] }
 0x317   :  { %9185 = vst [vmem:[#allocation106_spill] sm:$0xff] %v6768_v24  ;;  %9187 = vst [vmem:[#allocation107_spill] sm:$0xff] %v6772_v34  ;;  %v6784_v63 = vmul.f32 %v6426_v14, %v9192_v20  ;;  %v6788_v41 = vmul.f32 %v6426_v14, %v9194_v51  ;;  %v9196_v24 = vld [vmem:[#allocation22_spill] sm:$0xff]  ;;  %v9198_v34 = vld [vmem:[#allocation24_spill] sm:$0xff] }
 0x318   :  { %9189 = vst [vmem:[#allocation108_spill] sm:$0xff] %v6776_v2  ;;  %9191 = vst [vmem:[#allocation109_spill] sm:$0xff] %v6780_v9  ;;  %v6792_v40 = vmul.f32 %v6426_v14, %v9196_v24  ;;  %v6796_v23 = vmul.f32 %v6426_v14, %v9198_v34  ;;  %v9200_v2 = vld [vmem:[#allocation26_spill] sm:$0xff]  ;;  %v9202_v9 = vld [vmem:[#allocation28_spill] sm:$0xff] }
 0x319   :  { %9193 = vst [vmem:[#allocation110_spill] sm:$0xff] %v6784_v63  ;;  %9195 = vst [vmem:[#allocation111_spill] sm:$0xff] %v6788_v41  ;;  %v6800_v18 = vmul.f32 %v6426_v14, %v9200_v2  ;;  %v6804_v20 = vmul.f32 %v6426_v14, %v9202_v9  ;;  %v9204_v63 = vld [vmem:[#allocation30_spill] sm:$0xff]  ;;  %v9206_v41 = vld [vmem:[#allocation32_spill] sm:$0xff] }
 0x31a   :  { %9197 = vst [vmem:[#allocation112_spill] sm:$0xff] %v6792_v40  ;;  %9199 = vst [vmem:[#allocation113_spill] sm:$0xff] %v6796_v23  ;;  %v6808_v51 = vmul.f32 %v6426_v14, %v9204_v63  ;;  %v6812_v24 = vmul.f32 %v6426_v14, %v9206_v41  ;;  %v9207_v40 = vld [vmem:[#allocation34_spill] sm:$0xff]  ;;  %v9209_v23 = vld [vmem:[#allocation36_spill] sm:$0xff] }
 0x31b   :  { %9201 = vst [vmem:[#allocation114_spill] sm:$0xff] %v6800_v18  ;;  %9203 = vst [vmem:[#allocation115_spill] sm:$0xff] %v6804_v20  ;;  %v6816_v34 = vmul.f32 %v6426_v14, %v9207_v40  ;;  %v6820_v2 = vmul.f32 %v6426_v14, %v9209_v23  ;;  %v9211_v18 = vld [vmem:[#allocation38_spill] sm:$0xff]  ;;  %v9213_v20 = vld [vmem:[#allocation40_spill] sm:$0xff]  ;;  %v6836_v40 = vmul.f32 %v6426_v14, %v9000_v36 }
 0x31c   :  { %9205 = vst [vmem:[#allocation116_spill] sm:$0xff] %v6808_v51  ;;  %v6824_v9 = vmul.f32 %v6426_v14, %v9211_v18  ;;  %v6828_v63 = vmul.f32 %v6426_v14, %v9213_v20  ;;  %v9215_v51 = vld [vmem:[#allocation42_spill] sm:$0xff] }
 0x31d   :  { %9208 = vst [vmem:[#allocation118_spill] sm:$0xff] %v6816_v34  ;;  %9210 = vst [vmem:[#allocation120_spill] sm:$0xff] %v6820_v2  ;;  %v6832_v41 = vmul.f32 %v6426_v14, %v9215_v51  ;;  %v9218_v34 = vld [vmem:[#allocation46_spill] sm:$0xff]  ;;  %v9220_v2 = vld [vmem:[#allocation48_spill] sm:$0xff] }
 0x31e   :  { %9212 = vst [vmem:[#allocation122_spill] sm:$0xff] %v6824_v9  ;;  %9214 = vst [vmem:[#allocation124_spill] sm:$0xff] %v6828_v63  ;;  %v6840_v23 = vmul.f32 %v6426_v14, %v9218_v34  ;;  %v6844_v18 = vmul.f32 %v6426_v14, %v9220_v2  ;;  %v9222_v9 = vld [vmem:[#allocation50_spill] sm:$0xff]  ;;  %v9224_v63 = vld [vmem:[#allocation52_spill] sm:$0xff] }
 0x31f   :  { %9216 = vst [vmem:[#allocation126_spill] sm:$0xff] %v6832_v41  ;;  %9217 = vst [vmem:[#allocation14_spill] sm:$0xff] %v6836_v40  ;;  %v6848_v20 = vmul.f32 %v6426_v14, %v9222_v9  ;;  %v6852_v51 = vmul.f32 %v6426_v14, %v9224_v63  ;;  %v9226_v41 = vld [vmem:[#allocation54_spill] sm:$0xff]  ;;  %v9228_v40 = vld [vmem:[#allocation56_spill] sm:$0xff] }
 0x320   :  { %9219 = vst [vmem:[#allocation16_spill] sm:$0xff] %v6840_v23  ;;  %9221 = vst [vmem:[#allocation18_spill] sm:$0xff] %v6844_v18  ;;  %v6856_v36 = vmul.f32 %v6426_v14, %v9226_v41  ;;  %v6860_v34 = vmul.f32 %v6426_v14, %v9228_v40  ;;  %v9230_v23 = vld [vmem:[#allocation58_spill] sm:$0xff]  ;;  %v9232_v18 = vld [vmem:[#allocation60_spill] sm:$0xff] }
 0x321   :  { %9223 = vst [vmem:[#allocation20_spill] sm:$0xff] %v6848_v20  ;;  %9225 = vst [vmem:[#allocation22_spill] sm:$0xff] %v6852_v51  ;;  %v6864_v2 = vmul.f32 %v6426_v14, %v9230_v23  ;;  %v6868_v9 = vmul.f32 %v6426_v14, %v9232_v18  ;;  %v9233_v20 = vld [vmem:[#allocation62_spill] sm:$0xff]  ;;  %v9235_v51 = vld [vmem:[#allocation64_spill] sm:$0xff] }
 0x322   :  { %9227 = vst [vmem:[#allocation24_spill] sm:$0xff] %v6856_v36  ;;  %9229 = vst [vmem:[#allocation26_spill] sm:$0xff] %v6860_v34  ;;  %v6872_v63 = vmul.f32 %v6426_v14, %v9233_v20  ;;  %v6876_v41 = vmul.f32 %v6426_v14, %v9235_v51  ;;  %v9236_v36 = vld [vmem:[#allocation66_spill] sm:$0xff]  ;;  %v9237_v34 = vld [vmem:[#allocation68_spill] sm:$0xff]  ;;  %v6892_v20 = vmul.f32 %v6426_v14, %v9014_v13 }
 0x323   :  { %9231 = vst [vmem:[#allocation28_spill] sm:$0xff] %v6864_v2  ;;  %v6880_v40 = vmul.f32 %v6426_v14, %v9236_v36  ;;  %v6884_v23 = vmul.f32 %v6426_v14, %v9237_v34  ;;  %v9238_v2 = vld [vmem:[#allocation70_spill] sm:$0xff]  ;;  %v6900_v36 = vmul.f32 %v6426_v14, %v9016_v46  ;;  %v6904_v34 = vmul.f32 %v6426_v14, %v9017_v42 }
 0x324   :  { %9234 = vst [vmem:[#allocation30_spill] sm:$0xff] %v6872_v63  ;;  %v6888_v18 = vmul.f32 %v6426_v14, %v9238_v2  ;;  %v9239_v63 = vld [vmem:[#allocation74_spill] sm:$0xff]  ;;  %v6908_v2 = vmul.f32 %v6426_v14, %v5729_v6  ;;  %v6912_v13 = vmul.f32 %v6426_v14, %v9018_v22  ;;  %v6920_v46 = vmul.f32 %v6426_v14, %v5763_v54 }
 0x325   :  { %v6896_v51 = vmul.f32 %v6426_v14, %v9239_v63  ;;  %v6916_v63 = vmul.f32 %v6426_v14, %v5753_v56  ;;  %v6924_v42 = vmul.f32 %v6426_v14, %v5773_v19  ;;  %v6928_v6 = vmul.f32 %v6426_v14, %v5783_v48 }
 0x326   :  { %v6932_v22 = vmul.f32 %v6426_v14, %v5793_v55  ;;  %v6936_v56 = vmul.f32 %v6426_v14, %v5803_v60  ;;  %v6940_v54 = vmul.f32 %v6426_v14, %v5813_v0  ;;  %v6944_v19 = vmul.f32 %v6426_v14, %v5823_v7 }
 0x327   :  { %v6948_v48 = vmul.f32 %v6426_v14, %v5833_v53  ;;  %v6952_v55 = vmul.f32 %v6426_v14, %v5843_v59  ;;  %v6956_v60 = vmul.f32 %v6426_v14, %v5853_v21  ;;  %v6960_v0 = vmul.f32 %v6426_v14, %v5863_v5 }
 0x328   :  { %v6964_v7 = vmul.f32 %v6426_v14, %v5873_v11  ;;  %v6968_v53 = vmul.f32 %v6426_v14, %v5883_v17  ;;  %v6972_v59 = vmul.f32 %v6426_v14, %v5893_v25  ;;  %v6976_v21 = vmul.f32 %v6426_v14, %v5903_v35 }
 0x329   :  { %v6980_v5 = vmul.f32 %v6426_v14, %v5913_v45  ;;  %v6984_v11 = vmul.f32 %v6426_v14, %v5923_v58  ;;  %v6988_v17 = vmul.f32 %v6426_v14, %v5933_v10  ;;  %v6992_v25 = vmul.f32 %v6426_v14, %v5943_v27 }
 0x32a   :  { %v6996_v35 = vmul.f32 %v6426_v14, %v5953_v43  ;;  %v7000_v45 = vmul.f32 %v6426_v14, %v5963_v1  ;;  %v7004_v58 = vmul.f32 %v6426_v14, %v5973_v29  ;;  %v7008_v10 = vmul.f32 %v6426_v14, %v5983_v61 }
 0x32b   :  { %v7012_v27 = vmul.f32 %v6426_v14, %v5993_v39  ;;  %v7016_v43 = vmul.f32 %v6426_v14, %v6003_v33  ;;  %v7020_v1 = vmul.f32 %v6426_v14, %v6013_v37  ;;  %v7024_v29 = vmul.f32 %v6426_v14, %v6023_v4 }
 0x32c   :  { %v7028_v61 = vmul.f32 %v6426_v14, %v6033_v44  ;;  %v7032_v39 = vmul.f32 %v6426_v14, %v6043_v28  ;;  %v7036_v33 = vmul.f32 %v6426_v14, %v6053_v57  ;;  %v7040_v37 = vmul.f32 %v6426_v14, %v6063_v62 }
 0x32d   :  { %v7044_v4 = vmul.f32 %v6426_v14, %v6073_v50  ;;  %v7048_v44 = vmul.f32 %v6426_v14, %v6083_v38 }
 0x32e   :  { %9240 = vst [vmem:[#allocation32_spill] sm:$0xff] %v7028_v61  ;;  %9241 = vst [vmem:[#allocation34_spill] sm:$0xff] %v7032_v39  ;;  %v9246_v61 = vld [vmem:[#allocation117_spill] sm:$0xff]  ;;  %v9248_v39 = vld [vmem:[#allocation119_spill] sm:$0xff] }
 0x32f   :  { %9242 = vst [vmem:[#allocation36_spill] sm:$0xff] %v7036_v33  ;;  %9243 = vst [vmem:[#allocation38_spill] sm:$0xff] %v7040_v37  ;;  %v7052_v28 = vmul.f32 %v6426_v14, %v9246_v61  ;;  %v7056_v57 = vmul.f32 %v6426_v14, %v9248_v39  ;;  %v9250_v33 = vld [vmem:[#allocation121_spill] sm:$0xff]  ;;  %v9252_v37 = vld [vmem:[#allocation123_spill] sm:$0xff] }
 0x330   :  { %9244 = vst [vmem:[#allocation40_spill] sm:$0xff] %v7044_v4  ;;  %9245 = vst [vmem:[#allocation42_spill] sm:$0xff] %v7048_v44  ;;  %v7060_v62 = vmul.f32 %v6426_v14, %v9250_v33  ;;  %v7064_v50 = vmul.f32 %v6426_v14, %v9252_v37  ;;  %v9254_v4 = vld [vmem:[#allocation125_spill] sm:$0xff]  ;;  %v9256_v44 = vld [vmem:[#allocation127_spill] sm:$0xff] }
 0x331   :  { %9247 = vst [vmem:[#allocation46_spill] sm:$0xff] %v7052_v28  ;;  %9249 = vst [vmem:[#allocation48_spill] sm:$0xff] %v7056_v57  ;;  %v7068_v38 = vmul.f32 %v6426_v14, %v9254_v4  ;;  %v7072_v61 = vmul.f32 %v6426_v14, %v9256_v44  ;;  %v9258_v28 = vld [vmem:[#allocation128_spill] sm:$0xff]  ;;  %v9260_v57 = vld [vmem:[#allocation129_spill] sm:$0xff]  ;;  %v9266_v44 = vsub.f32 %v6420_v52, %v6422_v30 }
 0x332   :  { %9251 = vst [vmem:[#allocation50_spill] sm:$0xff] %v7060_v62  ;;  %9253 = vst [vmem:[#allocation52_spill] sm:$0xff] %v7064_v50  ;;  %v7076_v39 = vmul.f32 %v6426_v14, %v9258_v28  ;;  %v7080_v33 = vmul.f32 %v6426_v14, %v9260_v57  ;;  %v9262_v62 = vld [vmem:[#allocation130_spill] sm:$0xff]  ;;  %v9264_v50 = vld [vmem:[#allocation131_spill] sm:$0xff] }
 0x333   :  { %9255 = vst [vmem:[#allocation54_spill] sm:$0xff] %v7068_v38  ;;  %9257 = vst [vmem:[#allocation56_spill] sm:$0xff] %v7072_v61  ;;  %v7084_v37 = vmul.f32 %v6426_v14, %v9262_v62  ;;  %v7088_v4 = vmul.f32 %v6426_v14, %v9264_v50  ;;  %v9265_v38 = vsub.s32 0, %v6411_v8  ;;  %v9267_v28 = vld [vmem:[#allocation132_spill] sm:$0xff]  ;;  %v9268_v57 = vld [vmem:[#allocation133_spill] sm:$0xff]  ;;  %v7111_v8 = vmul.f32 %v6426_v14, %v9023_v47 }
 0x334   :  { %9259 = vst [vmem:[#allocation58_spill] sm:$0xff] %v7076_v39  ;;  %9261 = vst [vmem:[#allocation60_spill] sm:$0xff] %v7080_v33  ;;  %v7099_v39 = vmul.f32 %v6426_v14, %v9267_v28  ;;  %v7103_v33 = vmul.f32 %v6426_v14, %v9268_v57  ;;  %v9269_v62 = vld [vmem:[#allocation134_spill] sm:$0xff]  ;;  %v9282_v28 = vld [vmem:[#allocation76_spill] sm:$0xff] }
 0x335   :  { %9263 = vst [vmem:[#allocation62_spill] sm:$0xff] %v7084_v37  ;;  %v7095_v61 = vrot.slane %v9266_v44, %v9265_v38  ;;  %v7107_v37 = vmul.f32 %v6426_v14, %v9269_v62  ;;  %v9280_v44 = vld [vmem:[#allocation72_spill] sm:$0xff]  ;;  %v9284_v57 = vld [vmem:[#allocation78_spill] sm:$0xff]  ;;  %v9286_v62 = vld [vmem:[#allocation81_spill] sm:$0xff] }
 0x337   :  { %v7115_v52 = vadd.f32 %v7095_v61, %v6432_v31  ;;  %v7119_v30 = vadd.f32 %v7095_v61, %v6436_v3  ;;  %v7123_v50 = vadd.f32 %v7095_v61, %v6440_v26  ;;  %v7127_v38 = vadd.f32 %v7095_v61, %v6444_v12  ;;  %v9278_v26 = vld [vmem:[#allocation44_spill] sm:$0xff] }
 0x338   :  { %v7131_v47 = vadd.f32 %v7095_v61, %v6448_v32  ;;  %v7135_v14 = vadd.f32 %v7095_v61, %v6452_v15  ;;  %v7139_v31 = vadd.f32 %v7095_v61, %v6456_v49  ;;  %v7143_v3 = vadd.f32 %v7095_v61, %v6460_v16 }
 0x339   :  { %9270 = vst [vmem:[#allocation64_spill] sm:$0xff] %v7115_v52  ;;  %9271 = vst [vmem:[#allocation66_spill] sm:$0xff] %v7119_v30  ;;  %v7147_v12 = vadd.f32 %v7095_v61, %v9278_v26  ;;  %v7151_v32 = vadd.f32 %v7095_v61, %v9280_v44  ;;  %v7155_v15 = vadd.f32 %v7095_v61, %v9282_v28 }
 0x33a   :  { %9272 = vst [vmem:[#allocation68_spill] sm:$0xff] %v7123_v50  ;;  %9273 = vst [vmem:[#allocation70_spill] sm:$0xff] %v7127_v38  ;;  %v7159_v49 = vadd.f32 %v7095_v61, %v9284_v57  ;;  %v7163_v16 = vadd.f32 %v7095_v61, %v9286_v62 }
 0x33b   :  { %9274 = vst [vmem:[#allocation74_spill] sm:$0xff] %v7131_v47  ;;  %9275 = vst [vmem:[#allocation117_spill] sm:$0xff] %v7135_v14 }
 0x33c   :  { %9276 = vst [vmem:[#allocation119_spill] sm:$0xff] %v7139_v31  ;;  %9277 = vst [vmem:[#allocation121_spill] sm:$0xff] %v7143_v3  ;;  %v9288_v3 = vld [vmem:[#allocation135_spill] sm:$0xff] }
 0x33d   :  { %9279 = vst [vmem:[#allocation123_spill] sm:$0xff] %v7147_v12  ;;  %9281 = vst [vmem:[#allocation125_spill] sm:$0xff] %v7151_v32  ;;  %v7167_v26 = vadd.f32 %v7095_v61, %v9288_v3  ;;  %v9290_v12 = vld [vmem:[#allocation2_spill] sm:$0xff]  ;;  %v9292_v32 = vld [vmem:[#allocation3_spill] sm:$0xff] }
 0x33e   :  { %9283 = vst [vmem:[#allocation127_spill] sm:$0xff] %v7155_v15  ;;  %9285 = vst [vmem:[#allocation128_spill] sm:$0xff] %v7159_v49  ;;  %v7171_v44 = vadd.f32 %v7095_v61, %v9290_v12  ;;  %v7175_v28 = vadd.f32 %v7095_v61, %v9292_v32  ;;  %v9294_v15 = vld [vmem:[#allocation4_spill] sm:$0xff]  ;;  %v9296_v49 = vld [vmem:[#allocation5_spill] sm:$0xff] }
 0x33f   :  { %9287 = vst [vmem:[#allocation129_spill] sm:$0xff] %v7163_v16  ;;  %9289 = vst [vmem:[#allocation130_spill] sm:$0xff] %v7167_v26  ;;  %v7179_v57 = vadd.f32 %v7095_v61, %v9294_v15  ;;  %v7183_v62 = vadd.f32 %v7095_v61, %v9296_v49  ;;  %v9298_v16 = vld [vmem:[#allocation6_spill] sm:$0xff]  ;;  %v9300_v26 = vld [vmem:[#allocation7_spill] sm:$0xff] }
 0x340   :  { %9291 = vst [vmem:[#allocation131_spill] sm:$0xff] %v7171_v44  ;;  %9293 = vst [vmem:[#allocation132_spill] sm:$0xff] %v7175_v28  ;;  %v7187_v3 = vadd.f32 %v7095_v61, %v9298_v16  ;;  %v7191_v12 = vadd.f32 %v7095_v61, %v9300_v26  ;;  %v9302_v44 = vld [vmem:[#allocation8_spill] sm:$0xff]  ;;  %v9304_v28 = vld [vmem:[#allocation9_spill] sm:$0xff] }
 0x341   :  { %9295 = vst [vmem:[#allocation133_spill] sm:$0xff] %v7179_v57  ;;  %9297 = vst [vmem:[#allocation134_spill] sm:$0xff] %v7183_v62  ;;  %v7195_v32 = vadd.f32 %v7095_v61, %v9302_v44  ;;  %v7199_v15 = vadd.f32 %v7095_v61, %v9304_v28  ;;  %v9306_v57 = vld [vmem:[#allocation10_spill] sm:$0xff]  ;;  %v9308_v62 = vld [vmem:[#allocation11_spill] sm:$0xff] }
 0x342   :  { %9299 = vst [vmem:[#allocation44_spill] sm:$0xff] %v7187_v3  ;;  %9301 = vst [vmem:[#allocation72_spill] sm:$0xff] %v7191_v12  ;;  %v7203_v49 = vadd.f32 %v7095_v61, %v9306_v57  ;;  %v7207_v16 = vadd.f32 %v7095_v61, %v9308_v62  ;;  %v9310_v3 = vld [vmem:[#allocation12_spill] sm:$0xff]  ;;  %v9312_v12 = vld [vmem:[#allocation13_spill] sm:$0xff] }
 0x343   :  { %9303 = vst [vmem:[#allocation76_spill] sm:$0xff] %v7195_v32  ;;  %9305 = vst [vmem:[#allocation78_spill] sm:$0xff] %v7199_v15  ;;  %v7211_v26 = vadd.f32 %v7095_v61, %v9310_v3  ;;  %v7215_v44 = vadd.f32 %v7095_v61, %v9312_v12  ;;  %v9314_v32 = vld [vmem:[#allocation15_spill] sm:$0xff]  ;;  %v9316_v15 = vld [vmem:[#allocation17_spill] sm:$0xff] }
 0x344   :  { %9307 = vst [vmem:[#allocation81_spill] sm:$0xff] %v7203_v49  ;;  %9309 = vst [vmem:[#allocation135_spill] sm:$0xff] %v7207_v16  ;;  %v7219_v28 = vadd.f32 %v7095_v61, %v9314_v32  ;;  %v7223_v57 = vadd.f32 %v7095_v61, %v9316_v15  ;;  %v9318_v49 = vld [vmem:[#allocation19_spill] sm:$0xff]  ;;  %v9320_v16 = vld [vmem:[#allocation21_spill] sm:$0xff] }
 0x345   :  { %9311 = vst [vmem:[#allocation2_spill] sm:$0xff] %v7211_v26  ;;  %9313 = vst [vmem:[#allocation3_spill] sm:$0xff] %v7215_v44  ;;  %v7227_v62 = vadd.f32 %v7095_v61, %v9318_v49  ;;  %v7231_v3 = vadd.f32 %v7095_v61, %v9320_v16  ;;  %v9322_v26 = vld [vmem:[#allocation23_spill] sm:$0xff]  ;;  %v9324_v44 = vld [vmem:[#allocation25_spill] sm:$0xff] }
 0x346   :  { %9315 = vst [vmem:[#allocation4_spill] sm:$0xff] %v7219_v28  ;;  %9317 = vst [vmem:[#allocation5_spill] sm:$0xff] %v7223_v57  ;;  %v7235_v12 = vadd.f32 %v7095_v61, %v9322_v26  ;;  %v7239_v32 = vadd.f32 %v7095_v61, %v9324_v44  ;;  %v9326_v28 = vld [vmem:[#allocation27_spill] sm:$0xff]  ;;  %v9328_v57 = vld [vmem:[#allocation29_spill] sm:$0xff] }
 0x347   :  { %9319 = vst [vmem:[#allocation6_spill] sm:$0xff] %v7227_v62  ;;  %9321 = vst [vmem:[#allocation7_spill] sm:$0xff] %v7231_v3  ;;  %v7243_v15 = vadd.f32 %v7095_v61, %v9326_v28  ;;  %v7247_v49 = vadd.f32 %v7095_v61, %v9328_v57  ;;  %v9330_v62 = vld [vmem:[#allocation31_spill] sm:$0xff]  ;;  %v9332_v3 = vld [vmem:[#allocation33_spill] sm:$0xff] }
 0x348   :  { %9323 = vst [vmem:[#allocation8_spill] sm:$0xff] %v7235_v12  ;;  %9325 = vst [vmem:[#allocation9_spill] sm:$0xff] %v7239_v32  ;;  %v7251_v16 = vadd.f32 %v7095_v61, %v9330_v62  ;;  %v7255_v26 = vadd.f32 %v7095_v61, %v9332_v3  ;;  %v9334_v12 = vld [vmem:[#allocation35_spill] sm:$0xff]  ;;  %v9336_v32 = vld [vmem:[#allocation37_spill] sm:$0xff] }
 0x349   :  { %9327 = vst [vmem:[#allocation10_spill] sm:$0xff] %v7243_v15  ;;  %9329 = vst [vmem:[#allocation11_spill] sm:$0xff] %v7247_v49  ;;  %v7259_v44 = vadd.f32 %v7095_v61, %v9334_v12  ;;  %v7263_v28 = vadd.f32 %v7095_v61, %v9336_v32  ;;  %v9338_v15 = vld [vmem:[#allocation39_spill] sm:$0xff]  ;;  %v9340_v49 = vld [vmem:[#allocation41_spill] sm:$0xff] }
 0x34a   :  { %9331 = vst [vmem:[#allocation12_spill] sm:$0xff] %v7251_v16  ;;  %9333 = vst [vmem:[#allocation13_spill] sm:$0xff] %v7255_v26  ;;  %v7267_v57 = vadd.f32 %v7095_v61, %v9338_v15  ;;  %v7271_v62 = vadd.f32 %v7095_v61, %v9340_v49  ;;  %v9342_v16 = vld [vmem:[#allocation43_spill] sm:$0xff]  ;;  %v9344_v26 = vld [vmem:[#allocation45_spill] sm:$0xff] }
 0x34b   :  { %9335 = vst [vmem:[#allocation15_spill] sm:$0xff] %v7259_v44  ;;  %9337 = vst [vmem:[#allocation17_spill] sm:$0xff] %v7263_v28  ;;  %v7275_v3 = vadd.f32 %v7095_v61, %v9342_v16  ;;  %v7279_v12 = vadd.f32 %v7095_v61, %v9344_v26  ;;  %v9346_v44 = vld [vmem:[#allocation47_spill] sm:$0xff]  ;;  %v9348_v28 = vld [vmem:[#allocation49_spill] sm:$0xff] }
 0x34c   :  { %9339 = vst [vmem:[#allocation19_spill] sm:$0xff] %v7267_v57  ;;  %9341 = vst [vmem:[#allocation21_spill] sm:$0xff] %v7271_v62  ;;  %v7283_v32 = vadd.f32 %v7095_v61, %v9346_v44  ;;  %v7287_v15 = vadd.f32 %v7095_v61, %v9348_v28  ;;  %v9350_v57 = vld [vmem:[#allocation51_spill] sm:$0xff]  ;;  %v9352_v62 = vld [vmem:[#allocation53_spill] sm:$0xff] }
 0x34d   :  { %9343 = vst [vmem:[#allocation23_spill] sm:$0xff] %v7275_v3  ;;  %9345 = vst [vmem:[#allocation25_spill] sm:$0xff] %v7279_v12  ;;  %v7291_v49 = vadd.f32 %v7095_v61, %v9350_v57  ;;  %v7295_v16 = vadd.f32 %v7095_v61, %v9352_v62  ;;  %v9354_v3 = vld [vmem:[#allocation55_spill] sm:$0xff]  ;;  %v9356_v12 = vld [vmem:[#allocation57_spill] sm:$0xff] }
 0x34e   :  { %9347 = vst [vmem:[#allocation27_spill] sm:$0xff] %v7283_v32  ;;  %9349 = vst [vmem:[#allocation29_spill] sm:$0xff] %v7287_v15  ;;  %v7299_v26 = vadd.f32 %v7095_v61, %v9354_v3  ;;  %v7303_v44 = vadd.f32 %v7095_v61, %v9356_v12  ;;  %v9358_v32 = vld [vmem:[#allocation59_spill] sm:$0xff]  ;;  %v9360_v15 = vld [vmem:[#allocation61_spill] sm:$0xff] }
 0x34f   :  { %9351 = vst [vmem:[#allocation31_spill] sm:$0xff] %v7291_v49  ;;  %9353 = vst [vmem:[#allocation33_spill] sm:$0xff] %v7295_v16  ;;  %v7307_v28 = vadd.f32 %v7095_v61, %v9358_v32  ;;  %v7311_v57 = vadd.f32 %v7095_v61, %v9360_v15  ;;  %v9362_v49 = vld [vmem:[#allocation63_spill] sm:$0xff]  ;;  %v9364_v16 = vld [vmem:[#allocation65_spill] sm:$0xff] }
 0x350   :  { %9355 = vst [vmem:[#allocation35_spill] sm:$0xff] %v7299_v26  ;;  %9357 = vst [vmem:[#allocation37_spill] sm:$0xff] %v7303_v44  ;;  %v7315_v62 = vadd.f32 %v7095_v61, %v9362_v49  ;;  %v7319_v3 = vadd.f32 %v7095_v61, %v9364_v16  ;;  %v9366_v26 = vld [vmem:[#allocation67_spill] sm:$0xff]  ;;  %v9368_v44 = vld [vmem:[#allocation69_spill] sm:$0xff] }
 0x351   :  { %9359 = vst [vmem:[#allocation39_spill] sm:$0xff] %v7307_v28  ;;  %9361 = vst [vmem:[#allocation41_spill] sm:$0xff] %v7311_v57  ;;  %v7323_v12 = vadd.f32 %v7095_v61, %v9366_v26  ;;  %v7327_v32 = vadd.f32 %v7095_v61, %v9368_v44  ;;  %v9370_v28 = vld [vmem:[#allocation71_spill] sm:$0xff]  ;;  %v9372_v57 = vld [vmem:[#allocation73_spill] sm:$0xff] }
 0x352   :  { %9363 = vst [vmem:[#allocation43_spill] sm:$0xff] %v7315_v62  ;;  %9365 = vst [vmem:[#allocation45_spill] sm:$0xff] %v7319_v3  ;;  %v7331_v15 = vadd.f32 %v7095_v61, %v9370_v28  ;;  %v7335_v49 = vadd.f32 %v7095_v61, %v9372_v57  ;;  %v9374_v62 = vld [vmem:[#allocation75_spill] sm:$0xff]  ;;  %v9376_v3 = vld [vmem:[#allocation77_spill] sm:$0xff] }
 0x353   :  { %9367 = vst [vmem:[#allocation47_spill] sm:$0xff] %v7323_v12  ;;  %9369 = vst [vmem:[#allocation49_spill] sm:$0xff] %v7327_v32  ;;  %v7339_v16 = vadd.f32 %v7095_v61, %v9374_v62  ;;  %v7343_v26 = vadd.f32 %v7095_v61, %v9376_v3  ;;  %v9378_v12 = vld [vmem:[#allocation79_spill] sm:$0xff]  ;;  %v9380_v32 = vld [vmem:[#allocation80_spill] sm:$0xff] }
 0x354   :  { %9371 = vst [vmem:[#allocation51_spill] sm:$0xff] %v7331_v15  ;;  %9373 = vst [vmem:[#allocation53_spill] sm:$0xff] %v7335_v49  ;;  %v7347_v44 = vadd.f32 %v7095_v61, %v9378_v12  ;;  %v7351_v28 = vadd.f32 %v7095_v61, %v9380_v32  ;;  %v9382_v15 = vld [vmem:[#allocation82_spill] sm:$0xff]  ;;  %v9384_v49 = vld [vmem:[#allocation83_spill] sm:$0xff] }
 0x355   :  { %9375 = vst [vmem:[#allocation55_spill] sm:$0xff] %v7339_v16  ;;  %9377 = vst [vmem:[#allocation57_spill] sm:$0xff] %v7343_v26  ;;  %v7355_v57 = vadd.f32 %v7095_v61, %v9382_v15  ;;  %v7359_v62 = vadd.f32 %v7095_v61, %v9384_v49  ;;  %v9386_v16 = vld [vmem:[#allocation84_spill] sm:$0xff]  ;;  %v9388_v26 = vld [vmem:[#allocation85_spill] sm:$0xff] }
 0x356   :  { %9379 = vst [vmem:[#allocation59_spill] sm:$0xff] %v7347_v44  ;;  %9381 = vst [vmem:[#allocation61_spill] sm:$0xff] %v7351_v28  ;;  %v7363_v3 = vadd.f32 %v7095_v61, %v9386_v16  ;;  %v7367_v12 = vadd.f32 %v7095_v61, %v9388_v26  ;;  %v9390_v44 = vld [vmem:[#allocation86_spill] sm:$0xff]  ;;  %v9392_v28 = vld [vmem:[#allocation87_spill] sm:$0xff] }
 0x357   :  { %9383 = vst [vmem:[#allocation63_spill] sm:$0xff] %v7355_v57  ;;  %9385 = vst [vmem:[#allocation65_spill] sm:$0xff] %v7359_v62  ;;  %v7371_v32 = vadd.f32 %v7095_v61, %v9390_v44  ;;  %v7375_v15 = vadd.f32 %v7095_v61, %v9392_v28  ;;  %v9394_v57 = vld [vmem:[#allocation88_spill] sm:$0xff]  ;;  %v9396_v62 = vld [vmem:[#allocation89_spill] sm:$0xff] }
 0x358   :  { %9387 = vst [vmem:[#allocation67_spill] sm:$0xff] %v7363_v3  ;;  %9389 = vst [vmem:[#allocation69_spill] sm:$0xff] %v7367_v12  ;;  %v7379_v49 = vadd.f32 %v7095_v61, %v9394_v57  ;;  %v7383_v16 = vadd.f32 %v7095_v61, %v9396_v62  ;;  %v9398_v3 = vld [vmem:[#allocation90_spill] sm:$0xff]  ;;  %v9400_v12 = vld [vmem:[#allocation91_spill] sm:$0xff] }
 0x359   :  { %9391 = vst [vmem:[#allocation71_spill] sm:$0xff] %v7371_v32  ;;  %9393 = vst [vmem:[#allocation73_spill] sm:$0xff] %v7375_v15  ;;  %v7387_v26 = vadd.f32 %v7095_v61, %v9398_v3  ;;  %v7391_v44 = vadd.f32 %v7095_v61, %v9400_v12  ;;  %v9402_v32 = vld [vmem:[#allocation92_spill] sm:$0xff]  ;;  %v9404_v15 = vld [vmem:[#allocation93_spill] sm:$0xff] }
 0x35a   :  { %9395 = vst [vmem:[#allocation75_spill] sm:$0xff] %v7379_v49  ;;  %9397 = vst [vmem:[#allocation77_spill] sm:$0xff] %v7383_v16  ;;  %v7395_v28 = vadd.f32 %v7095_v61, %v9402_v32  ;;  %v7399_v57 = vadd.f32 %v7095_v61, %v9404_v15  ;;  %v9406_v49 = vld [vmem:[#allocation94_spill] sm:$0xff]  ;;  %v9408_v16 = vld [vmem:[#allocation95_spill] sm:$0xff] }
 0x35b   :  { %9399 = vst [vmem:[#allocation79_spill] sm:$0xff] %v7387_v26  ;;  %9401 = vst [vmem:[#allocation80_spill] sm:$0xff] %v7391_v44  ;;  %v7403_v62 = vadd.f32 %v7095_v61, %v9406_v49  ;;  %v7407_v3 = vadd.f32 %v7095_v61, %v9408_v16  ;;  %v9410_v26 = vld [vmem:[#allocation96_spill] sm:$0xff]  ;;  %v9412_v44 = vld [vmem:[#allocation97_spill] sm:$0xff] }
 0x35c   :  { %9403 = vst [vmem:[#allocation82_spill] sm:$0xff] %v7395_v28  ;;  %9405 = vst [vmem:[#allocation83_spill] sm:$0xff] %v7399_v57  ;;  %v7411_v12 = vadd.f32 %v7095_v61, %v9410_v26  ;;  %v7415_v32 = vadd.f32 %v7095_v61, %v9412_v44  ;;  %v9414_v28 = vld [vmem:[#allocation98_spill] sm:$0xff]  ;;  %v9416_v57 = vld [vmem:[#allocation99_spill] sm:$0xff] }
 0x35d   :  { %9407 = vst [vmem:[#allocation84_spill] sm:$0xff] %v7403_v62  ;;  %9409 = vst [vmem:[#allocation85_spill] sm:$0xff] %v7407_v3  ;;  %v7419_v15 = vadd.f32 %v7095_v61, %v9414_v28  ;;  %v7423_v49 = vadd.f32 %v7095_v61, %v9416_v57  ;;  %v9418_v62 = vld [vmem:[#allocation100_spill] sm:$0xff]  ;;  %v9420_v3 = vld [vmem:[#allocation101_spill] sm:$0xff] }
 0x35e   :  { %9411 = vst [vmem:[#allocation86_spill] sm:$0xff] %v7411_v12  ;;  %9413 = vst [vmem:[#allocation87_spill] sm:$0xff] %v7415_v32  ;;  %v7427_v16 = vadd.f32 %v7095_v61, %v9418_v62  ;;  %v7431_v26 = vadd.f32 %v7095_v61, %v9420_v3  ;;  %v9422_v12 = vld [vmem:[#allocation102_spill] sm:$0xff]  ;;  %v9424_v32 = vld [vmem:[#allocation103_spill] sm:$0xff] }
 0x35f   :  { %9415 = vst [vmem:[#allocation88_spill] sm:$0xff] %v7419_v15  ;;  %9417 = vst [vmem:[#allocation89_spill] sm:$0xff] %v7423_v49  ;;  %v7435_v44 = vadd.f32 %v7095_v61, %v9422_v12  ;;  %v7439_v28 = vadd.f32 %v7095_v61, %v9424_v32  ;;  %v9426_v15 = vld [vmem:[#allocation104_spill] sm:$0xff]  ;;  %v9428_v49 = vld [vmem:[#allocation105_spill] sm:$0xff] }
 0x360   :  { %9419 = vst [vmem:[#allocation90_spill] sm:$0xff] %v7427_v16  ;;  %9421 = vst [vmem:[#allocation91_spill] sm:$0xff] %v7431_v26  ;;  %v7443_v57 = vadd.f32 %v7095_v61, %v9426_v15  ;;  %v7447_v62 = vadd.f32 %v7095_v61, %v9428_v49  ;;  %v9430_v16 = vld [vmem:[#allocation106_spill] sm:$0xff]  ;;  %v9432_v26 = vld [vmem:[#allocation107_spill] sm:$0xff] }
 0x361   :  { %9423 = vst [vmem:[#allocation92_spill] sm:$0xff] %v7435_v44  ;;  %9425 = vst [vmem:[#allocation93_spill] sm:$0xff] %v7439_v28  ;;  %v7451_v3 = vadd.f32 %v7095_v61, %v9430_v16  ;;  %v7455_v12 = vadd.f32 %v7095_v61, %v9432_v26  ;;  %v9434_v44 = vld [vmem:[#allocation108_spill] sm:$0xff]  ;;  %v9436_v28 = vld [vmem:[#allocation109_spill] sm:$0xff] }
 0x362   :  { %9427 = vst [vmem:[#allocation94_spill] sm:$0xff] %v7443_v57  ;;  %9429 = vst [vmem:[#allocation95_spill] sm:$0xff] %v7447_v62  ;;  %v7459_v32 = vadd.f32 %v7095_v61, %v9434_v44  ;;  %v7463_v15 = vadd.f32 %v7095_v61, %v9436_v28  ;;  %v9438_v57 = vld [vmem:[#allocation110_spill] sm:$0xff]  ;;  %v9440_v62 = vld [vmem:[#allocation111_spill] sm:$0xff] }
 0x363   :  { %9431 = vst [vmem:[#allocation96_spill] sm:$0xff] %v7451_v3  ;;  %9433 = vst [vmem:[#allocation97_spill] sm:$0xff] %v7455_v12  ;;  %v7467_v49 = vadd.f32 %v7095_v61, %v9438_v57  ;;  %v7471_v16 = vadd.f32 %v7095_v61, %v9440_v62  ;;  %v9442_v3 = vld [vmem:[#allocation112_spill] sm:$0xff]  ;;  %v9444_v12 = vld [vmem:[#allocation113_spill] sm:$0xff] }
 0x364   :  { %9435 = vst [vmem:[#allocation98_spill] sm:$0xff] %v7459_v32  ;;  %9437 = vst [vmem:[#allocation99_spill] sm:$0xff] %v7463_v15  ;;  %v7475_v26 = vadd.f32 %v7095_v61, %v9442_v3  ;;  %v7479_v44 = vadd.f32 %v7095_v61, %v9444_v12  ;;  %v9446_v32 = vld [vmem:[#allocation114_spill] sm:$0xff]  ;;  %v9448_v15 = vld [vmem:[#allocation115_spill] sm:$0xff]  ;;  %v7495_v3 = vadd.f32 %v7095_v61, %v6812_v24 }
 0x365   :  { %9439 = vst [vmem:[#allocation100_spill] sm:$0xff] %v7467_v49  ;;  %9441 = vst [vmem:[#allocation101_spill] sm:$0xff] %v7471_v16  ;;  %v7483_v28 = vadd.f32 %v7095_v61, %v9446_v32  ;;  %v7487_v57 = vadd.f32 %v7095_v61, %v9448_v15  ;;  %v9450_v49 = vld [vmem:[#allocation116_spill] sm:$0xff] }
 0x366   :  { %9443 = vst [vmem:[#allocation102_spill] sm:$0xff] %v7475_v26  ;;  %9445 = vst [vmem:[#allocation103_spill] sm:$0xff] %v7479_v44  ;;  %v7491_v62 = vadd.f32 %v7095_v61, %v9450_v49  ;;  %v9453_v26 = vld [vmem:[#allocation118_spill] sm:$0xff]  ;;  %v9455_v44 = vld [vmem:[#allocation120_spill] sm:$0xff] }
 0x367   :  { %9447 = vst [vmem:[#allocation104_spill] sm:$0xff] %v7483_v28  ;;  %9449 = vst [vmem:[#allocation105_spill] sm:$0xff] %v7487_v57  ;;  %v7499_v12 = vadd.f32 %v7095_v61, %v9453_v26  ;;  %v7503_v32 = vadd.f32 %v7095_v61, %v9455_v44  ;;  %v9457_v28 = vld [vmem:[#allocation122_spill] sm:$0xff]  ;;  %v9459_v57 = vld [vmem:[#allocation124_spill] sm:$0xff] }
 0x368   :  { %9451 = vst [vmem:[#allocation106_spill] sm:$0xff] %v7491_v62  ;;  %9452 = vst [vmem:[#allocation107_spill] sm:$0xff] %v7495_v3  ;;  %v7507_v15 = vadd.f32 %v7095_v61, %v9457_v28  ;;  %v7511_v49 = vadd.f32 %v7095_v61, %v9459_v57  ;;  %v9461_v62 = vld [vmem:[#allocation126_spill] sm:$0xff] }
 0x369   :  { %9454 = vst [vmem:[#allocation108_spill] sm:$0xff] %v7499_v12  ;;  %9456 = vst [vmem:[#allocation109_spill] sm:$0xff] %v7503_v32  ;;  %v7515_v24 = vadd.f32 %v7095_v61, %v9461_v62  ;;  %v9463_v3 = vld [vmem:[#allocation14_spill] sm:$0xff]  ;;  %v9465_v12 = vld [vmem:[#allocation16_spill] sm:$0xff] }
 0x36a   :  { %9458 = vst [vmem:[#allocation110_spill] sm:$0xff] %v7507_v15  ;;  %9460 = vst [vmem:[#allocation111_spill] sm:$0xff] %v7511_v49  ;;  %v7519_v26 = vadd.f32 %v7095_v61, %v9463_v3  ;;  %v7523_v44 = vadd.f32 %v7095_v61, %v9465_v12  ;;  %v9467_v32 = vld [vmem:[#allocation18_spill] sm:$0xff]  ;;  %v9468_v15 = vld [vmem:[#allocation20_spill] sm:$0xff] }
 0x36b   :  { %9462 = vst [vmem:[#allocation112_spill] sm:$0xff] %v7515_v24  ;;  %v7527_v28 = vadd.f32 %v7095_v61, %v9467_v32  ;;  %v7531_v57 = vadd.f32 %v7095_v61, %v9468_v15  ;;  %v9470_v49 = vld [vmem:[#allocation22_spill] sm:$0xff]  ;;  %v9471_v24 = vld [vmem:[#allocation24_spill] sm:$0xff]  ;;  %v7551_v15 = vadd.f32 %v7095_v61, %v6868_v9  ;;  %v7571_v9 = vadd.f32 %v7095_v61, %v6888_v18 }
 0x36c   :  { %9464 = vst [vmem:[#allocation113_spill] sm:$0xff] %v7519_v26  ;;  %9466 = vst [vmem:[#allocation114_spill] sm:$0xff] %v7523_v44  ;;  %v7535_v62 = vadd.f32 %v7095_v61, %v9470_v49  ;;  %v7539_v3 = vadd.f32 %v7095_v61, %v9471_v24  ;;  %v9472_v26 = vld [vmem:[#allocation26_spill] sm:$0xff]  ;;  %v9473_v44 = vld [vmem:[#allocation28_spill] sm:$0xff]  ;;  %v7559_v24 = vadd.f32 %v7095_v61, %v6876_v41 }
 0x36d   :  { %9469 = vst [vmem:[#allocation115_spill] sm:$0xff] %v7531_v57  ;;  %v7543_v12 = vadd.f32 %v7095_v61, %v9472_v26  ;;  %v7547_v32 = vadd.f32 %v7095_v61, %v9473_v44  ;;  %v9474_v57 = vld [vmem:[#allocation30_spill] sm:$0xff]  ;;  %v7563_v26 = vadd.f32 %v7095_v61, %v6880_v40  ;;  %v7567_v44 = vadd.f32 %v7095_v61, %v6884_v23 }
 0x36e   :  { %v7555_v49 = vadd.f32 %v7095_v61, %v9474_v57  ;;  %v7575_v57 = vadd.f32 %v7095_v61, %v6892_v20  ;;  %v7579_v41 = vadd.f32 %v7095_v61, %v6896_v51  ;;  %v7583_v40 = vadd.f32 %v7095_v61, %v6900_v36  ;;  %v9599_v30 = vld [vmem:[#allocation90_spill] sm:$0xff]  ;;  %v9612_v47 = vld [vmem:[#allocation104_spill] sm:$0xff] }
 0x36f   :  { %v7587_v23 = vadd.f32 %v7095_v61, %v6904_v34  ;;  %v7591_v18 = vadd.f32 %v7095_v61, %v6908_v2  ;;  %v7595_v20 = vadd.f32 %v7095_v61, %v6912_v13  ;;  %v7599_v51 = vadd.f32 %v7095_v61, %v6916_v63  ;;  %v9614_v31 = vld [vmem:[#allocation106_spill] sm:$0xff] }
 0x370   :  { %v7603_v36 = vadd.f32 %v7095_v61, %v6920_v46  ;;  %v7607_v34 = vadd.f32 %v7095_v61, %v6924_v42  ;;  %v7611_v2 = vadd.f32 %v7095_v61, %v6928_v6  ;;  %v7615_v13 = vadd.f32 %v7095_v61, %v6932_v22 }
 0x371   :  { %v7619_v63 = vadd.f32 %v7095_v61, %v6936_v56  ;;  %v7623_v46 = vadd.f32 %v7095_v61, %v6940_v54  ;;  %v7627_v42 = vadd.f32 %v7095_v61, %v6944_v19  ;;  %v7631_v6 = vadd.f32 %v7095_v61, %v6948_v48  ;;  %v9619_v52 = vld [vmem:[#allocation111_spill] sm:$0xff] }
 0x372   :  { %v7635_v22 = vadd.f32 %v7095_v61, %v6952_v55  ;;  %v7639_v56 = vadd.f32 %v7095_v61, %v6956_v60  ;;  %v7643_v54 = vadd.f32 %v7095_v61, %v6960_v0  ;;  %v7647_v19 = vadd.f32 %v7095_v61, %v6964_v7  ;;  %v9620_v16 = vld [vmem:[#allocation112_spill] sm:$0xff] }
 0x373   :  { %v7651_v48 = vadd.f32 %v7095_v61, %v6968_v53  ;;  %v7655_v55 = vadd.f32 %v7095_v61, %v6972_v59  ;;  %v7659_v60 = vadd.f32 %v7095_v61, %v6976_v21  ;;  %v7663_v0 = vadd.f32 %v7095_v61, %v6980_v5  ;;  %v9621_v50 = vld [vmem:[#allocation113_spill] sm:$0xff]  ;;  %v9622_v38 = vld [vmem:[#allocation114_spill] sm:$0xff] }
 0x374   :  { %9475 = vst [vmem:[#allocation116_spill] sm:$0xff] %v7639_v56  ;;  %9476 = vst [vmem:[#allocation118_spill] sm:$0xff] %v7643_v54  ;;  %v7667_v7 = vadd.f32 %v7095_v61, %v6984_v11  ;;  %v7671_v53 = vadd.f32 %v7095_v61, %v6988_v17  ;;  %v7675_v59 = vadd.f32 %v7095_v61, %v6992_v25  ;;  %v9623_v14 = vld [vmem:[#allocation115_spill] sm:$0xff] }
 0x375   :  { %9477 = vst [vmem:[#allocation120_spill] sm:$0xff] %v7647_v19  ;;  %9478 = vst [vmem:[#allocation122_spill] sm:$0xff] %v7651_v48  ;;  %v7679_v21 = vadd.f32 %v7095_v61, %v6996_v35  ;;  %v7683_v5 = vadd.f32 %v7095_v61, %v7000_v45  ;;  %v7687_v11 = vadd.f32 %v7095_v61, %v7004_v58 }
 0x376   :  { %9479 = vst [vmem:[#allocation124_spill] sm:$0xff] %v7655_v55  ;;  %9480 = vst [vmem:[#allocation126_spill] sm:$0xff] %v7659_v60  ;;  %v7691_v17 = vadd.f32 %v7095_v61, %v7008_v10  ;;  %v7695_v25 = vadd.f32 %v7095_v61, %v7012_v27  ;;  %v7699_v35 = vadd.f32 %v7095_v61, %v7016_v43  ;;  %v9669_v60 = vld [vmem:[#allocation128_spill] sm:$0xff] }
 0x377   :  { %9481 = vst [vmem:[#allocation14_spill] sm:$0xff] %v7663_v0  ;;  %9482 = vst [vmem:[#allocation16_spill] sm:$0xff] %v7667_v7  ;;  %v7703_v45 = vadd.f32 %v7095_v61, %v7020_v1  ;;  %v7707_v58 = vadd.f32 %v7095_v61, %v7024_v29  ;;  %v9663_v7 = vld [vmem:[#allocation123_spill] sm:$0xff]  ;;  %v9665_v0 = vld [vmem:[#allocation125_spill] sm:$0xff] }
 0x378   :  { %9483 = vst [vmem:[#allocation18_spill] sm:$0xff] %v7671_v53  ;;  %9484 = vst [vmem:[#allocation20_spill] sm:$0xff] %v7675_v59 }
 0x379   :  { %9485 = vst [vmem:[#allocation22_spill] sm:$0xff] %v7679_v21  ;;  %9486 = vst [vmem:[#allocation24_spill] sm:$0xff] %v7683_v5  ;;  %v9655_v21 = vld [vmem:[#allocation74_spill] sm:$0xff]  ;;  %v9657_v5 = vld [vmem:[#allocation117_spill] sm:$0xff] }
 0x37a   :  { %9487 = vst [vmem:[#allocation26_spill] sm:$0xff] %v7687_v11  ;;  %9488 = vst [vmem:[#allocation28_spill] sm:$0xff] %v7691_v17  ;;  %v9493_v11 = vld [vmem:[#allocation32_spill] sm:$0xff]  ;;  %v9495_v17 = vld [vmem:[#allocation34_spill] sm:$0xff] }
 0x37b   :  { %9489 = vst [vmem:[#allocation30_spill] sm:$0xff] %v7695_v25  ;;  %9490 = vst [vmem:[#allocation136_spill] sm:$0xff] %v7699_v35  ;;  %v7711_v10 = vadd.f32 %v7095_v61, %v9493_v11  ;;  %v7715_v27 = vadd.f32 %v7095_v61, %v9495_v17  ;;  %v9497_v25 = vld [vmem:[#allocation36_spill] sm:$0xff]  ;;  %v9499_v35 = vld [vmem:[#allocation38_spill] sm:$0xff] }
 0x37c   :  { %9491 = vst [vmem:[#allocation137_spill] sm:$0xff] %v7703_v45  ;;  %9492 = vst [vmem:[#allocation138_spill] sm:$0xff] %v7707_v58  ;;  %v7719_v43 = vadd.f32 %v7095_v61, %v9497_v25  ;;  %v7723_v1 = vadd.f32 %v7095_v61, %v9499_v35  ;;  %v9501_v45 = vld [vmem:[#allocation40_spill] sm:$0xff]  ;;  %v9503_v58 = vld [vmem:[#allocation42_spill] sm:$0xff] }
 0x37d   :  { %9494 = vst [vmem:[#allocation32_spill] sm:$0xff] %v7711_v10  ;;  %9496 = vst [vmem:[#allocation34_spill] sm:$0xff] %v7715_v27  ;;  %v7727_v29 = vadd.f32 %v7095_v61, %v9501_v45  ;;  %v7731_v11 = vadd.f32 %v7095_v61, %v9503_v58  ;;  %v9505_v10 = vld [vmem:[#allocation46_spill] sm:$0xff]  ;;  %v9507_v27 = vld [vmem:[#allocation48_spill] sm:$0xff] }
 0x37e   :  { %9498 = vst [vmem:[#allocation36_spill] sm:$0xff] %v7719_v43  ;;  %9500 = vst [vmem:[#allocation38_spill] sm:$0xff] %v7723_v1  ;;  %v7735_v17 = vadd.f32 %v7095_v61, %v9505_v10  ;;  %v7739_v25 = vadd.f32 %v7095_v61, %v9507_v27  ;;  %v9509_v43 = vld [vmem:[#allocation50_spill] sm:$0xff]  ;;  %v9511_v1 = vld [vmem:[#allocation52_spill] sm:$0xff] }
 0x37f   :  { %9502 = vst [vmem:[#allocation40_spill] sm:$0xff] %v7727_v29  ;;  %9504 = vst [vmem:[#allocation42_spill] sm:$0xff] %v7731_v11  ;;  %v7743_v35 = vadd.f32 %v7095_v61, %v9509_v43  ;;  %v7747_v45 = vadd.f32 %v7095_v61, %v9511_v1  ;;  %v9513_v29 = vld [vmem:[#allocation54_spill] sm:$0xff]  ;;  %v9515_v11 = vld [vmem:[#allocation56_spill] sm:$0xff] }
 0x380   :  { %9506 = vst [vmem:[#allocation46_spill] sm:$0xff] %v7735_v17  ;;  %9508 = vst [vmem:[#allocation48_spill] sm:$0xff] %v7739_v25  ;;  %v7751_v58 = vadd.f32 %v7095_v61, %v9513_v29  ;;  %v7755_v10 = vadd.f32 %v7095_v61, %v9515_v11  ;;  %v9517_v17 = vld [vmem:[#allocation58_spill] sm:$0xff]  ;;  %v9519_v25 = vld [vmem:[#allocation60_spill] sm:$0xff]  ;;  %v7771_v29 = vadd.f32 %v7095_v61, %v7088_v4 }
 0x381   :  { %9510 = vst [vmem:[#allocation50_spill] sm:$0xff] %v7743_v35  ;;  %9512 = vst [vmem:[#allocation52_spill] sm:$0xff] %v7747_v45  ;;  %v7759_v27 = vadd.f32 %v7095_v61, %v9517_v17  ;;  %v7763_v43 = vadd.f32 %v7095_v61, %v9519_v25  ;;  %v9521_v35 = vld [vmem:[#allocation62_spill] sm:$0xff]  ;;  %v7775_v11 = vadd.f32 %v7095_v61, %v7099_v39  ;;  %v9647_v45 = vld [vmem:[#allocation64_spill] sm:$0xff] }
 0x382   :  { %9514 = vst [vmem:[#allocation54_spill] sm:$0xff] %v7751_v58  ;;  %9516 = vst [vmem:[#allocation56_spill] sm:$0xff] %v7755_v10  ;;  %v7767_v1 = vadd.f32 %v7095_v61, %v9521_v35  ;;  %v7779_v17 = vadd.f32 %v7095_v61, %v7103_v33  ;;  %v7783_v25 = vadd.f32 %v7095_v61, %v7107_v37  ;;  %v9615_v37 = vld [vmem:[#allocation107_spill] sm:$0xff]  ;;  %v9649_v58 = vld [vmem:[#allocation66_spill] sm:$0xff]  ;;  %v9658_v33 = vmax.f32 %v9657_v5, 0.0 }
 0x383   :  { %9518 = vst [vmem:[#allocation58_spill] sm:$0xff] %v7759_v27  ;;  %9520 = vst [vmem:[#allocation60_spill] sm:$0xff] %v7763_v43  ;;  %v7787_v35 = vadd.f32 %v7095_v61, %v7111_v8  ;;  %v9616_v43 = vld [vmem:[#allocation108_spill] sm:$0xff]  ;;  %v9617_v61 = vld [vmem:[#allocation109_spill] sm:$0xff]  ;;  %v9648_v8 = vmax.f32 %v9647_v45, 0.0  ;;  %v9664_v45 = vmax.f32 %v9663_v7, 0.0 }
 0x384   :  { %9522 = vst [vmem:[#allocation62_spill] sm:$0xff] %v7767_v1  ;;  %9523 = vst [vmem:[#allocation139_spill] sm:$0xff] %v7771_v29  ;;  %v9650_v1 = vmax.f32 %v9649_v58, 0.0  ;;  %v9651_v4 = vld [vmem:[#allocation68_spill] sm:$0xff]  ;;  %v9653_v29 = vld [vmem:[#allocation70_spill] sm:$0xff]  ;;  %v9666_v58 = vmax.f32 %v9665_v0, 0.0 }
 0x385   :  { %9524 = vst [vmem:[#allocation140_spill] sm:$0xff] %v7775_v11  ;;  %9525 = vst [vmem:[#allocation141_spill] sm:$0xff] %v7779_v17  ;;  %v9652_v53 = vmax.f32 %v9651_v4, 0.0  ;;  %v9654_v59 = vmax.f32 %v9653_v29, 0.0  ;;  %v9656_v11 = vmax.f32 %v9655_v21, 0.0  ;;  %v9659_v17 = vld [vmem:[#allocation119_spill] sm:$0xff] }
 0x386   :  { %9526 = vst [vmem:[#allocation142_spill] sm:$0xff] %v7783_v25  ;;  %9527 = vst [vmem:[#allocation143_spill] sm:$0xff] %v7787_v35  ;;  %v9618_v35 = vld [vmem:[#allocation110_spill] sm:$0xff]  ;;  %v4002_v10 = vpack.c.bf16 %v9650_v1, %v9648_v8  ;;  %v9660_v19 = vmax.f32 %v9659_v17, 0.0  ;;  %v9661_v25 = vld [vmem:[#allocation121_spill] sm:$0xff]  ;;  %v4022_v1 = vpack.c.bf16 %v9666_v58, %v9664_v45  ;;  %v9670_v29 = vmax.f32 %v9669_v60, 0.0 }
 0x387   :  { %v4007_v39 = vpack.c.bf16 %v9654_v59, %v9652_v53  ;;  %v4012_v54 = vpack.c.bf16 %v9658_v33, %v9656_v11  ;;  %v9662_v48 = vmax.f32 %v9661_v25, 0.0  ;;  %v9667_v8 = vld [vmem:[#allocation127_spill] sm:$0xff]  ;;  %v9673_v7 = vld [vmem:[#allocation130_spill] sm:$0xff]  ;;  %v9677_v17 = vld [vmem:[#allocation132_spill] sm:$0xff] }
 0x388   :  { %v9668_v4 = vmax.f32 %v9667_v8, 0.0  ;;  %4003 = vst [vmem:[%s8553_s4] sm:$0xff] %v4002_v10   ;;  %v9674_v21 = vmax.f32 %v9673_v7, 0.0  ;;  %v9675_v5 = vld [vmem:[#allocation131_spill] sm:$0xff]  ;;  %v9678_v25 = vmax.f32 %v9677_v17, 0.0  ;;  %v9679_v33 = vld [vmem:[#allocation133_spill] sm:$0xff]  ;;  %v9681_v45 = vld [vmem:[#allocation134_spill] sm:$0xff] }
 0x389   :  { %4419 = vst [vmem:[%s8553_s4 + $0x8] sm:$0xff] %v4007_v39   ;;  %v9676_v11 = vmax.f32 %v9675_v5, 0.0  ;;  %v9682_v58 = vmax.f32 %v9681_v45, 0.0  ;;  %4420 = vst [vmem:[%s8553_s4 + $0x10] sm:$0xff] %v4012_v54   ;;  %v9683_v10 = vld [vmem:[#allocation44_spill] sm:$0xff]  ;;  %v9689_v54 = vld [vmem:[#allocation78_spill] sm:$0xff] }
 0x38a   :  { %v4027_v53 = vpack.c.bf16 %v9670_v29, %v9668_v4  ;;  %4422 = vst [vmem:[%s8553_s4 + $0x20] sm:$0xff] %v4022_v1   ;;  %v9684_v39 = vmax.f32 %v9683_v10, 0.0  ;;  %v9685_v4 = vld [vmem:[#allocation72_spill] sm:$0xff]  ;;  %v9693_v17 = vld [vmem:[#allocation135_spill] sm:$0xff]  ;;  %v9695_v1 = vld [vmem:[#allocation2_spill] sm:$0xff] }
 0x38b   :  { %v4037_v60 = vpack.c.bf16 %v9678_v25, %v9676_v11  ;;  %v9686_v29 = vmax.f32 %v9685_v4, 0.0  ;;  %v9691_v11 = vld [vmem:[#allocation81_spill] sm:$0xff]  ;;  %v9694_v25 = vmax.f32 %v9693_v17, 0.0  ;;  %v9697_v45 = vld [vmem:[#allocation3_spill] sm:$0xff]  ;;  %v9699_v10 = vld [vmem:[#allocation4_spill] sm:$0xff] }
 0x38c   :  { %4423 = vst [vmem:[%s8553_s4 + $0x28] sm:$0xff] %v4027_v53   ;;  %v9701_v4 = vld [vmem:[#allocation5_spill] sm:$0xff]  ;;  %v9707_v17 = vld [vmem:[#allocation8_spill] sm:$0xff] }
 0x38d   :  { %v9646_v55 = vld [vmem:[#allocation143_spill] sm:$0xff]  ;;  %4425 = vst [vmem:[%s8553_s4 + $0x38] sm:$0xff] %v4037_v60   ;;  %v9711_v60 = vld [vmem:[#allocation10_spill] sm:$0xff] }
 0x38e   :  { %v2639_v27 = vmax.f32 %v9646_v55, 0.0  ;;  %v4017_v55 = vpack.c.bf16 %v9662_v48, %v9660_v19  ;;  %v9671_v19 = vld [vmem:[#allocation129_spill] sm:$0xff] }
 0x38f   :  { %v9672_v48 = vmax.f32 %v9671_v19, 0.0  ;;  %v4047_v19 = vpack.c.bf16 %v9686_v29, %v9684_v39  ;;  %v9700_v39 = vmax.f32 %v9699_v10, 0.0  ;;  %v9702_v29 = vmax.f32 %v9701_v4, 0.0 }
 0x390   :  { %v3998_v59 = vpack.c.bf16 %v2639_v27, %v2639_v27  ;;  %v9680_v27 = vmax.f32 %v9679_v33, 0.0  ;;  %4421 = vst [vmem:[%s8553_s4 + $0x18] sm:$0xff] %v4017_v55   ;;  %v9692_v55 = vmax.f32 %v9691_v11, 0.0 }
 0x391   :  { %v4032_v0 = vpack.c.bf16 %v9674_v21, %v9672_v48  ;;  %v9687_v48 = vld [vmem:[#allocation76_spill] sm:$0xff]  ;;  %v9690_v21 = vmax.f32 %v9689_v54, 0.0  ;;  %4427 = vst [vmem:[%s8553_s4 + $0x48] sm:$0xff] %v4047_v19   ;;  %v9721_v19 = vld [vmem:[#allocation17_spill] sm:$0xff] }
 0x392   :  { %v4042_v8 = vpack.c.bf16 %v9682_v58, %v9680_v27  ;;  %v9688_v7 = vmax.f32 %v9687_v48, 0.0  ;;  %v4057_v33 = vpack.c.bf16 %v9694_v25, %v9692_v55  ;;  %v9696_v27 = vmax.f32 %v9695_v1, 0.0  ;;  %v9709_v25 = vld [vmem:[#allocation9_spill] sm:$0xff]  ;;  %3485 = vst [vmem:[%s8553_s4 + $0x2a0] sm:$0xf] %v3998_v59 }
 0x393   :  { %v9698_v58 = vmax.f32 %v9697_v45, 0.0  ;;  %4424 = vst [vmem:[%s8553_s4 + $0x30] sm:$0xff] %v4032_v0   ;;  %v4067_v48 = vpack.c.bf16 %v9702_v29, %v9700_v39  ;;  %v9708_v0 = vmax.f32 %v9707_v17, 0.0  ;;  %v9710_v1 = vmax.f32 %v9709_v25, 0.0  ;;  %v9717_v39 = vld [vmem:[#allocation13_spill] sm:$0xff]  ;;  %v9719_v29 = vld [vmem:[#allocation15_spill] sm:$0xff] }
 0x394   :  { %v4052_v5 = vpack.c.bf16 %v9690_v21, %v9688_v7  ;;  %4426 = vst [vmem:[%s8553_s4 + $0x40] sm:$0xff] %v4042_v8   ;;  %v9703_v7 = vld [vmem:[#allocation6_spill] sm:$0xff]  ;;  %v9705_v21 = vld [vmem:[#allocation7_spill] sm:$0xff]  ;;  %v9712_v45 = vmax.f32 %v9711_v60, 0.0  ;;  %4429 = vst [vmem:[%s8553_s4 + $0x58] sm:$0xff] %v4057_v33   ;;  %v9718_v59 = vmax.f32 %v9717_v39, 0.0 }
 0x395   :  { %v4062_v53 = vpack.c.bf16 %v9698_v58, %v9696_v27  ;;  %v9704_v54 = vmax.f32 %v9703_v7, 0.0  ;;  %v9706_v11 = vmax.f32 %v9705_v21, 0.0  ;;  %v4077_v27 = vpack.c.bf16 %v9710_v1, %v9708_v0  ;;  %v9713_v58 = vld [vmem:[#allocation11_spill] sm:$0xff]  ;;  %v9725_v17 = vld [vmem:[#allocation21_spill] sm:$0xff]  ;;  %4431 = vst [vmem:[%s8553_s4 + $0x68] sm:$0xff] %v4067_v48  }
 0x396   :  { %v9714_v56 = vmax.f32 %v9713_v58, 0.0  ;;  %4428 = vst [vmem:[%s8553_s4 + $0x50] sm:$0xff] %v4052_v5   ;;  %v9720_v7 = vmax.f32 %v9719_v29, 0.0  ;;  %v9726_v0 = vmax.f32 %v9725_v17, 0.0  ;;  %v9727_v33 = vld [vmem:[#allocation23_spill] sm:$0xff]  ;;  %v9729_v60 = vld [vmem:[#allocation25_spill] sm:$0xff] }
 0x397   :  { %v4072_v55 = vpack.c.bf16 %v9706_v11, %v9704_v54  ;;  %4430 = vst [vmem:[%s8553_s4 + $0x60] sm:$0xff] %v4062_v53   ;;  %v9722_v54 = vmax.f32 %v9721_v19, 0.0  ;;  %v9723_v11 = vld [vmem:[#allocation19_spill] sm:$0xff]  ;;  %v9728_v1 = vmax.f32 %v9727_v33, 0.0  ;;  %4433 = vst [vmem:[%s8553_s4 + $0x78] sm:$0xff] %v4077_v27   ;;  %v9737_v48 = vld [vmem:[#allocation33_spill] sm:$0xff] }
 0x398   :  { %v4082_v8 = vpack.c.bf16 %v9714_v56, %v9712_v45  ;;  %v9715_v56 = vld [vmem:[#allocation12_spill] sm:$0xff]  ;;  %v9724_v5 = vmax.f32 %v9723_v11, 0.0  ;;  %v9730_v45 = vmax.f32 %v9729_v60, 0.0  ;;  %v9731_v58 = vld [vmem:[#allocation27_spill] sm:$0xff]  ;;  %v9738_v19 = vmax.f32 %v9737_v48, 0.0 }
 0x399   :  { %v9716_v10 = vmax.f32 %v9715_v56, 0.0  ;;  %v4092_v21 = vpack.c.bf16 %v9722_v54, %v9720_v7  ;;  %4432 = vst [vmem:[%s8553_s4 + $0x70] sm:$0xff] %v4072_v55   ;;  %v9732_v56 = vmax.f32 %v9731_v58, 0.0  ;;  %v9735_v29 = vld [vmem:[#allocation31_spill] sm:$0xff] }
 0x39a   :  { %v4097_v25 = vpack.c.bf16 %v9726_v0, %v9724_v5  ;;  %v4102_v53 = vpack.c.bf16 %v9730_v45, %v9728_v1  ;;  %4434 = vst [vmem:[%s8553_s4 + $0x80] sm:$0xff] %v4082_v8   ;;  %v9736_v7 = vmax.f32 %v9735_v29, 0.0  ;;  %v9739_v11 = vld [vmem:[#allocation35_spill] sm:$0xff]  ;;  %v9741_v5 = vld [vmem:[#allocation37_spill] sm:$0xff] }
 0x39b   :  { %v4087_v4 = vpack.c.bf16 %v9718_v59, %v9716_v10  ;;  %v9733_v10 = vld [vmem:[#allocation29_spill] sm:$0xff]  ;;  %v9740_v55 = vmax.f32 %v9739_v11, 0.0  ;;  %v9742_v17 = vmax.f32 %v9741_v5, 0.0  ;;  %v9743_v27 = vld [vmem:[#allocation39_spill] sm:$0xff]  ;;  %4436 = vst [vmem:[%s8553_s4 + $0x90] sm:$0xff] %v4092_v21  }
 0x39c   :  { %v9734_v39 = vmax.f32 %v9733_v10, 0.0  ;;  %v4112_v54 = vpack.c.bf16 %v9738_v19, %v9736_v7  ;;  %v9744_v33 = vmax.f32 %v9743_v27, 0.0  ;;  %v9745_v1 = vld [vmem:[#allocation41_spill] sm:$0xff]  ;;  %4437 = vst [vmem:[%s8553_s4 + $0x98] sm:$0xff] %v4097_v25   ;;  %4438 = vst [vmem:[%s8553_s4 + $0xa0] sm:$0xff] %v4102_v53   ;;  %v9747_v45 = vld [vmem:[#allocation43_spill] sm:$0xff] }
 0x39d   :  { %v4117_v0 = vpack.c.bf16 %v9742_v17, %v9740_v55  ;;  %v9746_v60 = vmax.f32 %v9745_v1, 0.0  ;;  %4435 = vst [vmem:[%s8553_s4 + $0x88] sm:$0xff] %v4087_v4   ;;  %v9748_v58 = vmax.f32 %v9747_v45, 0.0  ;;  %v9751_v29 = vld [vmem:[#allocation47_spill] sm:$0xff]  ;;  %v9753_v4 = vld [vmem:[#allocation49_spill] sm:$0xff] }
 0x39e   :  { %v4107_v59 = vpack.c.bf16 %v9734_v39, %v9732_v56  ;;  %v9749_v56 = vld [vmem:[#allocation45_spill] sm:$0xff]  ;;  %v9752_v7 = vmax.f32 %v9751_v29, 0.0  ;;  %v9754_v48 = vmax.f32 %v9753_v4, 0.0  ;;  %v9755_v11 = vld [vmem:[#allocation51_spill] sm:$0xff]  ;;  %4440 = vst [vmem:[%s8553_s4 + $0xb0] sm:$0xff] %v4112_v54  }
 0x39f   :  { %v4122_v8 = vpack.c.bf16 %v9746_v60, %v9744_v33  ;;  %v9750_v10 = vmax.f32 %v9749_v56, 0.0  ;;  %v9756_v21 = vmax.f32 %v9755_v11, 0.0  ;;  %v9757_v55 = vld [vmem:[#allocation53_spill] sm:$0xff]  ;;  %v9759_v25 = vld [vmem:[#allocation55_spill] sm:$0xff]  ;;  %4441 = vst [vmem:[%s8553_s4 + $0xb8] sm:$0xff] %v4117_v0  }
 0x3a0   :  { %v4132_v19 = vpack.c.bf16 %v9754_v48, %v9752_v7  ;;  %v9758_v5 = vmax.f32 %v9757_v55, 0.0  ;;  %v9760_v27 = vmax.f32 %v9759_v25, 0.0  ;;  %v9761_v33 = vld [vmem:[#allocation57_spill] sm:$0xff]  ;;  %4439 = vst [vmem:[%s8553_s4 + $0xa8] sm:$0xff] %v4107_v59   ;;  %v9763_v60 = vld [vmem:[#allocation59_spill] sm:$0xff] }
 0x3a1   :  { %v4127_v39 = vpack.c.bf16 %v9750_v10, %v9748_v58  ;;  %v9762_v1 = vmax.f32 %v9761_v33, 0.0  ;;  %4442 = vst [vmem:[%s8553_s4 + $0xc0] sm:$0xff] %v4122_v8   ;;  %v9764_v45 = vmax.f32 %v9763_v60, 0.0  ;;  %v9765_v58 = vld [vmem:[#allocation61_spill] sm:$0xff]  ;;  %v9767_v29 = vld [vmem:[#allocation63_spill] sm:$0xff] }
 0x3a2   :  { %v4137_v17 = vpack.c.bf16 %v9758_v5, %v9756_v21  ;;  %v9766_v56 = vmax.f32 %v9765_v58, 0.0  ;;  %v9768_v7 = vmax.f32 %v9767_v29, 0.0  ;;  %v9769_v59 = vld [vmem:[#allocation65_spill] sm:$0xff]  ;;  %v9771_v11 = vld [vmem:[#allocation67_spill] sm:$0xff]  ;;  %4444 = vst [vmem:[%s8553_s4 + $0xd0] sm:$0xff] %v4132_v19  }
 0x3a3   :  { %v4142_v53 = vpack.c.bf16 %v9762_v1, %v9760_v27  ;;  %v9770_v4 = vmax.f32 %v9769_v59, 0.0  ;;  %v9772_v54 = vmax.f32 %v9771_v11, 0.0  ;;  %v9773_v21 = vld [vmem:[#allocation69_spill] sm:$0xff]  ;;  %v9775_v0 = vld [vmem:[#allocation71_spill] sm:$0xff]  ;;  %4443 = vst [vmem:[%s8553_s4 + $0xc8] sm:$0xff] %v4127_v39   ;;  %v9785_v39 = vld [vmem:[#allocation80_spill] sm:$0xff] }
 0x3a4   :  { %v4147_v10 = vpack.c.bf16 %v9766_v56, %v9764_v45  ;;  %v9774_v55 = vmax.f32 %v9773_v21, 0.0  ;;  %v9776_v25 = vmax.f32 %v9775_v0, 0.0  ;;  %v9777_v27 = vld [vmem:[#allocation73_spill] sm:$0xff]  ;;  %4445 = vst [vmem:[%s8553_s4 + $0xd8] sm:$0xff] %v4137_v17   ;;  %v9779_v1 = vld [vmem:[#allocation75_spill] sm:$0xff]  ;;  %v9786_v59 = vmax.f32 %v9785_v39, 0.0 }
 0x3a5   :  { %v4152_v48 = vpack.c.bf16 %v9770_v4, %v9768_v7  ;;  %v9778_v33 = vmax.f32 %v9777_v27, 0.0  ;;  %4446 = vst [vmem:[%s8553_s4 + $0xe0] sm:$0xff] %v4142_v53   ;;  %v9780_v60 = vmax.f32 %v9779_v1, 0.0  ;;  %v9781_v45 = vld [vmem:[#allocation77_spill] sm:$0xff]  ;;  %v9783_v29 = vld [vmem:[#allocation79_spill] sm:$0xff]  ;;  %v9787_v11 = vld [vmem:[#allocation82_spill] sm:$0xff] }
 0x3a6   :  { %v4157_v5 = vpack.c.bf16 %v9774_v55, %v9772_v54  ;;  %v9782_v58 = vmax.f32 %v9781_v45, 0.0  ;;  %v9784_v7 = vmax.f32 %v9783_v29, 0.0  ;;  %v9788_v19 = vmax.f32 %v9787_v11, 0.0  ;;  %v9789_v54 = vld [vmem:[#allocation83_spill] sm:$0xff]  ;;  %v9791_v17 = vld [vmem:[#allocation84_spill] sm:$0xff]  ;;  %4447 = vst [vmem:[%s8553_s4 + $0xe8] sm:$0xff] %v4147_v10  }
 0x3a7   :  { %v4162_v8 = vpack.c.bf16 %v9778_v33, %v9776_v25  ;;  %v9790_v21 = vmax.f32 %v9789_v54, 0.0  ;;  %v9792_v0 = vmax.f32 %v9791_v17, 0.0  ;;  %v9793_v25 = vld [vmem:[#allocation85_spill] sm:$0xff]  ;;  %4448 = vst [vmem:[%s8553_s4 + $0xf0] sm:$0xff] %v4152_v48   ;;  %v9795_v33 = vld [vmem:[#allocation86_spill] sm:$0xff]  ;;  %v9799_v29 = vld [vmem:[#allocation88_spill] sm:$0xff] }
 0x3a8   :  { %v4167_v56 = vpack.c.bf16 %v9782_v58, %v9780_v60  ;;  %v4172_v4 = vpack.c.bf16 %v9786_v59, %v9784_v7  ;;  %v9794_v27 = vmax.f32 %v9793_v25, 0.0  ;;  %4449 = vst [vmem:[%s8553_s4 + $0xf8] sm:$0xff] %v4157_v5   ;;  %v9796_v1 = vmax.f32 %v9795_v33, 0.0  ;;  %v9797_v60 = vld [vmem:[#allocation87_spill] sm:$0xff]  ;;  %v9801_v10 = vld [vmem:[#allocation89_spill] sm:$0xff]  ;;  %v9806_v5 = vld [vmem:[#allocation92_spill] sm:$0xff] }
 0x3a9   :  { %v4177_v55 = vpack.c.bf16 %v9790_v21, %v9788_v19  ;;  %4450 = vst [vmem:[%s8553_s4 + $0x100] sm:$0xff] %v4162_v8   ;;  %v9798_v45 = vmax.f32 %v9797_v60, 0.0  ;;  %v9800_v7 = vmax.f32 %v9799_v29, 0.0  ;;  %v9802_v39 = vmax.f32 %v9801_v10, 0.0  ;;  %v9804_v11 = vld [vmem:[#allocation91_spill] sm:$0xff]  ;;  %v9808_v17 = vld [vmem:[#allocation93_spill] sm:$0xff] }
 0x3aa   :  { %v4182_v53 = vpack.c.bf16 %v9794_v27, %v9792_v0  ;;  %v9803_v48 = vmax.f32 %v9599_v30, 0.0  ;;  %v9805_v19 = vmax.f32 %v9804_v11, 0.0  ;;  %v9807_v21 = vmax.f32 %v9806_v5, 0.0  ;;  %4451 = vst [vmem:[%s8553_s4 + $0x108] sm:$0xff] %v4167_v56   ;;  %4452 = vst [vmem:[%s8553_s4 + $0x110] sm:$0xff] %v4172_v4   ;;  %v9810_v30 = vld [vmem:[#allocation94_spill] sm:$0xff] }
 0x3ab   :  { %v4187_v58 = vpack.c.bf16 %v9798_v45, %v9796_v1  ;;  %v4192_v59 = vpack.c.bf16 %v9802_v39, %v9800_v7  ;;  %v9809_v0 = vmax.f32 %v9808_v17, 0.0  ;;  %4453 = vst [vmem:[%s8553_s4 + $0x118] sm:$0xff] %v4177_v55   ;;  %v9811_v25 = vmax.f32 %v9810_v30, 0.0  ;;  %v9812_v27 = vld [vmem:[#allocation95_spill] sm:$0xff]  ;;  %v9814_v60 = vld [vmem:[#allocation96_spill] sm:$0xff]  ;;  %v9816_v56 = vld [vmem:[#allocation97_spill] sm:$0xff] }
 0x3ac   :  { %v4197_v54 = vpack.c.bf16 %v9805_v19, %v9803_v48  ;;  %4454 = vst [vmem:[%s8553_s4 + $0x120] sm:$0xff] %v4182_v53   ;;  %v9813_v33 = vmax.f32 %v9812_v27, 0.0  ;;  %v9815_v45 = vmax.f32 %v9814_v60, 0.0  ;;  %v9817_v29 = vmax.f32 %v9816_v56, 0.0  ;;  %v9818_v10 = vld [vmem:[#allocation98_spill] sm:$0xff]  ;;  %v9820_v39 = vld [vmem:[#allocation99_spill] sm:$0xff] }
 0x3ad   :  { %v4202_v8 = vpack.c.bf16 %v9809_v0, %v9807_v21  ;;  %v9819_v4 = vmax.f32 %v9818_v10, 0.0  ;;  %v9821_v48 = vmax.f32 %v9820_v39, 0.0  ;;  %v9822_v55 = vld [vmem:[#allocation100_spill] sm:$0xff]  ;;  %v9824_v5 = vld [vmem:[#allocation101_spill] sm:$0xff]  ;;  %4455 = vst [vmem:[%s8553_s4 + $0x128] sm:$0xff] %v4187_v58   ;;  %4456 = vst [vmem:[%s8553_s4 + $0x130] sm:$0xff] %v4192_v59  }
 0x3ae   :  { %v4207_v1 = vpack.c.bf16 %v9813_v33, %v9811_v25  ;;  %v4212_v7 = vpack.c.bf16 %v9817_v29, %v9815_v45  ;;  %v9823_v19 = vmax.f32 %v9822_v55, 0.0  ;;  %v9825_v21 = vmax.f32 %v9824_v5, 0.0  ;;  %4457 = vst [vmem:[%s8553_s4 + $0x138] sm:$0xff] %v4197_v54   ;;  %v9826_v17 = vld [vmem:[#allocation102_spill] sm:$0xff]  ;;  %v9828_v30 = vld [vmem:[#allocation103_spill] sm:$0xff]  ;;  %v9831_v58 = vld [vmem:[#allocation105_spill] sm:$0xff] }
 0x3af   :  { %v4217_v11 = vpack.c.bf16 %v9821_v48, %v9819_v4  ;;  %4458 = vst [vmem:[%s8553_s4 + $0x140] sm:$0xff] %v4202_v8   ;;  %v9827_v0 = vmax.f32 %v9826_v17, 0.0  ;;  %v9829_v25 = vmax.f32 %v9828_v30, 0.0  ;;  %v9830_v33 = vmax.f32 %v9612_v47, 0.0 }
 0x3b0   :  { %v4222_v53 = vpack.c.bf16 %v9825_v21, %v9823_v19  ;;  %v9832_v60 = vmax.f32 %v9831_v58, 0.0  ;;  %v9833_v59 = vmax.f32 %v9614_v31, 0.0  ;;  %v9834_v56 = vmax.f32 %v9615_v37, 0.0  ;;  %4459 = vst [vmem:[%s8553_s4 + $0x148] sm:$0xff] %v4207_v1   ;;  %4460 = vst [vmem:[%s8553_s4 + $0x150] sm:$0xff] %v4212_v7  }
 0x3b1   :  { %v4227_v27 = vpack.c.bf16 %v9829_v25, %v9827_v0  ;;  %v9835_v54 = vmax.f32 %v9616_v43, 0.0  ;;  %v9836_v10 = vmax.f32 %v9617_v61, 0.0  ;;  %4461 = vst [vmem:[%s8553_s4 + $0x158] sm:$0xff] %v4217_v11   ;;  %v9837_v47 = vmax.f32 %v9618_v35, 0.0 }
 0x3b2   :  { %v4232_v45 = vpack.c.bf16 %v9832_v60, %v9830_v33  ;;  %v4237_v29 = vpack.c.bf16 %v9834_v56, %v9833_v59  ;;  %4462 = vst [vmem:[%s8553_s4 + $0x160] sm:$0xff] %v4222_v53   ;;  %v9838_v31 = vmax.f32 %v9619_v52, 0.0  ;;  %v9839_v37 = vmax.f32 %v9620_v16, 0.0  ;;  %v9876_v59 = vld [vmem:[#allocation122_spill] sm:$0xff] }
 0x3b3   :  { %v4242_v8 = vpack.c.bf16 %v9836_v10, %v9835_v54  ;;  %v9840_v61 = vmax.f32 %v9621_v50, 0.0  ;;  %v9841_v7 = vmax.f32 %v9622_v38, 0.0  ;;  %v9842_v4 = vmax.f32 %v7527_v28, 0.0  ;;  %4463 = vst [vmem:[%s8553_s4 + $0x168] sm:$0xff] %v4227_v27  }
 0x3b4   :  { %v4247_v43 = vpack.c.bf16 %v9838_v31, %v9837_v47  ;;  %v9843_v48 = vmax.f32 %v9623_v14, 0.0  ;;  %v9844_v11 = vmax.f32 %v7535_v62, 0.0  ;;  %4464 = vst [vmem:[%s8553_s4 + $0x170] sm:$0xff] %v4232_v45   ;;  %4465 = vst [vmem:[%s8553_s4 + $0x178] sm:$0xff] %v4237_v29   ;;  %v9845_v52 = vmax.f32 %v7539_v3, 0.0  ;;  %v9878_v29 = vld [vmem:[#allocation124_spill] sm:$0xff] }
 0x3b5   :  { %v4252_v1 = vpack.c.bf16 %v9840_v61, %v9839_v37  ;;  %v4257_v39 = vpack.c.bf16 %v9842_v4, %v9841_v7  ;;  %4466 = vst [vmem:[%s8553_s4 + $0x180] sm:$0xff] %v4242_v8   ;;  %v9846_v50 = vmax.f32 %v7543_v12, 0.0  ;;  %v9847_v14 = vmax.f32 %v7547_v32, 0.0  ;;  %v9880_v8 = vld [vmem:[#allocation126_spill] sm:$0xff] }
 0x3b6   :  { %v4262_v55 = vpack.c.bf16 %v9844_v11, %v9843_v48  ;;  %v9848_v16 = vmax.f32 %v7551_v15, 0.0  ;;  %v9849_v62 = vmax.f32 %v7555_v49, 0.0  ;;  %v9850_v35 = vmax.f32 %v7559_v24, 0.0  ;;  %4467 = vst [vmem:[%s8553_s4 + $0x188] sm:$0xff] %v4247_v43   ;;  %v9882_v31 = vld [vmem:[#allocation14_spill] sm:$0xff] }
 0x3b7   :  { %v4267_v38 = vpack.c.bf16 %v9846_v50, %v9845_v52  ;;  %v9851_v5 = vmax.f32 %v7563_v26, 0.0  ;;  %v9852_v21 = vmax.f32 %v7567_v44, 0.0  ;;  %4468 = vst [vmem:[%s8553_s4 + $0x190] sm:$0xff] %v4252_v1   ;;  %4469 = vst [vmem:[%s8553_s4 + $0x198] sm:$0xff] %v4257_v39   ;;  %v9853_v3 = vmax.f32 %v7571_v9, 0.0  ;;  %v9886_v1 = vld [vmem:[#allocation18_spill] sm:$0xff] }
 0x3b8   :  { %v4272_v28 = vpack.c.bf16 %v9848_v16, %v9847_v14  ;;  %v4277_v19 = vpack.c.bf16 %v9850_v35, %v9849_v62  ;;  %4470 = vst [vmem:[%s8553_s4 + $0x1a0] sm:$0xff] %v4262_v55   ;;  %v9854_v12 = vmax.f32 %v7575_v57, 0.0  ;;  %v9855_v15 = vmax.f32 %v7579_v41, 0.0  ;;  %v9888_v39 = vld [vmem:[#allocation20_spill] sm:$0xff]  ;;  %v9890_v11 = vld [vmem:[#allocation22_spill] sm:$0xff] }
 0x3b9   :  { %v4282_v53 = vpack.c.bf16 %v9852_v21, %v9851_v5  ;;  %v9856_v49 = vmax.f32 %v7583_v40, 0.0  ;;  %v9857_v26 = vmax.f32 %v7587_v23, 0.0  ;;  %v9858_v44 = vmax.f32 %v7591_v18, 0.0  ;;  %4471 = vst [vmem:[%s8553_s4 + $0x1a8] sm:$0xff] %v4267_v38   ;;  %v9892_v50 = vld [vmem:[#allocation24_spill] sm:$0xff]  ;;  %v9894_v14 = vld [vmem:[#allocation26_spill] sm:$0xff] }
 0x3ba   :  { %v4287_v32 = vpack.c.bf16 %v9854_v12, %v9853_v3  ;;  %v9859_v0 = vmax.f32 %v7595_v20, 0.0  ;;  %v9860_v30 = vmax.f32 %v7599_v51, 0.0  ;;  %4472 = vst [vmem:[%s8553_s4 + $0x1b0] sm:$0xff] %v4272_v28   ;;  %4473 = vst [vmem:[%s8553_s4 + $0x1b8] sm:$0xff] %v4277_v19   ;;  %v9861_v9 = vmax.f32 %v7603_v36, 0.0  ;;  %v9896_v62 = vld [vmem:[#allocation28_spill] sm:$0xff] }
 0x3bb   :  { %v4292_v24 = vpack.c.bf16 %v9856_v49, %v9855_v15  ;;  %v4297_v17 = vpack.c.bf16 %v9858_v44, %v9857_v26  ;;  %4474 = vst [vmem:[%s8553_s4 + $0x1c0] sm:$0xff] %v4282_v53   ;;  %v9862_v57 = vmax.f32 %v7607_v34, 0.0  ;;  %v9863_v40 = vmax.f32 %v7611_v2, 0.0  ;;  %v9870_v34 = vld [vmem:[#allocation116_spill] sm:$0xff]  ;;  %v9898_v19 = vld [vmem:[#allocation30_spill] sm:$0xff]  ;;  %v9902_v12 = vld [vmem:[#allocation137_spill] sm:$0xff] }
 0x3bc   :  { %v4302_v25 = vpack.c.bf16 %v9860_v30, %v9859_v0  ;;  %v9864_v23 = vmax.f32 %v7615_v13, 0.0  ;;  %v9865_v20 = vmax.f32 %v7619_v63, 0.0  ;;  %v9866_v51 = vmax.f32 %v7623_v46, 0.0  ;;  %4475 = vst [vmem:[%s8553_s4 + $0x1c8] sm:$0xff] %v4287_v32   ;;  %v9872_v63 = vld [vmem:[#allocation118_spill] sm:$0xff]  ;;  %v9900_v53 = vld [vmem:[#allocation136_spill] sm:$0xff] }
 0x3bd   :  { %v4307_v41 = vpack.c.bf16 %v9862_v57, %v9861_v9  ;;  %v9867_v33 = vmax.f32 %v7627_v42, 0.0  ;;  %v9868_v58 = vmax.f32 %v7631_v6, 0.0  ;;  %4476 = vst [vmem:[%s8553_s4 + $0x1d0] sm:$0xff] %v4292_v24   ;;  %4477 = vst [vmem:[%s8553_s4 + $0x1d8] sm:$0xff] %v4297_v17   ;;  %v9869_v36 = vmax.f32 %v7635_v22, 0.0  ;;  %v9874_v42 = vld [vmem:[#allocation120_spill] sm:$0xff] }
 0x3be   :  { %v4312_v18 = vpack.c.bf16 %v9864_v23, %v9863_v40  ;;  %v4317_v27 = vpack.c.bf16 %v9866_v51, %v9865_v20  ;;  %4478 = vst [vmem:[%s8553_s4 + $0x1e0] sm:$0xff] %v4302_v25   ;;  %v9871_v2 = vmax.f32 %v9870_v34, 0.0  ;;  %v9873_v46 = vmax.f32 %v9872_v63, 0.0  ;;  %v9884_v22 = vld [vmem:[#allocation16_spill] sm:$0xff]  ;;  %v9904_v49 = vld [vmem:[#allocation138_spill] sm:$0xff] }
 0x3bf   :  { %v4322_v60 = vpack.c.bf16 %v9868_v58, %v9867_v33  ;;  %v9875_v6 = vmax.f32 %v9874_v42, 0.0  ;;  %v9877_v56 = vmax.f32 %v9876_v59, 0.0  ;;  %v9879_v54 = vmax.f32 %v9878_v29, 0.0  ;;  %4479 = vst [vmem:[%s8553_s4 + $0x1e8] sm:$0xff] %v4307_v41   ;;  %v9906_v26 = vld [vmem:[#allocation32_spill] sm:$0xff]  ;;  %v9908_v0 = vld [vmem:[#allocation34_spill] sm:$0xff] }
 0x3c0   :  { %v4327_v13 = vpack.c.bf16 %v9871_v2, %v9869_v36  ;;  %v9881_v47 = vmax.f32 %v9880_v8, 0.0  ;;  %v9883_v43 = vmax.f32 %v9882_v31, 0.0  ;;  %4480 = vst [vmem:[%s8553_s4 + $0x1f0] sm:$0xff] %v4312_v18   ;;  %4481 = vst [vmem:[%s8553_s4 + $0x1f8] sm:$0xff] %v4317_v27   ;;  %v9885_v61 = vmax.f32 %v9884_v22, 0.0  ;;  %v9910_v25 = vld [vmem:[#allocation36_spill] sm:$0xff] }
 0x3c1   :  { %v4332_v45 = vpack.c.bf16 %v9875_v6, %v9873_v46  ;;  %v4337_v10 = vpack.c.bf16 %v9879_v54, %v9877_v56  ;;  %4482 = vst [vmem:[%s8553_s4 + $0x200] sm:$0xff] %v4322_v60   ;;  %v9887_v7 = vmax.f32 %v9886_v1, 0.0  ;;  %v9889_v48 = vmax.f32 %v9888_v39, 0.0  ;;  %v9912_v41 = vld [vmem:[#allocation38_spill] sm:$0xff]  ;;  %v9914_v23 = vld [vmem:[#allocation40_spill] sm:$0xff] }
 0x3c2   :  { %v4342_v37 = vpack.c.bf16 %v9883_v43, %v9881_v47  ;;  %v9891_v55 = vmax.f32 %v9890_v11, 0.0  ;;  %v9893_v38 = vmax.f32 %v9892_v50, 0.0  ;;  %v9895_v16 = vmax.f32 %v9894_v14, 0.0  ;;  %4483 = vst [vmem:[%s8553_s4 + $0x208] sm:$0xff] %v4327_v13   ;;  %v9916_v51 = vld [vmem:[#allocation42_spill] sm:$0xff]  ;;  %v9920_v36 = vld [vmem:[#allocation48_spill] sm:$0xff] }
 0x3c3   :  { %v4347_v4 = vpack.c.bf16 %v9887_v7, %v9885_v61  ;;  %v9897_v35 = vmax.f32 %v9896_v62, 0.0  ;;  %v9899_v5 = vmax.f32 %v9898_v19, 0.0  ;;  %4484 = vst [vmem:[%s8553_s4 + $0x210] sm:$0xff] %v4332_v45   ;;  %4485 = vst [vmem:[%s8553_s4 + $0x218] sm:$0xff] %v4337_v10   ;;  %v9901_v3 = vmax.f32 %v9900_v53, 0.0  ;;  %v9918_v33 = vld [vmem:[#allocation46_spill] sm:$0xff] }
 0x3c4   :  { %v4352_v52 = vpack.c.bf16 %v9891_v55, %v9889_v48  ;;  %v4357_v28 = vpack.c.bf16 %v9895_v16, %v9893_v38  ;;  %4486 = vst [vmem:[%s8553_s4 + $0x220] sm:$0xff] %v4342_v37   ;;  %v9903_v32 = vmax.f32 %v9902_v12, 0.0  ;;  %v9905_v24 = vmax.f32 %v9904_v49, 0.0  ;;  %v9922_v2 = vld [vmem:[#allocation50_spill] sm:$0xff]  ;;  %v9924_v46 = vld [vmem:[#allocation52_spill] sm:$0xff]  ;;  %v9936_v61 = vld [vmem:[#allocation139_spill] sm:$0xff] }
 0x3c5   :  { %v4362_v21 = vpack.c.bf16 %v9899_v5, %v9897_v35  ;;  %v9907_v44 = vmax.f32 %v9906_v26, 0.0  ;;  %v9909_v30 = vmax.f32 %v9908_v0, 0.0  ;;  %v9911_v9 = vmax.f32 %v9910_v25, 0.0  ;;  %4487 = vst [vmem:[%s8553_s4 + $0x228] sm:$0xff] %v4347_v4   ;;  %v9926_v6 = vld [vmem:[#allocation54_spill] sm:$0xff]  ;;  %v9928_v56 = vld [vmem:[#allocation56_spill] sm:$0xff] }
 0x3c6   :  { %v4367_v15 = vpack.c.bf16 %v9903_v32, %v9901_v3  ;;  %v9913_v40 = vmax.f32 %v9912_v41, 0.0  ;;  %v9915_v18 = vmax.f32 %v9914_v23, 0.0  ;;  %4488 = vst [vmem:[%s8553_s4 + $0x230] sm:$0xff] %v4352_v52   ;;  %4489 = vst [vmem:[%s8553_s4 + $0x238] sm:$0xff] %v4357_v28   ;;  %v9917_v27 = vmax.f32 %v9916_v51, 0.0  ;;  %v9930_v54 = vld [vmem:[#allocation58_spill] sm:$0xff] }
 0x3c7   :  { %v4372_v17 = vpack.c.bf16 %v9907_v44, %v9905_v24  ;;  %v4377_v57 = vpack.c.bf16 %v9911_v9, %v9909_v30  ;;  %4490 = vst [vmem:[%s8553_s4 + $0x240] sm:$0xff] %v4362_v21   ;;  %v9919_v58 = vmax.f32 %v9918_v33, 0.0  ;;  %v9921_v34 = vmax.f32 %v9920_v36, 0.0  ;;  %v9932_v47 = vld [vmem:[#allocation60_spill] sm:$0xff]  ;;  %v9934_v43 = vld [vmem:[#allocation62_spill] sm:$0xff]  ;;  %v9940_v48 = vld [vmem:[#allocation141_spill] sm:$0xff] }
 0x3c8   :  { %v4382_v20 = vpack.c.bf16 %v9915_v18, %v9913_v40  ;;  %v9923_v13 = vmax.f32 %v9922_v2, 0.0  ;;  %v9925_v42 = vmax.f32 %v9924_v46, 0.0  ;;  %v9927_v45 = vmax.f32 %v9926_v6, 0.0  ;;  %4491 = vst [vmem:[%s8553_s4 + $0x248] sm:$0xff] %v4367_v15   ;;  %v9938_v7 = vld [vmem:[#allocation140_spill] sm:$0xff]  ;;  %v9942_v55 = vld [vmem:[#allocation142_spill] sm:$0xff] }
 0x3c9   :  { %v4387_v60 = vpack.c.bf16 %v9919_v58, %v9917_v27  ;;  %v9929_v29 = vmax.f32 %v9928_v56, 0.0  ;;  %v9931_v10 = vmax.f32 %v9930_v54, 0.0  ;;  %4492 = vst [vmem:[%s8553_s4 + $0x250] sm:$0xff] %v4372_v17   ;;  %4493 = vst [vmem:[%s8553_s4 + $0x258] sm:$0xff] %v4377_v57   ;;  %v9933_v31 = vmax.f32 %v9932_v47, 0.0 }
 0x3ca   :  { %v4392_v63 = vpack.c.bf16 %v9923_v13, %v9921_v34  ;;  %v4397_v59 = vpack.c.bf16 %v9927_v45, %v9925_v42  ;;  %4494 = vst [vmem:[%s8553_s4 + $0x260] sm:$0xff] %v4382_v20   ;;  %v9935_v37 = vmax.f32 %v9934_v43, 0.0  ;;  %v9937_v1 = vmax.f32 %v9936_v61, 0.0 }
 0x3cb   :  { %v4402_v8 = vpack.c.bf16 %v9931_v10, %v9929_v29  ;;  %v9939_v4 = vmax.f32 %v9938_v7, 0.0  ;;  %v9941_v11 = vmax.f32 %v9940_v48, 0.0  ;;  %v9943_v52 = vmax.f32 %v9942_v55, 0.0  ;;  %4495 = vst [vmem:[%s8553_s4 + $0x268] sm:$0xff] %v4387_v60  }
 0x3cc   :  { %v4407_v22 = vpack.c.bf16 %v9935_v37, %v9933_v31  ;;  %4496 = vst [vmem:[%s8553_s4 + $0x270] sm:$0xff] %v4392_v63   ;;  %4497 = vst [vmem:[%s8553_s4 + $0x278] sm:$0xff] %v4397_v59  }
 0x3cd   :  { %v4412_v39 = vpack.c.bf16 %v9939_v4, %v9937_v1  ;;  %v4417_v50 = vpack.c.bf16 %v9943_v52, %v9941_v11  ;;  %4498 = vst [vmem:[%s8553_s4 + $0x280] sm:$0xff] %v4402_v8  }
 0x3ce   :  { %4499 = vst [vmem:[%s8553_s4 + $0x288] sm:$0xff] %v4407_v22  }
 0x3cf   :  { %4500 = vst [vmem:[%s8553_s4 + $0x290] sm:$0xff] %v4412_v39   ;;  %4501 = vst [vmem:[%s8553_s4 + $0x298] sm:$0xff] %v4417_v50  }

// kernel: net_bn_forward.3
= control target key start
LH: loop header
LB: loop body
LE: loop exit
PB: predicated region body
PF: predicated region fallthrough
CT: control target
= control target key end

     0   :  { %s5126_s1 = inlined_call_operand.vmem [shape: bf16[1152,128], index: 1, kind: input, shape index: {}]   ;;  %s5127_s0 = inlined_call_operand.vmem [shape: bf16[248,1152], index: 0, kind: input, shape index: {}]   ;;  %s5128_s2 = inlined_call_operand.vmem [shape: f32[1,128], index: 2, kind: input, shape index: {}]   ;;  %s5129_s3 = inlined_call_operand.vmem [shape: f32[1,128], index: 3, kind: input, shape index: {}]   ;;  %s5130_s4 = inlined_call_operand.vmem [shape: bf16[248,128], index: 4, kind: output, shape index: {}]  }
   0x1   :  { %v3554_v0 = vld [vmem:[%s5126_s1 + $0x78] sm:$0xff]   ;;  %v3556_v2 = vld [vmem:[%s5126_s1 + $0x70] sm:$0xff]   ;;  %v3558_v4 = vld [vmem:[%s5126_s1 + $0x68] sm:$0xff]  }
   0x2   :  { %v3555_v1 = vld [vmem:[%s5126_s1 + $0x38] sm:$0xff]   ;;  %3018 = vmatprep.subr.bf16.mxu0 %v3554_v0  ;;  %3538 = vmatprep.subr.bf16.mxu1 %v3554_v0  ;;  %v3557_v3 = vld [vmem:[%s5126_s1 + $0x30] sm:$0xff]   ;;  %v3559_v5 = vld [vmem:[%s5126_s1 + $0x28] sm:$0xff]  }
   0x3   :  { %3019 = vmatpush3.bf16.msra.mxu0 %v3555_v1  ;;  %3546 = vmatpush3.bf16.msra.mxu1 %v3555_v1  ;;  %v3560_v6 = vld [vmem:[%s5126_s1 + $0x60] sm:$0xff]   ;;  %v3562_v8 = vld [vmem:[%s5126_s1 + $0x58] sm:$0xff]   ;;  %v3564_v10 = vld [vmem:[%s5126_s1 + $0x50] sm:$0xff]  }
   0x4   :  { %3020 = vmatprep.subr.bf16.mxu0 %v3556_v2  ;;  %3539 = vmatprep.subr.bf16.mxu1 %v3556_v2  ;;  %v3561_v7 = vld [vmem:[%s5126_s1 + $0x20] sm:$0xff]   ;;  %v3563_v9 = vld [vmem:[%s5126_s1 + $0x18] sm:$0xff]   ;;  %v3565_v13 = vld [vmem:[%s5126_s1 + $0x10] sm:$0xff]  }
   0x5   :  { %v3572_v11 = vld [vmem:[%s5127_s0 + $0x4] ss:$36 sps:$4 sm:$0xff]   ;;  %v3576_v18 = vld [vmem:[%s5126_s1 + $0xf8] sm:$0xff]   ;;  %v3580_v24 = vld [vmem:[%s5126_s1 + $0xf0] sm:$0xff]  }
   0x6   :  { %v3575_v12 = vld [vmem:[%s5127_s0 + $0x364] ss:$36 sps:$4 sm:$0xff]   ;;  %1503 = vmatprep.mubr.bf16.mxu0 %v3572_v11  ;;  %v3577_v21 = vld [vmem:[%s5126_s1 + $0x178] sm:$0xff]   ;;  %v3582_v25 = vld [vmem:[%s5127_s0 + $0x4c] ss:$36 sps:$4 sm:$0xff]  }
   0x7   :  { %3021 = vmatpush3.bf16.msra.mxu0 %v3557_v3  ;;  %3547 = vmatpush3.bf16.msra.mxu1 %v3557_v3  ;;  %v3566_v14 = vld [vmem:[%s5126_s1 + $0x48] sm:$0xff]   ;;  %v3568_v16 = vld [vmem:[%s5126_s1 + $0x40] sm:$0xff]   ;;  %v3578_v22 = vld [vmem:[%s5126_s1 + $0xb8] sm:$0xff]  }
   0x8   :  { %3022 = vmatprep.subr.bf16.mxu0 %v3558_v4  ;;  %3540 = vmatprep.subr.bf16.mxu1 %v3558_v4  ;;  %v3567_v15 = vld [vmem:[%s5126_s1 + $0x8] sm:$0xff]   ;;  %v3569_v17 = vld [vmem:[%s5126_s1] sm:$0xff]   ;;  %v3579_v23 = vld [vmem:[%s5126_s1 + $0x138] sm:$0xff]  }
   0x9   :  { %1599 = vmatprep.mubr.bf16.mxu1 %v3575_v12  ;;  %v3570_v19 = vld [vmem:[%s5127_s0] ss:$36 sps:$4 sm:$0xff]   ;;  %v3584_v26 = vld [vmem:[%s5127_s0 + $0x3ac] ss:$36 sps:$4 sm:$0xff]   ;;  %v3594_v35 = vld [vmem:[%s5127_s0 + $0x94] ss:$36 sps:$4 sm:$0xff]  }
   0xa   :  { %v3573_v20 = vld [vmem:[%s5127_s0 + $0x360] ss:$36 sps:$4 sm:$0xff]   ;;  %v3591_v27 = vld [vmem:[%s5126_s1 + $0x170] sm:$0xff]   ;;  %v3586_v30 = vld [vmem:[%s5127_s0 + $0x48] ss:$36 sps:$4 sm:$0xff]  }
   0xb   :  { %3023 = vmatpush3.bf16.msra.mxu0 %v3559_v5  ;;  %3548 = vmatpush3.bf16.msra.mxu1 %v3559_v5  ;;  %v3581_v28 = vld [vmem:[%s5126_s1 + $0xb0] sm:$0xff]   ;;  %v3587_v31 = vld [vmem:[%s5127_s0 + $0x3a8] ss:$36 sps:$4 sm:$0xff]   ;;  %v3590_v34 = vld [vmem:[%s5126_s1 + $0xe0] sm:$0xff]  }
   0xc   :  { %3024 = vmatprep.subr.bf16.mxu0 %v3560_v6  ;;  %3541 = vmatprep.subr.bf16.mxu1 %v3560_v6  ;;  %v3593_v29 = vld [vmem:[%s5126_s1 + $0x130] sm:$0xff]   ;;  %v3588_v32 = vld [vmem:[%s5126_s1 + $0xe8] sm:$0xff]   ;;  %v3592_v37 = vld [vmem:[%s5126_s1 + $0xa0] sm:$0xff]  }
   0xd   :  { %v3589_v33 = vld [vmem:[%s5126_s1 + $0xa8] sm:$0xff]   ;;  %v3596_v36 = vld [vmem:[%s5127_s0 + $0x3f4] ss:$36 sps:$4 sm:$0xff]   ;;  %v3604_v45 = vld [vmem:[%s5127_s0 + $0xdc] ss:$36 sps:$4 sm:$0xff]  }
   0xe   :  { %v3600_v38 = vld [vmem:[%s5126_s1 + $0xd8] sm:$0xff]   ;;  %v3610_v39 = vld [vmem:[%s5126_s1 + $0x168] sm:$0xff]   ;;  %v3598_v40 = vld [vmem:[%s5127_s0 + $0x90] ss:$36 sps:$4 sm:$0xff]  }
   0xf   :  { %3025 = vmatpush3.bf16.msra.mxu0 %v3561_v7  ;;  %3549 = vmatpush3.bf16.msra.mxu1 %v3561_v7  ;;  %v3599_v41 = vld [vmem:[%s5127_s0 + $0x3f0] ss:$36 sps:$4 sm:$0xff]   ;;  %v168_v42 = vld [vmem:[%s5127_s0 + $0x438] sm:$0xff]  ;;  %v3612_v43 = vld [vmem:[%s5126_s1 + $0x128] sm:$0xff]  }
  0x10   :  { %3026 = vmatprep.subr.bf16.mxu0 %v3562_v8  ;;  %3542 = vmatprep.subr.bf16.mxu1 %v3562_v8  ;;  %v3601_v44 = vld [vmem:[%s5126_s1 + $0x98] sm:$0xff]   ;;  %v3602_v46 = vld [vmem:[%s5126_s1 + $0xd0] sm:$0xff]   ;;  %v2787_v47 = vcombine.high %v168_v42, %v168_v42  ;;  %v3609_v50 = vld [vmem:[%s5126_s1 + $0xc8] sm:$0xff]   ;;  %v2786_v53 = vcombine.low %v168_v42, %v168_v42 }
  0x11   :  { %v3603_v48 = vld [vmem:[%s5126_s1 + $0x90] sm:$0xff]   ;;  %v3607_v49 = vld [vmem:[%s5127_s0 + $0xd8] ss:$36 sps:$4 sm:$0xff]   ;;  %v3611_v51 = vld [vmem:[%s5126_s1 + $0x88] sm:$0xff]  }
  0x12   :  { %v3623_v52 = vld [vmem:[%s5126_s1 + $0x160] sm:$0xff]   ;;  %v3619_v57 = vld [vmem:[%s5127_s0 + $0xc] ss:$36 sps:$4 sm:$0xff]   ;;  %v3621_v59 = vld [vmem:[%s5126_s1 + $0x1f8] sm:$0xff]  }
  0x13   :  { %3027 = vmatpush3.bf16.msra.mxu0 %v3563_v9  ;;  %3550 = vmatpush3.bf16.msra.mxu1 %v3563_v9  ;;  %v3624_v54 = vld [vmem:[%s5126_s1 + $0x120] sm:$0xff]   ;;  %v3617_v60 = vld [vmem:[%s5127_s0 + $0x8] ss:$36 sps:$4 sm:$0xff]   ;;  %v3637_v62 = vld [vmem:[%s5126_s1 + $0x158] sm:$0xff]  }
  0x14   :  { %3028 = vmatprep.subr.bf16.mxu0 %v3564_v10  ;;  %3543 = vmatprep.subr.bf16.mxu1 %v3564_v10  ;;  %v3615_v55 = vld [vmem:[%s5127_s0 + $0x124] ss:$36 sps:$4 sm:$0xff]   ;;  %v3622_v63 = vld [vmem:[%s5126_s1 + $0x1b8] sm:$0xff]   ;;  %v3625_v1 = vld [vmem:[%s5127_s0 + $0x16c] ss:$36 sps:$4 sm:$0xff]  }
  0x15   :  { %v3613_v56 = vld [vmem:[%s5126_s1 + $0xc0] sm:$0xff]   ;;  %v3638_v0 = vld [vmem:[%s5126_s1 + $0x118] sm:$0xff]   ;;  %v3639_v3 = vld [vmem:[%s5126_s1 + $0x1f0] sm:$0xff]  }
  0x16   :  { %v3614_v58 = vld [vmem:[%s5126_s1 + $0x80] sm:$0xff]   ;;  %v3627_v2 = vld [vmem:[%s5127_s0 + $0x54] ss:$36 sps:$4 sm:$0xff]   ;;  %v3629_v7 = vld [vmem:[%s5127_s0 + $0x168] ss:$36 sps:$4 sm:$0xff]  }
  0x17   :  { %3029 = vmatpush3.bf16.msra.mxu0 %v3565_v13  ;;  %3551 = vmatpush3.bf16.msra.mxu1 %v3565_v13  ;;  %v3620_v61 = vld [vmem:[%s5127_s0 + $0x120] ss:$36 sps:$4 sm:$0xff]   ;;  %v3640_v4 = vld [vmem:[%s5126_s1 + $0x1b0] sm:$0xff]   ;;  %v3655_v11 = vld [vmem:[%s5126_s1 + $0x1e8] sm:$0xff]  }
  0x18   :  { %3030 = vmatprep.subr.bf16.mxu0 %v3566_v14  ;;  %3544 = vmatprep.subr.bf16.mxu1 %v3566_v14  ;;  %v3647_v5 = vld [vmem:[%s5126_s1 + $0x150] sm:$0xff]   ;;  %v3633_v10 = vld [vmem:[%s5127_s0 + $0x9c] ss:$36 sps:$4 sm:$0xff]   ;;  %v3656_v12 = vld [vmem:[%s5126_s1 + $0x1a8] sm:$0xff]  }
  0x19   :  { %v3648_v6 = vld [vmem:[%s5126_s1 + $0x110] sm:$0xff]   ;;  %v3663_v14 = vld [vmem:[%s5126_s1 + $0x148] sm:$0xff]  }
  0x1a   :  { %v3630_v8 = vld [vmem:[%s5127_s0 + $0x50] ss:$36 sps:$4 sm:$0xff]   ;;  %v3719_v42 = vld [vmem:[%s5126_s1 + $0x188] sm:$0xff]  }
  0x1b   :  { %3031 = vmatpush3.bf16.msra.mxu0 %v3567_v15  ;;  %3552 = vmatpush3.bf16.msra.mxu1 %v3567_v15  ;;  %v3631_v9 = vld [vmem:[%s5127_s0 + $0x1b4] ss:$36 sps:$4 sm:$0xff]   ;;  %v3664_v15 = vld [vmem:[%s5126_s1 + $0x108] sm:$0xff]  }
  0x1c   :  { %3032 = vmatprep.subr.bf16.mxu0 %v3568_v16  ;;  %3545 = vmatprep.subr.bf16.mxu1 %v3568_v16  ;;  %v3635_v13 = vld [vmem:[%s5127_s0 + $0x1b0] ss:$36 sps:$4 sm:$0xff]   ;;  %v3636_v16 = vld [vmem:[%s5127_s0 + $0x98] ss:$36 sps:$4 sm:$0xff]  }
  0x1f   :  { %3033 = vmatpush3.bf16.msra.mxu0 %v3569_v17  ;;  %3553 = vmatpush3.bf16.msra.mxu1 %v3569_v17  ;;  %v3641_v17 = vld [vmem:[%s5127_s0 + $0x1fc] ss:$36 sps:$4 sm:$0xff]  }
  0x20   :  { %3130 = vmatprep.subr.bf16.mxu1 %v3576_v18  ;;  %3242 = vmatprep.subr.bf16.mxu0 %v3577_v21  ;;  %v3643_v18 = vld [vmem:[%s5127_s0 + $0xe4] ss:$36 sps:$4 sm:$0xff]  }
  0x21   :  { %v3673_v21 = vld [vmem:[%s5126_s1 + $0x140] sm:$0xff]  }
  0x22   :  { %1504 = vmatmul.mubr.bf16.vlgmr.msra.gmra.mxu0 %v3570_v19  ;;  %1600 = vmatmul.mubr.bf16.vlgmr.msra.gmra.mxu1 %v3573_v20  ;;  %v3671_v19 = vld [vmem:[%s5126_s1 + $0x1e0] sm:$0xff]  }
  0x23   :  { %3131 = vmatpush3.bf16.msra.mxu1 %v3578_v22  ;;  %3243 = vmatpush3.bf16.msra.mxu0 %v3579_v23  ;;  %v3672_v20 = vld [vmem:[%s5126_s1 + $0x1a0] sm:$0xff]   ;;  %v3645_v23 = vld [vmem:[%s5127_s0 + $0x1f8] ss:$36 sps:$4 sm:$0xff]  }
  0x24   :  { %3132 = vmatprep.subr.bf16.mxu1 %v3580_v24  ;;  %1511 = vmatprep.mubr.bf16.mxu0 %v3582_v25  ;;  %v3674_v22 = vld [vmem:[%s5126_s1 + $0x100] sm:$0xff]  }
  0x25   :  { %1607 = vmatprep.mubr.bf16.mxu1 %v3584_v26  ;;  %3244 = vmatprep.subr.bf16.mxu0 %v3591_v27  ;;  %v3646_v24 = vld [vmem:[%s5127_s0 + $0xe0] ss:$36 sps:$4 sm:$0xff]   ;;  %v3651_v26 = vld [vmem:[%s5127_s0 + $0x12c] ss:$36 sps:$4 sm:$0xff]   ;;  %v3687_v27 = vld [vmem:[%s5126_s1 + $0x238] sm:$0xff]  }
  0x26   :  { %v3649_v25 = vld [vmem:[%s5127_s0 + $0x244] ss:$36 sps:$4 sm:$0xff]  }
  0x27   :  { %3133 = vmatpush3.bf16.msra.mxu1 %v3581_v28  ;;  %3245 = vmatpush3.bf16.msra.mxu0 %v3593_v29  ;;  %v3688_v28 = vld [vmem:[%s5126_s1 + $0x1d8] sm:$0xff]  }
  0x28   :  { %3134 = vmatprep.subr.bf16.mxu1 %v3588_v32  ;;  %3246 = vmatprep.subr.bf16.mxu0 %v3610_v39  ;;  %v3689_v29 = vld [vmem:[%s5126_s1 + $0x198] sm:$0xff]   ;;  %v3657_v32 = vld [vmem:[%s5127_s0 + $0x28c] ss:$36 sps:$4 sm:$0xff]  }
  0x29   :  { %v3667_v39 = vld [vmem:[%s5127_s0 + $0x1bc] ss:$36 sps:$4 sm:$0xff]  }
  0x2a   :  { %1512 = vmatmul.mubr.bf16.gmra.mxu0 %v3586_v30  ;;  %1608 = vmatmul.mubr.bf16.gmra.mxu1 %v3587_v31  ;;  %v3653_v30 = vld [vmem:[%s5127_s0 + $0x240] ss:$36 sps:$4 sm:$0xff]   ;;  %v3654_v31 = vld [vmem:[%s5127_s0 + $0x128] ss:$36 sps:$4 sm:$0xff]  }
  0x2b   :  { %3135 = vmatpush3.bf16.msra.mxu1 %v3589_v33  ;;  %1519 = vmatprep.mubr.bf16.mxu0 %v3594_v35  ;;  %v3659_v33 = vld [vmem:[%s5127_s0 + $0x174] ss:$36 sps:$4 sm:$0xff]  }
  0x2c   :  { %3136 = vmatprep.subr.bf16.mxu1 %v3590_v34  ;;  %1615 = vmatprep.mubr.bf16.mxu1 %v3596_v36  ;;  %v3703_v34 = vld [vmem:[%s5126_s1 + $0x1d0] sm:$0xff]   ;;  %v3661_v36 = vld [vmem:[%s5127_s0 + $0x288] ss:$36 sps:$4 sm:$0xff]  }
  0x2d   :  { %3247 = vmatpush3.bf16.msra.mxu0 %v3612_v43  ;;  %v3704_v35 = vld [vmem:[%s5126_s1 + $0x190] sm:$0xff]   ;;  %v3670_v43 = vld [vmem:[%s5127_s0 + $0x1b8] ss:$36 sps:$4 sm:$0xff]  }
  0x2e   :  { %3248 = vmatprep.subr.bf16.mxu0 %v3623_v52  ;;  %v3683_v52 = vld [vmem:[%s5127_s0 + $0x10] ss:$36 sps:$4 sm:$0xff]  }
  0x2f   :  { %3137 = vmatpush3.bf16.msra.mxu1 %v3592_v37  ;;  %v3662_v37 = vld [vmem:[%s5127_s0 + $0x170] ss:$36 sps:$4 sm:$0xff]  }
  0x30   :  { %3138 = vmatprep.subr.bf16.mxu1 %v3600_v38  ;;  %v3665_v38 = vld [vmem:[%s5127_s0 + $0x2d4] ss:$36 sps:$4 sm:$0xff]  }
  0x31   :  { %3249 = vmatpush3.bf16.msra.mxu0 %v3624_v54  ;;  %v3690_v54 = vld [vmem:[%s5127_s0 + $0x294] ss:$36 sps:$4 sm:$0xff]  }
  0x32   :  { %1520 = vmatmul.mubr.bf16.gmra.mxu0 %v3598_v40  ;;  %1616 = vmatmul.mubr.bf16.gmra.mxu1 %v3599_v41  ;;  %v3669_v40 = vld [vmem:[%s5127_s0 + $0x2d0] ss:$36 sps:$4 sm:$0xff]   ;;  %v3718_v41 = vld [vmem:[%s5126_s1 + $0x1c8] sm:$0xff]  }
  0x33   :  { %3139 = vmatpush3.bf16.msra.mxu1 %v3601_v44  ;;  %1527 = vmatprep.mubr.bf16.mxu0 %v3604_v45  ;;  %v3675_v44 = vld [vmem:[%s5127_s0 + $0x31c] ss:$36 sps:$4 sm:$0xff]   ;;  %v3677_v45 = vld [vmem:[%s5127_s0 + $0x204] ss:$36 sps:$4 sm:$0xff]  }
  0x34   :  { %3140 = vmatprep.subr.bf16.mxu1 %v3602_v46  ;;  %1623 = vmatprep.mubr.bf16.mxu1 %v2787_v47  ;;  %v3679_v46 = vld [vmem:[%s5127_s0 + $0x318] ss:$36 sps:$4 sm:$0xff]   ;;  %v3733_v47 = vld [vmem:[%s5126_s1 + $0x1c0] sm:$0xff]  }
  0x35   :  { %3250 = vmatprep.subr.bf16.mxu0 %v3637_v62  ;;  %v3732_v62 = vld [vmem:[%s5126_s1 + $0x220] sm:$0xff]  }
  0x36   :  { %3251 = vmatpush3.bf16.msra.mxu0 %v3638_v0  ;;  %v3746_v0 = vld [vmem:[%s5126_s1 + $0x218] sm:$0xff]  }
  0x37   :  { %3141 = vmatpush3.bf16.msra.mxu1 %v3603_v48  ;;  %3252 = vmatprep.subr.bf16.mxu0 %v3647_v5  ;;  %v3680_v48 = vld [vmem:[%s5127_s0 + $0x200] ss:$36 sps:$4 sm:$0xff]  }
  0x38   :  { %3142 = vmatprep.subr.bf16.mxu1 %v3609_v50  ;;  %v3681_v50 = vld [vmem:[%s5127_s0 + $0x24c] ss:$36 sps:$4 sm:$0xff]   ;;  %v3709_v5 = vld [vmem:[%s5127_s0 + $0x320] ss:$36 sps:$4 sm:$0xff]  }
  0x3a   :  { %1528 = vmatmul.mubr.bf16.gmra.mxu0 %v3607_v49  ;;  %1624 = vmatmul.mubr.bf16.gmra.mxu1 %v2786_v53  ;;  %v3734_v49 = vld [vmem:[%s5126_s1 + $0x180] sm:$0xff]   ;;  %v3686_v53 = vld [vmem:[%s5127_s0 + $0x248] ss:$36 sps:$4 sm:$0xff]  }
  0x3b   :  { %3143 = vmatpush3.bf16.msra.mxu1 %v3611_v51  ;;  %1535 = vmatprep.mubr.bf16.mxu0 %v3615_v55  ;;  %v3685_v51 = vld [vmem:[%s5127_s0 + $0x14] ss:$36 sps:$4 sm:$0xff]   ;;  %v3692_v55 = vld [vmem:[%s5127_s0 + $0x5c] ss:$36 sps:$4 sm:$0xff]  }
  0x3c   :  { %3144 = vmatprep.subr.bf16.mxu1 %v3613_v56  ;;  %1663 = vmatprep.mubr.bf16.mxu1 %v3619_v57  ;;  %v3702_v56 = vld [vmem:[%s5126_s1 + $0x230] sm:$0xff]   ;;  %v3717_v57 = vld [vmem:[%s5126_s1 + $0x228] sm:$0xff]  }
  0x3d   :  { %3253 = vmatpush3.bf16.msra.mxu0 %v3648_v6  ;;  %v3772_v6 = vld [vmem:[%s5126_s1 + $0x208] sm:$0xff]  }
  0x3e   :  { %3254 = vmatprep.subr.bf16.mxu0 %v3663_v14  ;;  %v3722_v14 = vld [vmem:[%s5127_s0 + $0x17c] ss:$36 sps:$4 sm:$0xff]  }
  0x3f   :  { %3145 = vmatpush3.bf16.msra.mxu1 %v3614_v58  ;;  %v3694_v58 = vld [vmem:[%s5127_s0 + $0x290] ss:$36 sps:$4 sm:$0xff]  }
  0x40   :  { %3354 = vmatprep.subr.bf16.mxu1 %v3621_v59  ;;  %v3695_v59 = vld [vmem:[%s5127_s0 + $0x58] ss:$36 sps:$4 sm:$0xff]  }
  0x41   :  { %3255 = vmatpush3.bf16.msra.mxu0 %v3664_v15  ;;  %v3724_v15 = vld [vmem:[%s5127_s0 + $0x3b0] ss:$36 sps:$4 sm:$0xff]  }
  0x42   :  { %1536 = vmatmul.mubr.bf16.gmra.mxu0 %v3620_v61  ;;  %1664 = vmatmul.mubr.bf16.vlgmr.msra.gmra.mxu1 %v3617_v60  ;;  %v3696_v60 = vld [vmem:[%s5127_s0 + $0x2dc] ss:$36 sps:$4 sm:$0xff]   ;;  %v3698_v61 = vld [vmem:[%s5127_s0 + $0xa4] ss:$36 sps:$4 sm:$0xff]  }
  0x43   :  { %3355 = vmatpush3.bf16.msra.mxu1 %v3622_v63  ;;  %1543 = vmatprep.mubr.bf16.mxu0 %v3625_v1  ;;  %v3700_v63 = vld [vmem:[%s5127_s0 + $0x2d8] ss:$36 sps:$4 sm:$0xff]   ;;  %v3701_v1 = vld [vmem:[%s5127_s0 + $0xa0] ss:$36 sps:$4 sm:$0xff]  }
  0x44   :  { %1671 = vmatprep.mubr.bf16.mxu1 %v3627_v2  ;;  %3356 = vmatprep.subr.bf16.mxu1 %v3639_v3  ;;  %v3705_v2 = vld [vmem:[%s5127_s0 + $0x324] ss:$36 sps:$4 sm:$0xff]   ;;  %v3707_v3 = vld [vmem:[%s5127_s0 + $0xec] ss:$36 sps:$4 sm:$0xff]  }
  0x45   :  { %3256 = vmatprep.subr.bf16.mxu0 %v3673_v21  ;;  %v3731_v21 = vld [vmem:[%s5127_s0 + $0x1c0] ss:$36 sps:$4 sm:$0xff]  }
  0x46   :  { %3257 = vmatpush3.bf16.msra.mxu0 %v3674_v22 }
  0x47   :  { %3357 = vmatpush3.bf16.msra.mxu1 %v3640_v4  ;;  %3490 = vmatprep.subr.bf16.mxu0 %v3687_v27  ;;  %v3759_v4 = vld [vmem:[%s5126_s1 + $0x210] sm:$0xff]  }
  0x48   :  { %3358 = vmatprep.subr.bf16.mxu1 %v3655_v11  ;;  %v3715_v11 = vld [vmem:[%s5127_s0 + $0x368] ss:$36 sps:$4 sm:$0xff]  }
  0x4a   :  { %1544 = vmatmul.mubr.bf16.gmra.mxu0 %v3629_v7  ;;  %1672 = vmatmul.mubr.bf16.gmra.mxu1 %v3630_v8  ;;  %v3710_v7 = vld [vmem:[%s5127_s0 + $0xe8] ss:$36 sps:$4 sm:$0xff]  }
  0x4b   :  { %1551 = vmatprep.mubr.bf16.mxu0 %v3631_v9  ;;  %1679 = vmatprep.mubr.bf16.mxu1 %v3633_v10  ;;  %v3711_v8 = vld [vmem:[%s5127_s0 + $0x36c] ss:$36 sps:$4 sm:$0xff]   ;;  %v3713_v9 = vld [vmem:[%s5127_s0 + $0x134] ss:$36 sps:$4 sm:$0xff]   ;;  %v3785_v10 = vld [vmem:[%s5126_s1 + $0x200] sm:$0xff]  }
  0x4c   :  { %3359 = vmatpush3.bf16.msra.mxu1 %v3656_v12  ;;  %v3716_v12 = vld [vmem:[%s5127_s0 + $0x130] ss:$36 sps:$4 sm:$0xff]  }
  0x4d   :  { %3360 = vmatprep.subr.bf16.mxu1 %v3671_v19  ;;  %v169_v19 = vld [vmem:[%s5127_s0 + $0x440] sm:$0xff] }
  0x4e   :  { %v2789_v22 = vcombine.high %v169_v19, %v169_v19 }
  0x50   :  { %3361 = vmatpush3.bf16.msra.mxu1 %v3672_v20  ;;  %v3730_v20 = vld [vmem:[%s5127_s0 + $0x3f8] ss:$36 sps:$4 sm:$0xff]  }
  0x51   :  { %3362 = vmatprep.subr.bf16.mxu1 %v3688_v28  ;;  %v3742_v28 = vld [vmem:[%s5127_s0 + $0x18] ss:$36 sps:$4 sm:$0xff]  }
  0x52   :  { %1552 = vmatmul.mubr.bf16.gmra.mxu0 %v3635_v13  ;;  %1680 = vmatmul.mubr.bf16.gmra.mxu1 %v3636_v16  ;;  %v3720_v13 = vld [vmem:[%s5127_s0 + $0x3b4] ss:$36 sps:$4 sm:$0xff]  }
  0x53   :  { %1559 = vmatprep.mubr.bf16.mxu0 %v3641_v17  ;;  %1687 = vmatprep.mubr.bf16.mxu1 %v3643_v18  ;;  %v3725_v16 = vld [vmem:[%s5127_s0 + $0x178] ss:$36 sps:$4 sm:$0xff]   ;;  %v3728_v18 = vld [vmem:[%s5127_s0 + $0x1c4] ss:$36 sps:$4 sm:$0xff]  }
  0x54   :  { %3363 = vmatpush3.bf16.msra.mxu1 %v3689_v29  ;;  %v3726_v17 = vld [vmem:[%s5127_s0 + $0x3fc] ss:$36 sps:$4 sm:$0xff]   ;;  %v3745_v29 = vld [vmem:[%s5127_s0 + $0x250] ss:$36 sps:$4 sm:$0xff]  }
  0x55   :  { %3364 = vmatprep.subr.bf16.mxu1 %v3703_v34  ;;  %v3753_v34 = vld [vmem:[%s5127_s0 + $0x2e4] ss:$36 sps:$4 sm:$0xff]  }
  0x58   :  { %3365 = vmatpush3.bf16.msra.mxu1 %v3704_v35  ;;  %v3755_v35 = vld [vmem:[%s5127_s0 + $0xac] ss:$36 sps:$4 sm:$0xff]  }
  0x59   :  { %3366 = vmatprep.subr.bf16.mxu1 %v3718_v41  ;;  %v3765_v41 = vld [vmem:[%s5127_s0 + $0xf0] ss:$36 sps:$4 sm:$0xff]  }
  0x5a   :  { %1560 = vmatmul.mubr.bf16.gmra.mxu0 %v3645_v23  ;;  %1688 = vmatmul.mubr.bf16.gmra.mxu1 %v3646_v24  ;;  %v3736_v23 = vld [vmem:[%s5127_s0 + $0x20c] ss:$36 sps:$4 sm:$0xff]   ;;  %v2788_v24 = vcombine.low %v169_v19, %v169_v19 }
  0x5b   :  { %1567 = vmatprep.mubr.bf16.mxu0 %v3649_v25  ;;  %1695 = vmatprep.mubr.bf16.mxu1 %v3651_v26  ;;  %v3739_v25 = vld [vmem:[%s5127_s0 + $0x208] ss:$36 sps:$4 sm:$0xff]   ;;  %v3740_v26 = vld [vmem:[%s5127_s0 + $0x254] ss:$36 sps:$4 sm:$0xff]  }
  0x5c   :  { %3367 = vmatpush3.bf16.msra.mxu1 %v3719_v42  ;;  %v3766_v42 = vld [vmem:[%s5127_s0 + $0x374] ss:$36 sps:$4 sm:$0xff]  }
  0x5d   :  { %3368 = vmatprep.subr.bf16.mxu1 %v3733_v47  ;;  %v3775_v47 = vld [vmem:[%s5127_s0 + $0x184] ss:$36 sps:$4 sm:$0xff]  }
  0x60   :  { %3369 = vmatpush3.bf16.msra.mxu1 %v3734_v49 }
  0x62   :  { %1568 = vmatmul.mubr.bf16.gmra.mxu0 %v3653_v30  ;;  %1696 = vmatmul.mubr.bf16.gmra.mxu1 %v3654_v31  ;;  %v3747_v30 = vld [vmem:[%s5127_s0 + $0x29c] ss:$36 sps:$4 sm:$0xff]   ;;  %v3749_v31 = vld [vmem:[%s5127_s0 + $0x64] ss:$36 sps:$4 sm:$0xff]  }
  0x63   :  { %1575 = vmatprep.mubr.bf16.mxu0 %v3657_v32  ;;  %1703 = vmatprep.mubr.bf16.mxu1 %v3659_v33  ;;  %v3751_v32 = vld [vmem:[%s5127_s0 + $0x298] ss:$36 sps:$4 sm:$0xff]   ;;  %v3752_v33 = vld [vmem:[%s5127_s0 + $0x60] ss:$36 sps:$4 sm:$0xff]  }
  0x6a   :  { %1576 = vmatmul.mubr.bf16.gmra.mxu0 %v3661_v36  ;;  %1704 = vmatmul.mubr.bf16.gmra.mxu1 %v3662_v37  ;;  %v3757_v36 = vld [vmem:[%s5127_s0 + $0x2e0] ss:$36 sps:$4 sm:$0xff]   ;;  %v3758_v37 = vld [vmem:[%s5127_s0 + $0xa8] ss:$36 sps:$4 sm:$0xff]  }
  0x6b   :  { %1583 = vmatprep.mubr.bf16.mxu0 %v3665_v38  ;;  %1711 = vmatprep.mubr.bf16.mxu1 %v3667_v39  ;;  %v3760_v38 = vld [vmem:[%s5127_s0 + $0x32c] ss:$36 sps:$4 sm:$0xff]   ;;  %v3762_v39 = vld [vmem:[%s5127_s0 + $0xf4] ss:$36 sps:$4 sm:$0xff]  }
  0x72   :  { %1584 = vmatmul.mubr.bf16.gmra.mxu0 %v3669_v40  ;;  %1712 = vmatmul.mubr.bf16.gmra.mxu1 %v3670_v43  ;;  %v3764_v40 = vld [vmem:[%s5127_s0 + $0x328] ss:$36 sps:$4 sm:$0xff]   ;;  %v3768_v43 = vld [vmem:[%s5127_s0 + $0x13c] ss:$36 sps:$4 sm:$0xff]  }
  0x73   :  { %1591 = vmatprep.mubr.bf16.mxu0 %v3675_v44  ;;  %1719 = vmatprep.mubr.bf16.mxu1 %v3677_v45  ;;  %v3770_v44 = vld [vmem:[%s5127_s0 + $0x370] ss:$36 sps:$4 sm:$0xff]   ;;  %v3771_v45 = vld [vmem:[%s5127_s0 + $0x138] ss:$36 sps:$4 sm:$0xff]  }
  0x7a   :  { %1592 = vmatmul.mubr.bf16.gmra.mxu0 %v3679_v46  ;;  %1720 = vmatmul.mubr.bf16.gmra.mxu1 %v3680_v48  ;;  %v3773_v46 = vld [vmem:[%s5127_s0 + $0x3bc] ss:$36 sps:$4 sm:$0xff]  }
  0x7b   :  { %1727 = vmatprep.mubr.bf16.mxu1 %v3681_v50  ;;  %1823 = vmatprep.mubr.bf16.mxu0 %v3685_v51 }
  0x82   :  { %1728 = vmatmul.mubr.bf16.gmra.mxu1 %v3686_v53  ;;  %1824 = vmatmul.mubr.bf16.vlgmr.msra.gmra.mxu0 %v3683_v52 }
  0x83   :  { %3491 = vmatpush3.bf16.msra.mxu0 %v3687_v27  ;;  %1735 = vmatprep.mubr.bf16.mxu1 %v3690_v54  ;;  %v3744_v27 = vld [vmem:[%s5127_s0 + $0x1c] ss:$36 sps:$4 sm:$0xff]  }
  0x84   :  { %1831 = vmatprep.mubr.bf16.mxu0 %v3692_v55  ;;  %3492 = vmatprep.subr.bf16.mxu0 %v3702_v56 }
  0x87   :  { %3493 = vmatpush3.bf16.msra.mxu0 %v3702_v56  ;;  %v3777_v56 = vld [vmem:[%s5127_s0 + $0x3b8] ss:$36 sps:$4 sm:$0xff]  }
  0x88   :  { %3494 = vmatprep.subr.bf16.mxu0 %v3717_v57 }
  0x8a   :  { %1736 = vmatmul.mubr.bf16.gmra.mxu1 %v3694_v58  ;;  %1832 = vmatmul.mubr.bf16.gmra.mxu0 %v3695_v59  ;;  %v3779_v58 = vld [vmem:[%s5127_s0 + $0x404] ss:$36 sps:$4 sm:$0xff]   ;;  %v3781_v59 = vld [vmem:[%s5127_s0 + $0x1cc] ss:$36 sps:$4 sm:$0xff]  }
  0x8b   :  { %1743 = vmatprep.mubr.bf16.mxu1 %v3696_v60  ;;  %1839 = vmatprep.mubr.bf16.mxu0 %v3698_v61 }
  0x8c   :  { %3495 = vmatpush3.bf16.msra.mxu0 %v3717_v57  ;;  %v3778_v57 = vld [vmem:[%s5127_s0 + $0x180] ss:$36 sps:$4 sm:$0xff]  }
  0x8d   :  { %3496 = vmatprep.subr.bf16.mxu0 %v3732_v62 }
  0x90   :  { %3497 = vmatpush3.bf16.msra.mxu0 %v3732_v62 }
  0x91   :  { %3498 = vmatprep.subr.bf16.mxu0 %v3746_v0 }
  0x92   :  { %1744 = vmatmul.mubr.bf16.gmra.mxu1 %v3700_v63  ;;  %1840 = vmatmul.mubr.bf16.gmra.mxu0 %v3701_v1 }
  0x93   :  { %1751 = vmatprep.mubr.bf16.mxu1 %v3705_v2  ;;  %1847 = vmatprep.mubr.bf16.mxu0 %v3707_v3 }
  0x94   :  { %3499 = vmatpush3.bf16.msra.mxu0 %v3746_v0 }
  0x95   :  { %3500 = vmatprep.subr.bf16.mxu0 %v3759_v4 }
  0x98   :  { %3501 = vmatpush3.bf16.msra.mxu0 %v3759_v4  ;;  %v170_v4 = vld [vmem:[%s5127_s0 + $0x448] sm:$0xff] }
  0x99   :  { %3502 = vmatprep.subr.bf16.mxu0 %v3772_v6 }
  0x9a   :  { %1752 = vmatmul.mubr.bf16.gmra.mxu1 %v3709_v5  ;;  %1848 = vmatmul.mubr.bf16.gmra.mxu0 %v3710_v7 }
  0x9b   :  { %1759 = vmatprep.mubr.bf16.mxu1 %v3711_v8  ;;  %1855 = vmatprep.mubr.bf16.mxu0 %v3713_v9  ;;  %v3783_v9 = vld [vmem:[%s5127_s0 + $0x400] ss:$36 sps:$4 sm:$0xff]  }
  0x9c   :  { %3503 = vmatpush3.bf16.msra.mxu0 %v3772_v6 }
  0x9d   :  { %3504 = vmatprep.subr.bf16.mxu0 %v3785_v10 }
  0xa0   :  { %3505 = vmatpush3.bf16.msra.mxu0 %v3785_v10  ;;  %v3784_v10 = vld [vmem:[%s5127_s0 + $0x1c8] ss:$36 sps:$4 sm:$0xff]  }
  0xa2   :  { %1760 = vmatmul.mubr.bf16.gmra.mxu1 %v3715_v11  ;;  %1856 = vmatmul.mubr.bf16.gmra.mxu0 %v3716_v12  ;;  %v2791_v11 = vcombine.high %v170_v4, %v170_v4  ;;  %v3787_v12 = vld [vmem:[%s5127_s0 + $0x214] ss:$36 sps:$4 sm:$0xff]  }
  0xa3   :  { %1767 = vmatprep.mubr.bf16.mxu1 %v3720_v13  ;;  %1863 = vmatprep.mubr.bf16.mxu0 %v3722_v14 }
  0xaa   :  { %1768 = vmatmul.mubr.bf16.gmra.mxu1 %v3724_v15  ;;  %1864 = vmatmul.mubr.bf16.gmra.mxu0 %v3725_v16 }
  0xab   :  { %1775 = vmatprep.mubr.bf16.mxu1 %v3726_v17  ;;  %1871 = vmatprep.mubr.bf16.mxu0 %v3728_v18 }
  0xb2   :  { %1776 = vmatmul.mubr.bf16.gmra.mxu1 %v3730_v20  ;;  %1872 = vmatmul.mubr.bf16.gmra.mxu0 %v3731_v21 }
  0xb3   :  { %1783 = vmatprep.mubr.bf16.mxu1 %v2789_v22  ;;  %1879 = vmatprep.mubr.bf16.mxu0 %v3736_v23 }
  0xba   :  { %1784 = vmatmul.mubr.bf16.gmra.mxu1 %v2788_v24  ;;  %1880 = vmatmul.mubr.bf16.gmra.mxu0 %v3739_v25  ;;  %v2790_v25 = vcombine.low %v170_v4, %v170_v4 }
  0xbb   :  { %1887 = vmatprep.mubr.bf16.mxu0 %v3740_v26  ;;  %1983 = vmatprep.mubr.bf16.mxu1 %v3744_v27  ;;  %v3790_v26 = vld [vmem:[%s5127_s0 + $0x210] ss:$36 sps:$4 sm:$0xff]   ;;  %v3793_v27 = vld [vmem:[%s5127_s0 + $0x25c] ss:$36 sps:$4 sm:$0xff]  }
  0xc2   :  { %1888 = vmatmul.mubr.bf16.gmra.mxu0 %v3745_v29  ;;  %1984 = vmatmul.mubr.bf16.vlgmr.msra.gmra.mxu1 %v3742_v28  ;;  %v3794_v28 = vld [vmem:[%s5127_s0 + $0x20] ss:$36 sps:$4 sm:$0xff]  }
  0xc3   :  { %1895 = vmatprep.mubr.bf16.mxu0 %v3747_v30  ;;  %1991 = vmatprep.mubr.bf16.mxu1 %v3749_v31 }
  0xca   :  { %1896 = vmatmul.mubr.bf16.gmra.mxu0 %v3751_v32  ;;  %1992 = vmatmul.mubr.bf16.gmra.mxu1 %v3752_v33 }
  0xcb   :  { %1903 = vmatprep.mubr.bf16.mxu0 %v3753_v34  ;;  %1999 = vmatprep.mubr.bf16.mxu1 %v3755_v35 }
  0xd2   :  { %1904 = vmatmul.mubr.bf16.gmra.mxu0 %v3757_v36  ;;  %2000 = vmatmul.mubr.bf16.gmra.mxu1 %v3758_v37 }
  0xd3   :  { %1911 = vmatprep.mubr.bf16.mxu0 %v3760_v38  ;;  %2007 = vmatprep.mubr.bf16.mxu1 %v3762_v39 }
  0xda   :  { %1912 = vmatmul.mubr.bf16.gmra.mxu0 %v3764_v40  ;;  %2008 = vmatmul.mubr.bf16.gmra.mxu1 %v3765_v41  ;;  %v3791_v41 = vld [vmem:[%s5127_s0 + $0x258] ss:$36 sps:$4 sm:$0xff]  }
  0xdb   :  { %1919 = vmatprep.mubr.bf16.mxu0 %v3766_v42  ;;  %2015 = vmatprep.mubr.bf16.mxu1 %v3768_v43  ;;  %v3795_v42 = vld [vmem:[%s5127_s0 + $0x68] ss:$36 sps:$4 sm:$0xff]  }
  0xdc   :  { %v3798_v43 = vld [vmem:[%s5127_s0 + $0x2a4] ss:$36 sps:$4 sm:$0xff]  }
  0xe2   :  { %v3034_v48 = vpop.f32.mrf.mxu0  ;;  %v3106_v49 = vpop.f32.mrf.mxu1  ;;  %1920 = vmatmul.mubr.bf16.gmra.mxu0 %v3770_v44  ;;  %2016 = vmatmul.mubr.bf16.gmra.mxu1 %v3771_v45  ;;  %v3799_v44 = vld [vmem:[%s5127_s0 + $0xb0] ss:$36 sps:$4 sm:$0xff]  }
  0xe3   :  { %1927 = vmatprep.mubr.bf16.mxu0 %v3773_v46  ;;  %2023 = vmatprep.mubr.bf16.mxu1 %v3775_v47 }
  0xe4   :  { %v3035_v50 = vpop.f32.mrf.mxu0  ;;  %v3107_v51 = vpop.f32.mrf.mxu1 }
  0xe5   :  { %v4373_v52 = vadd.f32 %v3035_v50, %v3034_v48  ;;  %v4375_v53 = vadd.f32 %v3107_v51, %v3106_v49 }
  0xe6   :  { %v3037_v54 = vpop.f32.mrf.mxu0  ;;  %v3109_v55 = vpop.f32.mrf.mxu1 }
  0xe8   :  { %v3038_v60 = vpop.f32.mrf.mxu0  ;;  %v3110_v61 = vpop.f32.mrf.mxu1 }
  0xe9   :  { %v4389_v62 = vadd.f32 %v3038_v60, %v3037_v54  ;;  %v4391_v63 = vadd.f32 %v3110_v61, %v3109_v55  ;;  %v3803_v61 = vld [vmem:[%s5127_s0 + $0x2ec] ss:$36 sps:$4 sm:$0xff]  }
  0xea   :  { %v3040_v0 = vpop.f32.mrf.mxu0  ;;  %v3112_v1 = vpop.f32.mrf.mxu1  ;;  %1928 = vmatmul.mubr.bf16.gmra.mxu0 %v3777_v56  ;;  %2024 = vmatmul.mubr.bf16.gmra.mxu1 %v3778_v57 }
  0xeb   :  { %1935 = vmatprep.mubr.bf16.mxu0 %v3779_v58  ;;  %2031 = vmatprep.mubr.bf16.mxu1 %v3781_v59  ;;  %v3796_v58 = vld [vmem:[%s5127_s0 + $0x2a0] ss:$36 sps:$4 sm:$0xff]   ;;  %v3800_v59 = vld [vmem:[%s5127_s0 + $0xf8] ss:$36 sps:$4 sm:$0xff]  }
  0xec   :  { %v3041_v2 = vpop.f32.mrf.mxu0  ;;  %v3113_v3 = vpop.f32.mrf.mxu1 }
  0xed   :  { %v4396_v5 = vadd.f32 %v3041_v2, %v3040_v0  ;;  %v4398_v6 = vadd.f32 %v3113_v3, %v3112_v1  ;;  %v3804_v0 = vld [vmem:[%s5127_s0 + $0x140] ss:$36 sps:$4 sm:$0xff]  }
  0xee   :  { %v3043_v7 = vpop.f32.mrf.mxu0  ;;  %v3115_v8 = vpop.f32.mrf.mxu1 }
  0xf0   :  { %v3044_v13 = vpop.f32.mrf.mxu0  ;;  %v3116_v14 = vpop.f32.mrf.mxu1 }
  0xf1   :  { %v4409_v15 = vadd.f32 %v3044_v13, %v3043_v7  ;;  %v4411_v16 = vadd.f32 %v3116_v14, %v3115_v8 }
  0xf2   :  { %v3046_v17 = vpop.f32.mrf.mxu0  ;;  %v3118_v18 = vpop.f32.mrf.mxu1  ;;  %1936 = vmatmul.mubr.bf16.gmra.mxu0 %v3783_v9  ;;  %2032 = vmatmul.mubr.bf16.gmra.mxu1 %v3784_v10 }
  0xf3   :  { %1943 = vmatprep.mubr.bf16.mxu0 %v2791_v11  ;;  %2039 = vmatprep.mubr.bf16.mxu1 %v3787_v12 }
  0xf4   :  { %v3047_v19 = vpop.f32.mrf.mxu0  ;;  %v3119_v20 = vpop.f32.mrf.mxu1 }
  0xf5   :  { %v4413_v21 = vadd.f32 %v3047_v19, %v3046_v17  ;;  %v4415_v22 = vadd.f32 %v3119_v20, %v3118_v18  ;;  %v3801_v17 = vld [vmem:[%s5127_s0 + $0x2e8] ss:$36 sps:$4 sm:$0xff]   ;;  %v3808_v19 = vld [vmem:[%s5127_s0 + $0x334] ss:$36 sps:$4 sm:$0xff]  }
  0xf6   :  { %v3049_v23 = vpop.f32.mrf.mxu0  ;;  %v3121_v24 = vpop.f32.mrf.mxu1  ;;  %v3805_v18 = vld [vmem:[%s5127_s0 + $0x188] ss:$36 sps:$4 sm:$0xff]   ;;  %v3809_v20 = vld [vmem:[%s5127_s0 + $0x1d0] ss:$36 sps:$4 sm:$0xff]  }
  0xf8   :  { %v3050_v29 = vpop.f32.mrf.mxu0  ;;  %v3122_v30 = vpop.f32.mrf.mxu1 }
  0xf9   :  { %v4426_v31 = vadd.f32 %v3050_v29, %v3049_v23  ;;  %v4428_v32 = vadd.f32 %v3122_v30, %v3121_v24 }
  0xfa   :  { %v3052_v33 = vpop.f32.mrf.mxu0  ;;  %v3124_v34 = vpop.f32.mrf.mxu1  ;;  %1944 = vmatmul.mubr.bf16.gmra.mxu0 %v2790_v25  ;;  %2040 = vmatmul.mubr.bf16.gmra.mxu1 %v3790_v26 }
  0xfb   :  { %2047 = vmatprep.mubr.bf16.mxu1 %v3793_v27  ;;  %3506 = vmatprep.mubr.bf16.mxu0 %v3794_v28 }
  0xfc   :  { %v3053_v35 = vpop.f32.mrf.mxu0  ;;  %v3125_v36 = vpop.f32.mrf.mxu1 }
  0xfd   :  { %v4430_v37 = vadd.f32 %v3053_v35, %v3052_v33  ;;  %v4432_v38 = vadd.f32 %v3125_v36, %v3124_v34 }
  0xfe   :  { %v3055_v39 = vpop.f32.mrf.mxu0  ;;  %v3127_v40 = vpop.f32.mrf.mxu1 }
  0xff   :  { %v3810_v40 = vld [vmem:[%s5127_s0 + $0x218] ss:$36 sps:$4 sm:$0xff]  }
 0x100   :  { %v3056_v45 = vpop.f32.mrf.mxu0  ;;  %v3128_v46 = vpop.f32.mrf.mxu1 }
 0x101   :  { %v4446_v47 = vadd.f32 %v3056_v45, %v3055_v39  ;;  %v3806_v39 = vld [vmem:[%s5127_s0 + $0x330] ss:$36 sps:$4 sm:$0xff]  }
 0x102   :  { %v3058_v48 = vpop.f32.mrf.mxu0  ;;  %v3146_v49 = vpop.f32.mrf.mxu1  ;;  %2048 = vmatmul.mubr.bf16.gmra.mxu1 %v3791_v41  ;;  %3507 = vmatmul.mubr.bf16.vlgmr.msra.gmra.mxu0 %v3795_v42  ;;  %v3813_v41 = vld [vmem:[%s5127_s0 + $0x37c] ss:$36 sps:$4 sm:$0xff]  }
 0x103   :  { %2055 = vmatprep.mubr.bf16.mxu1 %v3798_v43  ;;  %3510 = vmatprep.mubr.bf16.mxu0 %v3799_v44  ;;  %v3814_v42 = vld [vmem:[%s5127_s0 + $0x260] ss:$36 sps:$4 sm:$0xff]  }
 0x104   :  { %v3059_v50 = vpop.f32.mrf.mxu0  ;;  %v3147_v51 = vpop.f32.mrf.mxu1 }
 0x105   :  { %v4448_v54 = vadd.f32 %v3059_v50, %v3058_v48  ;;  %v3148_v55 = vadd.f32 %v3147_v51, %v3146_v49 }
 0x106   :  { %v3061_v56 = vpop.f32.mrf.mxu0  ;;  %v3149_v57 = vpop.f32.mrf.mxu1 }
 0x107   :  { %v4457_v60 = vadd.f32 %v3148_v55, %v4373_v52 }
 0x108   :  { %v3062_v1 = vpop.f32.mrf.mxu0  ;;  %v3150_v2 = vpop.f32.mrf.mxu1 }
 0x109   :  { %v4465_v3 = vadd.f32 %v3062_v1, %v3061_v56  ;;  %v3151_v4 = vadd.f32 %v3150_v2, %v3149_v57  ;;  %v3819_v1 = vld [vmem:[%s5127_s0 + $0x2f0] ss:$36 sps:$4 sm:$0xff]  }
 0x10a   :  { %v3064_v7 = vpop.f32.mrf.mxu0  ;;  %v3152_v8 = vpop.f32.mrf.mxu1  ;;  %2056 = vmatmul.mubr.bf16.gmra.mxu1 %v3796_v58  ;;  %3511 = vmatmul.mubr.bf16.gmra.mxu0 %v3800_v59  ;;  %v3811_v59 = vld [vmem:[%s5127_s0 + $0x378] ss:$36 sps:$4 sm:$0xff]  }
 0x10b   :  { %v4468_v52 = vadd.f32 %v3151_v4, %v4389_v62  ;;  %2063 = vmatprep.mubr.bf16.mxu1 %v3803_v61  ;;  %3514 = vmatprep.mubr.bf16.mxu0 %v3804_v0  ;;  %v3815_v61 = vld [vmem:[%s5127_s0 + $0x2a8] ss:$36 sps:$4 sm:$0xff]  }
 0x10c   :  { %v3065_v9 = vpop.f32.mrf.mxu0  ;;  %v3153_v10 = vpop.f32.mrf.mxu1  ;;  %v3818_v0 = vld [vmem:[%s5127_s0 + $0x3c4] ss:$36 sps:$4 sm:$0xff]  }
 0x10d   :  { %v4470_v11 = vadd.f32 %v3065_v9, %v3064_v7  ;;  %v3154_v12 = vadd.f32 %v3153_v10, %v3152_v8 }
 0x10e   :  { %v3067_v13 = vpop.f32.mrf.mxu0  ;;  %v3155_v14 = vpop.f32.mrf.mxu1 }
 0x10f   :  { %v4479_v62 = vadd.f32 %v3154_v12, %v4396_v5 }
 0x110   :  { %v3068_v23 = vpop.f32.mrf.mxu0  ;;  %v3156_v24 = vpop.f32.mrf.mxu1 }
 0x111   :  { %v4487_v25 = vadd.f32 %v3068_v23, %v3067_v13  ;;  %v3157_v26 = vadd.f32 %v3156_v24, %v3155_v14  ;;  %v3820_v23 = vld [vmem:[%s5127_s0 + $0x338] ss:$36 sps:$4 sm:$0xff]   ;;  %v3823_v24 = vld [vmem:[%s5127_s0 + $0x40c] ss:$36 sps:$4 sm:$0xff]  }
 0x112   :  { %v3070_v27 = vpop.f32.mrf.mxu0  ;;  %v3158_v28 = vpop.f32.mrf.mxu1  ;;  %2064 = vmatmul.mubr.bf16.gmra.mxu1 %v3801_v17  ;;  %3515 = vmatmul.mubr.bf16.gmra.mxu0 %v3805_v18 }
 0x113   :  { %v4490_v5 = vadd.f32 %v3157_v26, %v4409_v15  ;;  %2071 = vmatprep.mubr.bf16.mxu1 %v3808_v19  ;;  %3518 = vmatprep.mubr.bf16.mxu0 %v3809_v20  ;;  %v3816_v20 = vld [vmem:[%s5127_s0 + $0x3c0] ss:$36 sps:$4 sm:$0xff]  }
 0x114   :  { %v3071_v29 = vpop.f32.mrf.mxu0  ;;  %v3159_v30 = vpop.f32.mrf.mxu1  ;;  %v3824_v26 = vld [vmem:[%s5127_s0 + $0x380] ss:$36 sps:$4 sm:$0xff]  }
 0x115   :  { %v4492_v33 = vadd.f32 %v3071_v29, %v3070_v27  ;;  %v3160_v34 = vadd.f32 %v3159_v30, %v3158_v28 }
 0x116   :  { %v3073_v35 = vpop.f32.mrf.mxu0  ;;  %v3161_v36 = vpop.f32.mrf.mxu1 }
 0x117   :  { %v4501_v15 = vadd.f32 %v3160_v34, %v4413_v21 }
 0x118   :  { %v3074_v43 = vpop.f32.mrf.mxu0  ;;  %v3162_v44 = vpop.f32.mrf.mxu1 }
 0x119   :  { %v4509_v45 = vadd.f32 %v3074_v43, %v3073_v35  ;;  %v3163_v46 = vadd.f32 %v3162_v44, %v3161_v36 }
 0x11a   :  { %v3076_v48 = vpop.f32.mrf.mxu0  ;;  %v3164_v49 = vpop.f32.mrf.mxu1  ;;  %2072 = vmatmul.mubr.bf16.gmra.mxu1 %v3806_v39  ;;  %3519 = vmatmul.mubr.bf16.gmra.mxu0 %v3810_v40  ;;  %v171_v40 = vld [vmem:[%s5127_s0 + $0x450] sm:$0xff] }
 0x11b   :  { %v4512_v21 = vadd.f32 %v3163_v46, %v4426_v31  ;;  %2079 = vmatprep.mubr.bf16.mxu1 %v3813_v41  ;;  %3522 = vmatprep.mubr.bf16.mxu0 %v3814_v42  ;;  %v3821_v46 = vld [vmem:[%s5127_s0 + $0x408] ss:$36 sps:$4 sm:$0xff]  }
 0x11c   :  { %v3077_v50 = vpop.f32.mrf.mxu0  ;;  %v3165_v51 = vpop.f32.mrf.mxu1 }
 0x11d   :  { %v4514_v55 = vadd.f32 %v3077_v50, %v3076_v48  ;;  %v3166_v56 = vadd.f32 %v3165_v51, %v3164_v49  ;;  %v2793_v49 = vcombine.high %v171_v40, %v171_v40  ;;  %v3828_v50 = vld [vmem:[%s5127_s0 + $0x410] ss:$36 sps:$4 sm:$0xff]  }
 0x11e   :  { %v3079_v57 = vpop.f32.mrf.mxu0  ;;  %v3167_v58 = vpop.f32.mrf.mxu1 }
 0x11f   :  { %v4523_v31 = vadd.f32 %v3166_v56, %v4430_v37 }
 0x120   :  { %v3080_v2 = vpop.f32.mrf.mxu0  ;;  %v3168_v4 = vpop.f32.mrf.mxu1 }
 0x121   :  { %v4531_v7 = vadd.f32 %v3080_v2, %v3079_v57  ;;  %v3169_v8 = vadd.f32 %v3168_v4, %v3167_v58 }
 0x122   :  { %v3082_v9 = vpop.f32.mrf.mxu0  ;;  %v3170_v10 = vpop.f32.mrf.mxu1  ;;  %2080 = vmatmul.mubr.bf16.gmra.mxu1 %v3811_v59  ;;  %3523 = vmatmul.mubr.bf16.gmra.mxu0 %v3815_v61 }
 0x123   :  { %v4534_v37 = vadd.f32 %v3169_v8, %v4446_v47  ;;  %2087 = vmatprep.mubr.bf16.mxu1 %v3818_v0  ;;  %3526 = vmatprep.mubr.bf16.mxu0 %v3819_v1 }
 0x124   :  { %v3083_v12 = vpop.f32.mrf.mxu0  ;;  %v3171_v13 = vpop.f32.mrf.mxu1 }
 0x125   :  { %v4536_v14 = vadd.f32 %v3083_v12, %v3082_v9  ;;  %v3172_v17 = vadd.f32 %v3171_v13, %v3170_v10  ;;  %v2792_v10 = vcombine.low %v171_v40, %v171_v40  ;;  %v3829_v12 = vld [vmem:[%s5127_s0 + $0x458] ss:$0 sps:$4 sm:$0xff]  }
 0x126   :  { %v3085_v18 = vpop.f32.mrf.mxu0  ;;  %v3173_v19 = vpop.f32.mrf.mxu1 }
 0x127   :  { %v4545_v47 = vadd.f32 %v3172_v17, %v4448_v54 }
 0x128   :  { %v3086_v27 = vpop.f32.mrf.mxu0  ;;  %v3174_v28 = vpop.f32.mrf.mxu1 }
 0x129   :  { %v4553_v29 = vadd.f32 %v3086_v27, %v3085_v18  ;;  %v3175_v30 = vadd.f32 %v3174_v28, %v3173_v19 }
 0x12a   :  { %v3088_v34 = vpop.f32.mrf.mxu0  ;;  %v3176_v35 = vpop.f32.mrf.mxu1  ;;  %2088 = vmatmul.mubr.bf16.gmra.mxu1 %v3816_v20  ;;  %3527 = vmatmul.mubr.bf16.gmra.mxu0 %v3820_v23 }
 0x12b   :  { %v4556_v54 = vadd.f32 %v3175_v30, %v4465_v3  ;;  %2095 = vmatprep.mubr.bf16.mxu1 %v3823_v24  ;;  %3530 = vmatprep.mubr.bf16.mxu0 %v3824_v26  ;;  %v3825_v3 = vld [vmem:[%s5127_s0 + $0x3c8] ss:$36 sps:$4 sm:$0xff]  }
 0x12c   :  { %v3089_v36 = vpop.f32.mrf.mxu0  ;;  %v3177_v39 = vpop.f32.mrf.mxu1 }
 0x12d   :  { %v4561_v41 = vadd.f32 %v3089_v36, %v3088_v34  ;;  %v3178_v42 = vadd.f32 %v3177_v39, %v3176_v35 }
 0x12e   :  { %v3091_v43 = vpop.f32.mrf.mxu0  ;;  %v3179_v44 = vpop.f32.mrf.mxu1 }
 0x12f   :  { %v4570_v48 = vadd.f32 %v3178_v42, %v4470_v11 }
 0x130   :  { %v3092_v51 = vpop.f32.mrf.mxu0  ;;  %v3180_v56 = vpop.f32.mrf.mxu1 }
 0x131   :  { %v4575_v57 = vadd.f32 %v3092_v51, %v3091_v43  ;;  %v3181_v58 = vadd.f32 %v3180_v56, %v3179_v44 }
 0x132   :  { %v3094_v59 = vpop.f32.mrf.mxu0  ;;  %v3182_v61 = vpop.f32.mrf.mxu1  ;;  %2096 = vmatmul.mubr.bf16.gmra.mxu1 %v3821_v46  ;;  %3531 = vmatmul.mubr.bf16.gmra.mxu0 %v3825_v3 }
 0x133   :  { %v4578_v0 = vadd.f32 %v3181_v58, %v4487_v25  ;;  %2103 = vmatprep.mubr.bf16.mxu1 %v2793_v49  ;;  %3534 = vmatprep.mubr.bf16.mxu0 %v3828_v50 }
 0x134   :  { %v3095_v11 = vpop.f32.mrf.mxu0  ;;  %v3183_v1 = vpop.f32.mrf.mxu1 }
 0x135   :  { %v4580_v2 = vadd.f32 %v3095_v11, %v3094_v59  ;;  %v3184_v4 = vadd.f32 %v3183_v1, %v3182_v61 }
 0x136   :  { %v3097_v8 = vpop.f32.mrf.mxu0  ;;  %v3185_v9 = vpop.f32.mrf.mxu1 }
 0x137   :  { %v4586_v13 = vadd.f32 %v3184_v4, %v4492_v33 }
 0x138   :  { %v3098_v17 = vpop.f32.mrf.mxu0  ;;  %v3186_v25 = vpop.f32.mrf.mxu1 }
 0x139   :  { %v4588_v18 = vadd.f32 %v3098_v17, %v3097_v8  ;;  %v3187_v19 = vadd.f32 %v3186_v25, %v3185_v9 }
 0x13a   :  { %v3100_v20 = vpop.f32.mrf.mxu0  ;;  %v3188_v23 = vpop.f32.mrf.mxu1  ;;  %2104 = vmatmul.mubr.bf16.gmra.mxu1 %v2792_v10  ;;  %3535 = vmatmul.mubr.bf16.gmra.mxu0 %v3829_v12 }
 0x13b   :  { %v4591_v24 = vadd.f32 %v3187_v19, %v4509_v45 }
 0x13c   :  { %v3101_v26 = vpop.f32.mrf.mxu0  ;;  %v3189_v27 = vpop.f32.mrf.mxu1 }
 0x13d   :  { %v4593_v28 = vadd.f32 %v3101_v26, %v3100_v20  ;;  %v3190_v30 = vadd.f32 %v3189_v27, %v3188_v23 }
 0x13e   :  { %v3103_v34 = vpop.f32.mrf.mxu0  ;;  %v3191_v33 = vpop.f32.mrf.mxu1 }
 0x13f   :  { %v4596_v35 = vadd.f32 %v3190_v30, %v4514_v55 }
 0x140   :  { %v3104_v36 = vpop.f32.mrf.mxu0  ;;  %v3192_v39 = vpop.f32.mrf.mxu1 }
 0x141   :  { %v4598_v40 = vadd.f32 %v3104_v36, %v3103_v34  ;;  %v3193_v42 = vadd.f32 %v3192_v39, %v3191_v33 }
 0x142   :  { %v3194_v43 = vpop.f32.mrf.mxu1  ;;  %v3258_v44 = vpop.f32.mrf.mxu0 }
 0x143   :  { %v4601_v45 = vadd.f32 %v3193_v42, %v4531_v7 }
 0x144   :  { %v3195_v46 = vpop.f32.mrf.mxu1  ;;  %v3259_v3 = vpop.f32.mrf.mxu0 }
 0x145   :  { %v3196_v49 = vadd.f32 %v3195_v46, %v3194_v43  ;;  %v3260_v50 = vadd.f32 %v3259_v3, %v3258_v44 }
 0x146   :  { %v3197_v51 = vpop.f32.mrf.mxu1  ;;  %v3261_v56 = vpop.f32.mrf.mxu0 }
 0x147   :  { %v4604_v58 = vadd.f32 %v3196_v49, %v4536_v14  ;;  %v4607_v55 = vadd.f32 %v3260_v50, %v4457_v60 }
 0x148   :  { %v3198_v59 = vpop.f32.mrf.mxu1  ;;  %v3262_v61 = vpop.f32.mrf.mxu0 }
 0x149   :  { %v3199_v11 = vadd.f32 %v3198_v59, %v3197_v51  ;;  %v3263_v1 = vadd.f32 %v3262_v61, %v3261_v56 }
 0x14a   :  { %v3200_v4 = vpop.f32.mrf.mxu1  ;;  %v3264_v8 = vpop.f32.mrf.mxu0 }
 0x14b   :  { %v4610_v7 = vadd.f32 %v3199_v11, %v4553_v29  ;;  %v4613_v9 = vadd.f32 %v3263_v1, %v4468_v52 }
 0x14c   :  { %v3201_v10 = vpop.f32.mrf.mxu1  ;;  %v3265_v12 = vpop.f32.mrf.mxu0 }
 0x14d   :  { %v3202_v17 = vadd.f32 %v3201_v10, %v3200_v4  ;;  %v3266_v14 = vadd.f32 %v3265_v12, %v3264_v8 }
 0x14e   :  { %v3203_v25 = vpop.f32.mrf.mxu1  ;;  %v3267_v19 = vpop.f32.mrf.mxu0 }
 0x14f   :  { %v4616_v60 = vadd.f32 %v3202_v17, %v4561_v41  ;;  %v4619_v20 = vadd.f32 %v3266_v14, %v4479_v62 }
 0x150   :  { %v3204_v23 = vpop.f32.mrf.mxu1  ;;  %v3268_v26 = vpop.f32.mrf.mxu0 }
 0x151   :  { %v3205_v27 = vadd.f32 %v3204_v23, %v3203_v25  ;;  %v3269_v29 = vadd.f32 %v3268_v26, %v3267_v19 }
 0x152   :  { %v3206_v30 = vpop.f32.mrf.mxu1  ;;  %v3270_v34 = vpop.f32.mrf.mxu0 }
 0x153   :  { %v4622_v52 = vadd.f32 %v3205_v27, %v4575_v57  ;;  %v4625_v33 = vadd.f32 %v3269_v29, %v4490_v5 }
 0x154   :  { %v3207_v36 = vpop.f32.mrf.mxu1  ;;  %v3271_v39 = vpop.f32.mrf.mxu0 }
 0x155   :  { %v3208_v42 = vadd.f32 %v3207_v36, %v3206_v30  ;;  %v3272_v41 = vadd.f32 %v3271_v39, %v3270_v34 }
 0x156   :  { %v3209_v43 = vpop.f32.mrf.mxu1  ;;  %v3273_v44 = vpop.f32.mrf.mxu0 }
 0x157   :  { %v4628_v62 = vadd.f32 %v3208_v42, %v4580_v2  ;;  %v4631_v46 = vadd.f32 %v3272_v41, %v4501_v15 }
 0x158   :  { %v3210_v3 = vpop.f32.mrf.mxu1  ;;  %v3274_v49 = vpop.f32.mrf.mxu0 }
 0x159   :  { %v3211_v50 = vadd.f32 %v3210_v3, %v3209_v43  ;;  %v3275_v57 = vadd.f32 %v3274_v49, %v3273_v44 }
 0x15a   :  { %v3212_v51 = vpop.f32.mrf.mxu1  ;;  %v3276_v56 = vpop.f32.mrf.mxu0 }
 0x15b   :  { %v4634_v5 = vadd.f32 %v3211_v50, %v4588_v18  ;;  %v4637_v59 = vadd.f32 %v3275_v57, %v4512_v21 }
 0x15c   :  { %v3213_v61 = vpop.f32.mrf.mxu1  ;;  %v3277_v11 = vpop.f32.mrf.mxu0 }
 0x15d   :  { %v3214_v1 = vadd.f32 %v3213_v61, %v3212_v51  ;;  %v3278_v2 = vadd.f32 %v3277_v11, %v3276_v56 }
 0x15e   :  { %v3215_v4 = vpop.f32.mrf.mxu1  ;;  %v3279_v8 = vpop.f32.mrf.mxu0 }
 0x15f   :  { %v4640_v15 = vadd.f32 %v3214_v1, %v4593_v28  ;;  %v4643_v10 = vadd.f32 %v3278_v2, %v4523_v31 }
 0x160   :  { %v3216_v12 = vpop.f32.mrf.mxu1  ;;  %v3280_v17 = vpop.f32.mrf.mxu0 }
 0x161   :  { %v3217_v14 = vadd.f32 %v3216_v12, %v3215_v4  ;;  %v3281_v18 = vadd.f32 %v3280_v17, %v3279_v8 }
 0x162   :  { %v3218_v25 = vpop.f32.mrf.mxu1  ;;  %v3282_v19 = vpop.f32.mrf.mxu0 }
 0x163   :  { %v4646_v21 = vadd.f32 %v3217_v14, %v4598_v40  ;;  %v4649_v23 = vadd.f32 %v3281_v18, %v4534_v37 }
 0x164   :  { %v3219_v26 = vpop.f32.mrf.mxu1  ;;  %v3283_v27 = vpop.f32.mrf.mxu0 }
 0x165   :  { %v3220_v29 = vadd.f32 %v3219_v26, %v3218_v25  ;;  %v3284_v28 = vadd.f32 %v3283_v27, %v3282_v19 }
 0x166   :  { %v3221_v30 = vpop.f32.mrf.mxu1  ;;  %v3285_v34 = vpop.f32.mrf.mxu0 }
 0x167   :  { %v4652_v31 = vadd.f32 %v3220_v29, %v4375_v53  ;;  %v4655_v36 = vadd.f32 %v3284_v28, %v4545_v47 }
 0x168   :  { %v3222_v39 = vpop.f32.mrf.mxu1  ;;  %v3286_v42 = vpop.f32.mrf.mxu0 }
 0x169   :  { %v3223_v41 = vadd.f32 %v3222_v39, %v3221_v30  ;;  %v3287_v40 = vadd.f32 %v3286_v42, %v3285_v34 }
 0x16a   :  { %v3224_v43 = vpop.f32.mrf.mxu1  ;;  %v3288_v44 = vpop.f32.mrf.mxu0 }
 0x16b   :  { %v4658_v37 = vadd.f32 %v3223_v41, %v4391_v63  ;;  %v4661_v3 = vadd.f32 %v3287_v40, %v4556_v54 }
 0x16c   :  { %v3225_v49 = vpop.f32.mrf.mxu1  ;;  %v3289_v50 = vpop.f32.mrf.mxu0 }
 0x16d   :  { %v3226_v57 = vadd.f32 %v3225_v49, %v3224_v43  ;;  %v3290_v53 = vadd.f32 %v3289_v50, %v3288_v44 }
 0x16e   :  { %v3227_v51 = vpop.f32.mrf.mxu1  ;;  %v3291_v56 = vpop.f32.mrf.mxu0 }
 0x16f   :  { %v4664_v47 = vadd.f32 %v3226_v57, %v4398_v6  ;;  %v4667_v61 = vadd.f32 %v3290_v53, %v4570_v48 }
 0x170   :  { %v3228_v11 = vpop.f32.mrf.mxu1  ;;  %v3292_v1 = vpop.f32.mrf.mxu0 }
 0x171   :  { %v3229_v2 = vadd.f32 %v3228_v11, %v3227_v51  ;;  %v3293_v63 = vadd.f32 %v3292_v1, %v3291_v56 }
 0x172   :  { %v3230_v4 = vpop.f32.mrf.mxu1  ;;  %v3294_v8 = vpop.f32.mrf.mxu0 }
 0x173   :  { %v4670_v54 = vadd.f32 %v3229_v2, %v4411_v16  ;;  %v4673_v12 = vadd.f32 %v3293_v63, %v4578_v0 }
 0x174   :  { %v3231_v17 = vpop.f32.mrf.mxu1  ;;  %v3295_v14 = vpop.f32.mrf.mxu0 }
 0x175   :  { %v3232_v18 = vadd.f32 %v3231_v17, %v3230_v4  ;;  %v3296_v6 = vadd.f32 %v3295_v14, %v3294_v8 }
 0x176   :  { %v3233_v25 = vpop.f32.mrf.mxu1  ;;  %v3297_v19 = vpop.f32.mrf.mxu0 }
 0x177   :  { %v4676_v48 = vadd.f32 %v3232_v18, %v4415_v22  ;;  %v4679_v26 = vadd.f32 %v3296_v6, %v4586_v13 }
 0x178   :  { %v3234_v27 = vpop.f32.mrf.mxu1  ;;  %v3298_v29 = vpop.f32.mrf.mxu0 }
 0x179   :  { %v3235_v28 = vadd.f32 %v3234_v27, %v3233_v25  ;;  %v3299_v16 = vadd.f32 %v3298_v29, %v3297_v19 }
 0x17a   :  { %v3236_v30 = vpop.f32.mrf.mxu1  ;;  %v3300_v34 = vpop.f32.mrf.mxu0 }
 0x17b   :  { %v4682_v0 = vadd.f32 %v3235_v28, %v4428_v32  ;;  %v4685_v39 = vadd.f32 %v3299_v16, %v4591_v24 }
 0x17c   :  { %v3237_v42 = vpop.f32.mrf.mxu1  ;;  %v3301_v41 = vpop.f32.mrf.mxu0 }
 0x17d   :  { %v3238_v40 = vadd.f32 %v3237_v42, %v3236_v30  ;;  %v3302_v22 = vadd.f32 %v3301_v41, %v3300_v34 }
 0x17e   :  { %v3239_v43 = vpop.f32.mrf.mxu1  ;;  %v3303_v44 = vpop.f32.mrf.mxu0 }
 0x17f   :  { %v4688_v13 = vadd.f32 %v3238_v40, %v4432_v38  ;;  %v4691_v49 = vadd.f32 %v3302_v22, %v4596_v35 }
 0x180   :  { %v3240_v50 = vpop.f32.mrf.mxu1  ;;  %v3304_v57 = vpop.f32.mrf.mxu0 }
 0x181   :  { %v3305_v53 = vadd.f32 %v3304_v57, %v3303_v44 }
 0x182   :  { %v3306_v32 = vpop.f32.mrf.mxu0  ;;  %v3370_v51 = vpop.f32.mrf.mxu1 }
 0x183   :  { %v4694_v24 = vadd.f32 %v3305_v53, %v4601_v45 }
 0x184   :  { %v3307_v56 = vpop.f32.mrf.mxu0  ;;  %v3371_v11 = vpop.f32.mrf.mxu1 }
 0x185   :  { %v3308_v1 = vadd.f32 %v3307_v56, %v3306_v32  ;;  %v3372_v2 = vadd.f32 %v3371_v11, %v3370_v51 }
 0x186   :  { %v3309_v63 = vpop.f32.mrf.mxu0  ;;  %v3373_v4 = vpop.f32.mrf.mxu1 }
 0x187   :  { %v4697_v38 = vadd.f32 %v3308_v1, %v4604_v58  ;;  %v4700_v35 = vadd.f32 %v3372_v2, %v4607_v55 }
 0x188   :  { %v3310_v8 = vpop.f32.mrf.mxu0  ;;  %v3374_v17 = vpop.f32.mrf.mxu1 }
 0x189   :  { %v3311_v14 = vadd.f32 %v3310_v8, %v3309_v63  ;;  %v3375_v18 = vadd.f32 %v3374_v17, %v3373_v4 }
 0x18a   :  { %v3312_v6 = vpop.f32.mrf.mxu0  ;;  %v3376_v25 = vpop.f32.mrf.mxu1 }
 0x18b   :  { %v4703_v45 = vadd.f32 %v3311_v14, %v4610_v7  ;;  %v4706_v19 = vadd.f32 %v3375_v18, %v4613_v9 }
 0x18c   :  { %v3313_v27 = vpop.f32.mrf.mxu0  ;;  %v3377_v29 = vpop.f32.mrf.mxu1 }
 0x18d   :  { %v3314_v28 = vadd.f32 %v3313_v27, %v3312_v6  ;;  %v3378_v58 = vadd.f32 %v3377_v29, %v3376_v25 }
 0x18e   :  { %v3315_v16 = vpop.f32.mrf.mxu0  ;;  %v3379_v30 = vpop.f32.mrf.mxu1 }
 0x18f   :  { %v4709_v55 = vadd.f32 %v3314_v28, %v4616_v60  ;;  %v4712_v34 = vadd.f32 %v3378_v58, %v4619_v20 }
 0x190   :  { %v3316_v42 = vpop.f32.mrf.mxu0  ;;  %v3380_v41 = vpop.f32.mrf.mxu1 }
 0x191   :  { %v3317_v40 = vadd.f32 %v3316_v42, %v3315_v16  ;;  %v3381_v7 = vadd.f32 %v3380_v41, %v3379_v30 }
 0x192   :  { %v3318_v22 = vpop.f32.mrf.mxu0  ;;  %v3382_v43 = vpop.f32.mrf.mxu1 }
 0x193   :  { %v4715_v9 = vadd.f32 %v3317_v40, %v4622_v52  ;;  %v4718_v44 = vadd.f32 %v3381_v7, %v4625_v33 }
 0x194   :  { %v3319_v50 = vpop.f32.mrf.mxu0  ;;  %v3383_v57 = vpop.f32.mrf.mxu1 }
 0x195   :  { %v3320_v53 = vadd.f32 %v3319_v50, %v3318_v22  ;;  %v3384_v60 = vadd.f32 %v3383_v57, %v3382_v43 }
 0x196   :  { %v3321_v32 = vpop.f32.mrf.mxu0  ;;  %v3385_v51 = vpop.f32.mrf.mxu1 }
 0x197   :  { %v4721_v20 = vadd.f32 %v3320_v53, %v4628_v62  ;;  %v4724_v56 = vadd.f32 %v3384_v60, %v4631_v46 }
 0x198   :  { %v3322_v11 = vpop.f32.mrf.mxu0  ;;  %v3386_v1 = vpop.f32.mrf.mxu1 }
 0x199   :  { %v3323_v2 = vadd.f32 %v3322_v11, %v3321_v32  ;;  %v3387_v52 = vadd.f32 %v3386_v1, %v3385_v51 }
 0x19a   :  { %v3324_v63 = vpop.f32.mrf.mxu0  ;;  %v3388_v4 = vpop.f32.mrf.mxu1 }
 0x19b   :  { %v4727_v33 = vadd.f32 %v3323_v2, %v4634_v5  ;;  %v4730_v8 = vadd.f32 %v3387_v52, %v4637_v59 }
 0x19c   :  { %v3325_v17 = vpop.f32.mrf.mxu0  ;;  %v3389_v14 = vpop.f32.mrf.mxu1 }
 0x19d   :  { %v3326_v18 = vadd.f32 %v3325_v17, %v3324_v63  ;;  %v3390_v62 = vadd.f32 %v3389_v14, %v3388_v4 }
 0x19e   :  { %v3327_v6 = vpop.f32.mrf.mxu0  ;;  %v3391_v25 = vpop.f32.mrf.mxu1 }
 0x19f   :  { %v4733_v46 = vadd.f32 %v3326_v18, %v4640_v15  ;;  %v4736_v27 = vadd.f32 %v3390_v62, %v4643_v10 }
 0x1a0   :  { %v3328_v29 = vpop.f32.mrf.mxu0  ;;  %v3392_v28 = vpop.f32.mrf.mxu1 }
 0x1a1   :  { %v3329_v58 = vadd.f32 %v3328_v29, %v3327_v6  ;;  %v3393_v5 = vadd.f32 %v3392_v28, %v3391_v25 }
 0x1a2   :  { %v3330_v16 = vpop.f32.mrf.mxu0  ;;  %v3394_v30 = vpop.f32.mrf.mxu1 }
 0x1a3   :  { %v4739_v59 = vadd.f32 %v3329_v58, %v4646_v21  ;;  %v4742_v42 = vadd.f32 %v3393_v5, %v4649_v23 }
 0x1a4   :  { %v3331_v41 = vpop.f32.mrf.mxu0  ;;  %v3395_v40 = vpop.f32.mrf.mxu1 }
 0x1a5   :  { %v3332_v7 = vadd.f32 %v3331_v41, %v3330_v16  ;;  %v3396_v15 = vadd.f32 %v3395_v40, %v3394_v30 }
 0x1a6   :  { %v3333_v22 = vpop.f32.mrf.mxu0  ;;  %v3397_v43 = vpop.f32.mrf.mxu1 }
 0x1a7   :  { %v4745_v10 = vadd.f32 %v3332_v7, %v4652_v31  ;;  %v4748_v50 = vadd.f32 %v3396_v15, %v4655_v36 }
 0x1a8   :  { %v3334_v57 = vpop.f32.mrf.mxu0  ;;  %v3398_v53 = vpop.f32.mrf.mxu1 }
 0x1a9   :  { %v3335_v60 = vadd.f32 %v3334_v57, %v3333_v22  ;;  %v3399_v21 = vadd.f32 %v3398_v53, %v3397_v43 }
 0x1aa   :  { %v3336_v32 = vpop.f32.mrf.mxu0  ;;  %v4750_v51 = vpop.f32.mrf.mxu1 }
 0x1ab   :  { %v4753_v23 = vadd.f32 %v3335_v60, %v4658_v37  ;;  %v4756_v11 = vadd.f32 %v3399_v21, %v4661_v3 }
 0x1ac   :  { %v3337_v1 = vpop.f32.mrf.mxu0  ;;  %v4758_v2 = vpop.f32.mrf.mxu1 }
 0x1ad   :  { %v3338_v31 = vadd.f32 %v3337_v1, %v3336_v32 }
 0x1ae   :  { %v3339_v52 = vpop.f32.mrf.mxu0  ;;  %v4760_v36 = vpop.f32.mrf.mxu1 }
 0x1af   :  { %v4763_v63 = vadd.f32 %v3338_v31, %v4664_v47 }
 0x1b0   :  { %v3340_v4 = vpop.f32.mrf.mxu0  ;;  %v4765_v17 = vpop.f32.mrf.mxu1 }
 0x1b1   :  { %v3341_v14 = vadd.f32 %v3340_v4, %v3339_v52 }
 0x1b2   :  { %v3342_v18 = vpop.f32.mrf.mxu0  ;;  %v4767_v37 = vpop.f32.mrf.mxu1 }
 0x1b3   :  { %v4770_v3 = vadd.f32 %v3341_v14, %v4670_v54 }
 0x1b4   :  { %v3343_v62 = vpop.f32.mrf.mxu0  ;;  %v4772_v6 = vpop.f32.mrf.mxu1 }
 0x1b5   :  { %v3344_v25 = vadd.f32 %v3343_v62, %v3342_v18 }
 0x1b6   :  { %v3345_v29 = vpop.f32.mrf.mxu0  ;;  %v4774_v28 = vpop.f32.mrf.mxu1 }
 0x1b7   :  { %v4777_v47 = vadd.f32 %v3344_v25, %v4676_v48 }
 0x1b8   :  { %v3346_v58 = vpop.f32.mrf.mxu0  ;;  %v4779_v5 = vpop.f32.mrf.mxu1 }
 0x1b9   :  { %v3347_v16 = vadd.f32 %v3346_v58, %v3345_v29 }
 0x1ba   :  { %v3348_v30 = vpop.f32.mrf.mxu0  ;;  %v4781_v41 = vpop.f32.mrf.mxu1 }
 0x1bb   :  { %v4784_v54 = vadd.f32 %v3347_v16, %v4682_v0 }
 0x1bc   :  { %v3349_v40 = vpop.f32.mrf.mxu0  ;;  %v4786_v7 = vpop.f32.mrf.mxu1 }
 0x1bd   :  { %v3350_v15 = vadd.f32 %v3349_v40, %v3348_v30 }
 0x1be   :  { %v3351_v22 = vpop.f32.mrf.mxu0  ;;  %v4788_v43 = vpop.f32.mrf.mxu1 }
 0x1bf   :  { %v4791_v48 = vadd.f32 %v3350_v15, %v4688_v13 }
 0x1c0   :  { %v3352_v57 = vpop.f32.mrf.mxu0  ;;  %v4793_v53 = vpop.f32.mrf.mxu1 }
 0x1c2   :  { %v4795_v60 = vpop.f32.mrf.mxu1  ;;  %v3508_v21 = vpop.f32.mrf.mxu0 }
 0x1c3   :  { %v4807_v13 = vadd.f32 %v3508_v21, %v4712_v34 }
 0x1c4   :  { %v4797_v32 = vpop.f32.mrf.mxu1  ;;  %v2145_v0 = vpop.f32.mrf.mxu0 }
 0x1c5   :  { %v4802_v52 = vadd.f32 %v2145_v0, %v4700_v35 }
 0x1c6   :  { %v4799_v1 = vpop.f32.mrf.mxu1  ;;  %v3509_v31 = vpop.f32.mrf.mxu0 }
 0x1c7   :  { %5135 = vst [vmem:[#allocation2_spill] sm:$0xff] %v4802_v52  ;;  %v2308_v29 = vmul.f32 %v4802_v52, %v4802_v52  ;;  %v4817_v58 = vadd.f32 %v3509_v31, %v4718_v44 }
 0x1c8   :  { %v4804_v4 = vpop.f32.mrf.mxu1  ;;  %v2148_v14 = vpop.f32.mrf.mxu0 }
 0x1c9   :  { %v4810_v18 = vadd.f32 %v2148_v14, %v4706_v19  ;;  %5137 = vst [vmem:[#allocation4_spill] sm:$0xff] %v4817_v58  ;;  %v2310_v19 = vmul.f32 %v4807_v13, %v4807_v13  ;;  %v2311_v21 = vmul.f32 %v4817_v58, %v4817_v58 }
 0x1ca   :  { %v4812_v62 = vpop.f32.mrf.mxu1  ;;  %v3512_v25 = vpop.f32.mrf.mxu0 }
 0x1cb   :  { %5136 = vst [vmem:[#allocation3_spill] sm:$0xff] %v4810_v18  ;;  %v2271_v35 = vadd.f32 %v4810_v18, %v4802_v52  ;;  %v2309_v16 = vmul.f32 %v4810_v18, %v4810_v18 }
 0x1cc   :  { %v4823_v34 = vpop.f32.mrf.mxu1  ;;  %v2161_v30 = vpop.f32.mrf.mxu0 }
 0x1cd   :  { %v2272_v40 = vadd.f32 %v2271_v35, %v4807_v13  ;;  %v2339_v15 = vadd.f32 %v2309_v16, %v2308_v29  ;;  %v4829_v22 = vadd.f32 %v2161_v30, %v4724_v56  ;;  %v4842_v56 = vadd.f32 %v3512_v25, %v4736_v27 }
 0x1ce   :  { %v4831_v44 = vpop.f32.mrf.mxu1  ;;  %v3513_v57 = vpop.f32.mrf.mxu0 }
 0x1cf   :  { %v2340_v0 = vadd.f32 %v2339_v15, %v2310_v19  ;;  %v2273_v31 = vadd.f32 %v2272_v40, %v4817_v58  ;;  %v2312_v29 = vmul.f32 %v4829_v22, %v4829_v22  ;;  %v3402_v40 = vadd.f32 %v4758_v2, %v4750_v51 }
 0x1d0   :  { %v4836_v14 = vpop.f32.mrf.mxu1  ;;  %v2164_v18 = vpop.f32.mrf.mxu0  ;;  %v4852_v58 = vadd.f32 %v3513_v57, %v4742_v42 }
 0x1d1   :  { %v2274_v52 = vadd.f32 %v2273_v31, %v4829_v22  ;;  %v2341_v35 = vadd.f32 %v2340_v0, %v2311_v21  ;;  %v4845_v16 = vadd.f32 %v2164_v18, %v4730_v8  ;;  %v3405_v8 = vadd.f32 %v4765_v17, %v4760_v36 }
 0x1d2   :  { %v4847_v30 = vpop.f32.mrf.mxu1  ;;  %v3516_v19 = vpop.f32.mrf.mxu0  ;;  %v2314_v18 = vmul.f32 %v4842_v56, %v4842_v56  ;;  %v2026_v0 = vadd.f32 %v3402_v40, %v4667_v61  ;;  %v2315_v36 = vmul.f32 %v4852_v58, %v4852_v58 }
 0x1d3   :  { %5138 = vst [vmem:[#allocation5_spill] sm:$0xff] %v4845_v16  ;;  %v2342_v15 = vadd.f32 %v2341_v35, %v2312_v29  ;;  %v2275_v31 = vadd.f32 %v2274_v52, %v4845_v16  ;;  %v2313_v21 = vmul.f32 %v4845_v16, %v4845_v16  ;;  %v3408_v29 = vadd.f32 %v4772_v6, %v4767_v37 }
 0x1d4   :  { %v4857_v27 = vpop.f32.mrf.mxu1  ;;  %v2177_v25 = vpop.f32.mrf.mxu0 }
 0x1d5   :  { %v2276_v51 = vadd.f32 %v2275_v31, %v4842_v56  ;;  %v2343_v2 = vadd.f32 %v2342_v15, %v2313_v21  ;;  %v4865_v42 = vadd.f32 %v2177_v25, %v4748_v50  ;;  %v2029_v50 = vadd.f32 %v3405_v8, %v4673_v12 }
 0x1d6   :  { %v4867_v57 = vpop.f32.mrf.mxu1  ;;  %v3517_v52 = vpop.f32.mrf.mxu0  ;;  %v4881_v21 = vadd.f32 %v3516_v19, %v2026_v0  ;;  %v3414_v12 = vadd.f32 %v4786_v7, %v4781_v41  ;;  %v2034_v0 = vadd.f32 %v3408_v29, %v4679_v26  ;;  %v3420_v26 = vadd.f32 %v4797_v32, %v4795_v60 }
 0x1d7   :  { %v2344_v17 = vadd.f32 %v2343_v2, %v2314_v18  ;;  %v2277_v35 = vadd.f32 %v2276_v51, %v4852_v58  ;;  %v2316_v37 = vmul.f32 %v4865_v42, %v4865_v42  ;;  %v3411_v18 = vadd.f32 %v4779_v5, %v4774_v28 }
 0x1d8   :  { %v4875_v16 = vpop.f32.mrf.mxu1  ;;  %v2180_v15 = vpop.f32.mrf.mxu0  ;;  %v4894_v8 = vadd.f32 %v3517_v52, %v2029_v50  ;;  %v2318_v28 = vmul.f32 %v4881_v21, %v4881_v21 }
 0x1d9   :  { %v4879_v31 = vadd.f32 %v2180_v15, %v4756_v11  ;;  %v2278_v61 = vadd.f32 %v2277_v35, %v4865_v42  ;;  %v2345_v6 = vadd.f32 %v2344_v17, %v2315_v36  ;;  %v3417_v17 = vadd.f32 %v4793_v53, %v4788_v43 }
 0x1da   :  { %v4886_v40 = vpop.f32.mrf.mxu1  ;;  %v3520_v25 = vpop.f32.mrf.mxu0  ;;  %v2042_v15 = vadd.f32 %v3414_v12, %v4691_v49  ;;  %v2037_v50 = vadd.f32 %v3411_v18, %v4685_v39  ;;  %v2319_v43 = vmul.f32 %v4894_v8, %v4894_v8  ;;  %v3423_v12 = vadd.f32 %v4804_v4, %v4799_v1 }
 0x1db   :  { %v2317_v11 = vmul.f32 %v4879_v31, %v4879_v31  ;;  %v2346_v19 = vadd.f32 %v2345_v6, %v2316_v37  ;;  %v2279_v51 = vadd.f32 %v2278_v61, %v4879_v31  ;;  %v2045_v6 = vadd.f32 %v3417_v17, %v4694_v24 }
 0x1dc   :  { %v3437_v2 = vpop.f32.mrf.mxu1  ;;  %v2193_v36 = vpop.f32.mrf.mxu0 }
 0x1dd   :  { %v2280_v5 = vadd.f32 %v2279_v51, %v4881_v21  ;;  %v2347_v41 = vadd.f32 %v2346_v19, %v2317_v11  ;;  %v4903_v7 = vadd.f32 %v2193_v36, %v2034_v0  ;;  %v4915_v19 = vadd.f32 %v3520_v25, %v2042_v15 }
 0x1de   :  { %v3439_v35 = vpop.f32.mrf.mxu1  ;;  %v3521_v52 = vpop.f32.mrf.mxu0  ;;  %v3426_v51 = vadd.f32 %v4823_v34, %v4812_v62 }
 0x1df   :  { %v2348_v53 = vadd.f32 %v2347_v41, %v2318_v28  ;;  %v2281_v29 = vadd.f32 %v2280_v5, %v4894_v8  ;;  %v2320_v39 = vmul.f32 %v4903_v7, %v4903_v7  ;;  %v4926_v25 = vadd.f32 %v3521_v52, %v2045_v6 }
 0x1e0   :  { %v3440_v61 = vpop.f32.mrf.mxu1  ;;  %v2196_v37 = vpop.f32.mrf.mxu0  ;;  %v2050_v28 = vadd.f32 %v3420_v26, %v4697_v38  ;;  %v3429_v41 = vadd.f32 %v4836_v14, %v4831_v44  ;;  %v2322_v1 = vmul.f32 %v4915_v19, %v4915_v19  ;;  %v3432_v38 = vadd.f32 %v4857_v27, %v4847_v30 }
 0x1e1   :  { %v4913_v11 = vadd.f32 %v2196_v37, %v2037_v50  ;;  %v2282_v49 = vadd.f32 %v2281_v29, %v4903_v7  ;;  %v2349_v60 = vadd.f32 %v2348_v53, %v2319_v43  ;;  %v2058_v50 = vadd.f32 %v3426_v51, %v4709_v55 }
 0x1e2   :  { %v3442_v32 = vpop.f32.mrf.mxu1  ;;  %v3524_v18 = vpop.f32.mrf.mxu0  ;;  %v2053_v43 = vadd.f32 %v3423_v12, %v4703_v45  ;;  %v2323_v44 = vmul.f32 %v4926_v25, %v4926_v25  ;;  %v2061_v37 = vadd.f32 %v3429_v41, %v4715_v9  ;;  %v3438_v12 = vadd.f32 %v3437_v2, %v4886_v40 }
 0x1e3   :  { %v2321_v24 = vmul.f32 %v4913_v11, %v4913_v11  ;;  %v2350_v0 = vadd.f32 %v2349_v60, %v2320_v39  ;;  %v2283_v36 = vadd.f32 %v2282_v49, %v4913_v11  ;;  %v4947_v49 = vadd.f32 %v3524_v18, %v2058_v50 }
 0x1e4   :  { %v3443_v17 = vpop.f32.mrf.mxu1  ;;  %v2209_v5 = vpop.f32.mrf.mxu0  ;;  %v3435_v60 = vadd.f32 %v4875_v16, %v4867_v57 }
 0x1e5   :  { %v2284_v4 = vadd.f32 %v2283_v36, %v4915_v19  ;;  %v2351_v62 = vadd.f32 %v2350_v0, %v2321_v24  ;;  %v4935_v34 = vadd.f32 %v2209_v5, %v2050_v28  ;;  %v2066_v36 = vadd.f32 %v3432_v38, %v4721_v20 }
 0x1e6   :  { %v3445_v15 = vpop.f32.mrf.mxu1  ;;  %v3525_v52 = vpop.f32.mrf.mxu0  ;;  %v3441_v5 = vadd.f32 %v3440_v61, %v3439_v35  ;;  %v2326_v41 = vmul.f32 %v4947_v49, %v4947_v49 }
 0x1e7   :  { %v2352_v14 = vadd.f32 %v2351_v62, %v2322_v1  ;;  %v2285_v26 = vadd.f32 %v2284_v4, %v4926_v25  ;;  %v2324_v45 = vmul.f32 %v4935_v34, %v4935_v34  ;;  %v4957_v24 = vadd.f32 %v3525_v52, %v2061_v37 }
 0x1e8   :  { %v3446_v53 = vpop.f32.mrf.mxu1  ;;  %v2212_v29 = vpop.f32.mrf.mxu0  ;;  %v2074_v4 = vadd.f32 %v3438_v12, %v4733_v46  ;;  %v2069_v62 = vadd.f32 %v3435_v60, %v4727_v33  ;;  %v3444_v52 = vadd.f32 %v3443_v17, %v3442_v32  ;;  %v2077_v33 = vadd.f32 %v3441_v5, %v4739_v59 }
 0x1e9   :  { %v4945_v6 = vadd.f32 %v2212_v29, %v2053_v43  ;;  %v2286_v55 = vadd.f32 %v2285_v26, %v4935_v34  ;;  %v2353_v30 = vadd.f32 %v2352_v14, %v2323_v44  ;;  %v2327_v20 = vmul.f32 %v4957_v24, %v4957_v24 }
 0x1ea   :  { %v3448_v27 = vpop.f32.mrf.mxu1  ;;  %v3528_v39 = vpop.f32.mrf.mxu0  ;;  %v3447_v29 = vadd.f32 %v3446_v53, %v3445_v15  ;;  %v2082_v12 = vadd.f32 %v3444_v52, %v4745_v10 }
 0x1eb   :  { %v2325_v9 = vmul.f32 %v4945_v6, %v4945_v6  ;;  %v2354_v51 = vadd.f32 %v2353_v30, %v2324_v45  ;;  %v2287_v18 = vadd.f32 %v2286_v55, %v4945_v6  ;;  %v4971_v38 = vadd.f32 %v3528_v39, %v2074_v4 }
 0x1ec   :  { %v3449_v0 = vpop.f32.mrf.mxu1  ;;  %v2225_v28 = vpop.f32.mrf.mxu0 }
 0x1ed   :  { %v2288_v16 = vadd.f32 %v2287_v18, %v4947_v49  ;;  %v2355_v57 = vadd.f32 %v2354_v51, %v2325_v9  ;;  %v4964_v40 = vadd.f32 %v2225_v28, %v2066_v36  ;;  %v3450_v37 = vadd.f32 %v3449_v0, %v3448_v27 }
 0x1ee   :  { %v3451_v2 = vpop.f32.mrf.mxu1  ;;  %v3529_v1 = vpop.f32.mrf.mxu0  ;;  %v2330_v51 = vmul.f32 %v4971_v38, %v4971_v38  ;;  %v2085_v28 = vadd.f32 %v3447_v29, %v4753_v23 }
 0x1ef   :  { %v2356_v50 = vadd.f32 %v2355_v57, %v2326_v41  ;;  %v2289_v35 = vadd.f32 %v2288_v16, %v4957_v24  ;;  %v2328_v46 = vmul.f32 %v4964_v40, %v4964_v40  ;;  %v4981_v30 = vadd.f32 %v3529_v1, %v2077_v33 }
 0x1f0   :  { %v3452_v61 = vpop.f32.mrf.mxu1  ;;  %v2228_v43 = vpop.f32.mrf.mxu0  ;;  %v2090_v36 = vadd.f32 %v3450_v37, %v4763_v63 }
 0x1f1   :  { %v4973_v44 = vadd.f32 %v2228_v43, %v2069_v62  ;;  %v2290_v14 = vadd.f32 %v2289_v35, %v4964_v40  ;;  %v2357_v26 = vadd.f32 %v2356_v50, %v2327_v20  ;;  %v3453_v59 = vadd.f32 %v3452_v61, %v3451_v2 }
 0x1f2   :  { %v3454_v32 = vpop.f32.mrf.mxu1  ;;  %v3532_v17 = vpop.f32.mrf.mxu0  ;;  %v2331_v5 = vmul.f32 %v4981_v30, %v4981_v30 }
 0x1f3   :  { %v2329_v55 = vmul.f32 %v4973_v44, %v4973_v44  ;;  %v2358_v45 = vadd.f32 %v2357_v26, %v2328_v46  ;;  %v2291_v39 = vadd.f32 %v2290_v14, %v4973_v44  ;;  %v4995_v1 = vadd.f32 %v3532_v17, %v2090_v36 }
 0x1f4   :  { %v3455_v60 = vpop.f32.mrf.mxu1  ;;  %v2241_v9 = vpop.f32.mrf.mxu0  ;;  %v2093_v23 = vadd.f32 %v3453_v59, %v4770_v3 }
 0x1f5   :  { %v2292_v18 = vadd.f32 %v2291_v39, %v4971_v38  ;;  %v2359_v15 = vadd.f32 %v2358_v45, %v2329_v55  ;;  %v4988_v53 = vadd.f32 %v2241_v9, %v2082_v12  ;;  %v3456_v41 = vadd.f32 %v3455_v60, %v3454_v32 }
 0x1f6   :  { %v3457_v27 = vpop.f32.mrf.mxu1  ;;  %v3533_v0 = vpop.f32.mrf.mxu0  ;;  %v2334_v29 = vmul.f32 %v4995_v1, %v4995_v1 }
 0x1f7   :  { %v2360_v10 = vadd.f32 %v2359_v15, %v2330_v51  ;;  %v2293_v16 = vadd.f32 %v2292_v18, %v4981_v30  ;;  %v2332_v63 = vmul.f32 %v4988_v53, %v4988_v53  ;;  %v5005_v14 = vadd.f32 %v3533_v0, %v2093_v23 }
 0x1f8   :  { %v3458_v57 = vpop.f32.mrf.mxu1  ;;  %v2244_v2 = vpop.f32.mrf.mxu0  ;;  %v2098_v33 = vadd.f32 %v3456_v41, %v4777_v47 }
 0x1f9   :  { %v4997_v4 = vadd.f32 %v2244_v2, %v2085_v28  ;;  %v2294_v62 = vadd.f32 %v2293_v16, %v4988_v53  ;;  %v2361_v52 = vadd.f32 %v2360_v10, %v2331_v5  ;;  %v3459_v35 = vadd.f32 %v3458_v57, %v3457_v27 }
 0x1fa   :  { %v3460_v20 = vpop.f32.mrf.mxu1  ;;  %v3536_v50 = vpop.f32.mrf.mxu0  ;;  %v2335_v9 = vmul.f32 %v5005_v14, %v5005_v14 }
 0x1fb   :  { %v2333_v61 = vmul.f32 %v4997_v4, %v4997_v4  ;;  %v2362_v43 = vadd.f32 %v2361_v52, %v2332_v63  ;;  %v2295_v46 = vadd.f32 %v2294_v62, %v4997_v4  ;;  %v2101_v12 = vadd.f32 %v3459_v35, %v4784_v54 }
 0x1fc   :  { %v3461_v26 = vpop.f32.mrf.mxu1  ;;  %v2257_v32 = vpop.f32.mrf.mxu0 }
 0x1fd   :  { %v3462_v17 = vadd.f32 %v3461_v26, %v3460_v20  ;;  %v2296_v3 = vadd.f32 %v2295_v46, %v4995_v1  ;;  %v2363_v37 = vadd.f32 %v2362_v43, %v2333_v61  ;;  %v5012_v55 = vadd.f32 %v2257_v32, %v2098_v33 }
 0x1fe   :  { %v3463_v45 = vpop.f32.mrf.mxu1  ;;  %v3537_v39 = vpop.f32.mrf.mxu0 }
 0x1ff   :  { %v2106_v60 = vadd.f32 %v3462_v17, %v4791_v48  ;;  %v2364_v47 = vadd.f32 %v2363_v37, %v2334_v29  ;;  %v2297_v51 = vadd.f32 %v2296_v3, %v5005_v14  ;;  %v2336_v36 = vmul.f32 %v5012_v55, %v5012_v55 }
 0x200   :  { %v3464_v59 = vpop.f32.mrf.mxu1  ;;  %v2260_v18 = vpop.f32.mrf.mxu0  ;;  %v2387_v45 = vlaneseq }
 0x201   :  { %v5019_v15 = vadd.f32 %v2260_v18, %v2101_v12  ;;  %v5021_v27 = vadd.f32 %v3536_v50, %v2106_v60  ;;  %v2298_v0 = vadd.f32 %v2297_v51, %v5012_v55  ;;  %v2365_v48 = vadd.f32 %v2364_v47, %v2335_v9  ;;  %v2379_v60 = vld [vmem:[%s5128_s2] sm:$0x1] }
 0x202   :  { %v2388_v39 = vshrl.u32 %v2387_v45, 7  ;;  %v2383_v51 = vld [vmem:[%s5129_s3] sm:$0x1] }
 0x203   :  { %v2337_v54 = vmul.f32 %v5019_v15, %v5019_v15  ;;  %v2366_v28 = vadd.f32 %v2365_v48, %v2336_v36  ;;  %v2299_v5 = vadd.f32 %v2298_v0, %v5019_v15  ;;  %v2338_v10 = vmul.f32 %v5021_v27, %v5021_v27  ;;  %v5139_v36 = vld [vmem:[#allocation2_spill] sm:$0xff] }
 0x204   :  { %v2389_v12 = vsub.s32 0, %v2388_v39 }
 0x205   :  { %v2300_v41 = vadd.f32 %v2299_v5, %v5021_v27  ;;  %v2367_v16 = vadd.f32 %v2366_v28, %v2337_v54  ;;  %v5140_v54 = vld [vmem:[#allocation3_spill] sm:$0xff] }
 0x207   :  { %v2301_v57 = vrot.slane %v2300_v41, 4  ;;  %v2368_v2 = vadd.f32 %v2367_v16, %v2338_v10  ;;  %v5141_v10 = vld [vmem:[#allocation4_spill] sm:$0xff] }
 0x209   :  { %v2302_v62 = vadd.f32 %v2301_v57, %v2300_v41  ;;  %v2369_v63 = vrot.slane %v2368_v2, 4  ;;  %v5142_v57 = vld [vmem:[#allocation5_spill] sm:$0xff] }
 0x20b   :  { %v2303_v52 = vrot.slane %v2302_v62, 2  ;;  %v2370_v23 = vadd.f32 %v2369_v63, %v2368_v2 }
 0x20d   :  { %v2304_v20 = vadd.f32 %v2303_v52, %v2302_v62  ;;  %v2371_v50 = vrot.slane %v2370_v23, 2 }
 0x20f   :  { %v2305_v35 = vrot.slane %v2304_v20, 1  ;;  %v2372_v61 = vadd.f32 %v2371_v50, %v2370_v23 }
 0x211   :  { %v2306_v43 = vadd.f32 %v2305_v35, %v2304_v20  ;;  %v2373_v46 = vrot.slane %v2372_v61, 1 }
 0x213   :  { %v2307_v26 = vmul.f32 0.004132231, %v2306_v43  ;;  %v2374_v33 = vadd.f32 %v2373_v46, %v2372_v61 }
 0x215   :  { %v2375_v32 = vmul.f32 0.004132231, %v2374_v33  ;;  %v2376_v17 = vmul.f32 %v2307_v26, %v2307_v26 }
 0x217   :  { %v2377_v29 = vsub.f32 %v2375_v32, %v2376_v17 }
 0x219   :  { %v2378_v3 = vmax.f32 %v2377_v29, 0.0 }
 0x21b   :  { %v2380_v37 = vadd.f32 1e-05, %v2378_v3 }
 0x21d   :  { %3830 = vrsqrt.f32 %v2380_v37 }
 0x22a   :  { %v3831_v9 = vpop.eup %3830 }
 0x22b   :  { %v2382_v47 = vmul.f32 %v3831_v9, %v2379_v60 }
 0x22d   :  { %v2384_v59 = vmul.f32 %v2382_v47, %v2307_v26  ;;  %v2390_v18 = vrot.slane %v2382_v47, %v2389_v12 }
 0x22f   :  { %v2385_v0 = vsub.f32 %v2383_v51, %v2384_v59  ;;  %v2392_v48 = vmul.f32 %v2390_v18, %v5139_v36  ;;  %v2393_v28 = vmul.f32 %v2390_v18, %v5140_v54  ;;  %v2394_v5 = vmul.f32 %v2390_v18, %v4807_v13 }
 0x230   :  { %v2395_v41 = vmul.f32 %v2390_v18, %v5141_v10  ;;  %v2396_v16 = vmul.f32 %v2390_v18, %v4829_v22  ;;  %v2397_v2 = vmul.f32 %v2390_v18, %v5142_v57  ;;  %v2398_v62 = vmul.f32 %v2390_v18, %v4842_v56 }
 0x231   :  { %v2399_v63 = vmul.f32 %v2390_v18, %v4852_v58  ;;  %v2400_v52 = vmul.f32 %v2390_v18, %v4865_v42  ;;  %v2401_v23 = vmul.f32 %v2390_v18, %v4879_v31  ;;  %v2402_v20 = vmul.f32 %v2390_v18, %v4881_v21 }
 0x232   :  { %v2403_v50 = vmul.f32 %v2390_v18, %v4894_v8  ;;  %v2404_v13 = vmul.f32 %v2390_v18, %v4903_v7  ;;  %v2405_v35 = vmul.f32 %v2390_v18, %v4913_v11  ;;  %v2406_v22 = vmul.f32 %v2390_v18, %v4915_v19 }
 0x233   :  { %v2414_v61 = vmul.f32 %v2390_v18, %v4971_v38  ;;  %v2415_v56 = vmul.f32 %v2390_v18, %v4981_v30  ;;  %v2416_v58 = vmul.f32 %v2390_v18, %v4988_v53  ;;  %v2417_v42 = vmul.f32 %v2390_v18, %v4997_v4 }
 0x234   :  { %v2418_v31 = vmul.f32 %v2390_v18, %v4995_v1  ;;  %v2419_v21 = vmul.f32 %v2390_v18, %v5005_v14  ;;  %v2420_v8 = vmul.f32 %v2390_v18, %v5012_v55  ;;  %v2421_v7 = vmul.f32 %v2390_v18, %v5019_v15 }
 0x235   :  { %v2422_v11 = vmul.f32 %v2390_v18, %v5021_v27  ;;  %v2407_v19 = vmul.f32 %v2390_v18, %v4926_v25  ;;  %v2408_v38 = vmul.f32 %v2390_v18, %v4935_v34  ;;  %v2409_v30 = vmul.f32 %v2390_v18, %v4945_v6 }
 0x236   :  { %v2427_v43 = vrot.slane %v2385_v0, %v2389_v12  ;;  %v2410_v53 = vmul.f32 %v2390_v18, %v4947_v49  ;;  %v2411_v4 = vmul.f32 %v2390_v18, %v4957_v24  ;;  %v2412_v1 = vmul.f32 %v2390_v18, %v4964_v40 }
 0x237   :  { %v2413_v14 = vmul.f32 %v2390_v18, %v4973_v44 }
 0x238   :  { %v5069_v55 = vadd.f32 %v2427_v43, %v2392_v48  ;;  %v5071_v15 = vadd.f32 %v2427_v43, %v2393_v28  ;;  %v5073_v27 = vadd.f32 %v2427_v43, %v2394_v5  ;;  %v2432_v25 = vadd.f32 %v2427_v43, %v2395_v41 }
 0x239   :  { %v2433_v46 = vadd.f32 %v2427_v43, %v2396_v16  ;;  %v2434_v34 = vadd.f32 %v2427_v43, %v2397_v2  ;;  %v2435_v26 = vadd.f32 %v2427_v43, %v2398_v62  ;;  %v2436_v6 = vadd.f32 %v2427_v43, %v2399_v63 }
 0x23a   :  { %v2437_v33 = vadd.f32 %v2427_v43, %v2400_v52  ;;  %v2438_v32 = vadd.f32 %v2427_v43, %v2401_v23  ;;  %v2439_v49 = vadd.f32 %v2427_v43, %v2402_v20  ;;  %v2440_v17 = vadd.f32 %v2427_v43, %v2403_v50 }
 0x23b   :  { %v2441_v24 = vadd.f32 %v2427_v43, %v2404_v13  ;;  %v2442_v29 = vadd.f32 %v2427_v43, %v2405_v35  ;;  %v2443_v40 = vadd.f32 %v2427_v43, %v2406_v22  ;;  %v2444_v3 = vadd.f32 %v2427_v43, %v2407_v19 }
 0x23c   :  { %v2445_v44 = vadd.f32 %v2427_v43, %v2408_v38  ;;  %v2446_v37 = vadd.f32 %v2427_v43, %v2409_v30  ;;  %v2447_v45 = vadd.f32 %v2427_v43, %v2410_v53  ;;  %v2448_v39 = vadd.f32 %v2427_v43, %v2411_v4 }
 0x23d   :  { %v2449_v60 = vadd.f32 %v2427_v43, %v2412_v1  ;;  %v2450_v12 = vadd.f32 %v2427_v43, %v2413_v14  ;;  %v2451_v9 = vadd.f32 %v2427_v43, %v2414_v61  ;;  %v2452_v47 = vadd.f32 %v2427_v43, %v2415_v56 }
 0x23e   :  { %v2453_v51 = vadd.f32 %v2427_v43, %v2416_v58  ;;  %v2454_v59 = vadd.f32 %v2427_v43, %v2417_v42  ;;  %v2455_v18 = vadd.f32 %v2427_v43, %v2418_v31  ;;  %v2456_v0 = vadd.f32 %v2427_v43, %v2419_v21 }
 0x23f   :  { %v2457_v36 = vadd.f32 %v2427_v43, %v2420_v8  ;;  %v2458_v48 = vadd.f32 %v2427_v43, %v2421_v7  ;;  %v2459_v54 = vadd.f32 %v2427_v43, %v2422_v11  ;;  %v2460_v28 = vmax.f32 %v5069_v55, 0.0 }
 0x240   :  { %v2461_v5 = vmax.f32 %v5071_v15, 0.0  ;;  %v2462_v10 = vmax.f32 %v5073_v27, 0.0  ;;  %v2463_v41 = vmax.f32 %v2432_v25, 0.0  ;;  %v2464_v16 = vmax.f32 %v2433_v46, 0.0 }
 0x241   :  { %v2465_v57 = vmax.f32 %v2434_v34, 0.0  ;;  %v2466_v2 = vmax.f32 %v2435_v26, 0.0  ;;  %v2467_v62 = vmax.f32 %v2436_v6, 0.0  ;;  %v2468_v63 = vmax.f32 %v2437_v33, 0.0 }
 0x242   :  { %v2469_v52 = vmax.f32 %v2438_v32, 0.0  ;;  %v2470_v23 = vmax.f32 %v2439_v49, 0.0  ;;  %v2471_v20 = vmax.f32 %v2440_v17, 0.0  ;;  %v2472_v50 = vmax.f32 %v2441_v24, 0.0 }
 0x243   :  { %v2473_v13 = vmax.f32 %v2442_v29, 0.0  ;;  %v2474_v35 = vmax.f32 %v2443_v40, 0.0  ;;  %v2475_v22 = vmax.f32 %v2444_v3, 0.0  ;;  %v2476_v61 = vmax.f32 %v2445_v44, 0.0 }
 0x244   :  { %v2477_v56 = vmax.f32 %v2446_v37, 0.0  ;;  %v2478_v58 = vmax.f32 %v2447_v45, 0.0  ;;  %v2479_v42 = vmax.f32 %v2448_v39, 0.0  ;;  %v2480_v31 = vmax.f32 %v2449_v60, 0.0 }
 0x245   :  { %v2481_v21 = vmax.f32 %v2450_v12, 0.0  ;;  %v2482_v8 = vmax.f32 %v2451_v9, 0.0  ;;  %v2483_v7 = vmax.f32 %v2452_v47, 0.0  ;;  %v2484_v11 = vmax.f32 %v2453_v51, 0.0 }
 0x246   :  { %v2485_v19 = vmax.f32 %v2454_v59, 0.0  ;;  %v2486_v38 = vmax.f32 %v2455_v18, 0.0  ;;  %v2487_v30 = vmax.f32 %v2456_v0, 0.0  ;;  %v2488_v43 = vmax.f32 %v2457_v36, 0.0 }
 0x247   :  { %v2489_v53 = vmax.f32 %v2458_v48, 0.0  ;;  %v2490_v4 = vmax.f32 %v2459_v54, 0.0  ;;  %v2932_v1 = vpack.c.bf16 %v2461_v5, %v2460_v28  ;;  %v2937_v14 = vpack.c.bf16 %v2463_v41, %v2462_v10 }
 0x248   :  { %v2942_v55 = vpack.c.bf16 %v2465_v57, %v2464_v16  ;;  %v2947_v15 = vpack.c.bf16 %v2467_v62, %v2466_v2  ;;  %v2952_v27 = vpack.c.bf16 %v2469_v52, %v2468_v63  ;;  %v2957_v25 = vpack.c.bf16 %v2471_v20, %v2470_v23 }
 0x249   :  { %v2928_v46 = vpack.c.bf16 %v2490_v4, %v2490_v4  ;;  %2933 = vst [vmem:[%s5130_s4] sm:$0xff] %v2932_v1   ;;  %3004 = vst [vmem:[%s5130_s4 + $0x8] sm:$0xff] %v2937_v14   ;;  %v2962_v34 = vpack.c.bf16 %v2473_v13, %v2472_v50  ;;  %v2967_v26 = vpack.c.bf16 %v2475_v22, %v2474_v35 }
 0x24a   :  { %v2972_v6 = vpack.c.bf16 %v2477_v56, %v2476_v61  ;;  %3005 = vst [vmem:[%s5130_s4 + $0x10] sm:$0xff] %v2942_v55   ;;  %3006 = vst [vmem:[%s5130_s4 + $0x18] sm:$0xff] %v2947_v15   ;;  %v2977_v33 = vpack.c.bf16 %v2479_v42, %v2478_v58  ;;  %v2982_v32 = vpack.c.bf16 %v2481_v21, %v2480_v31 }
 0x24b   :  { %3007 = vst [vmem:[%s5130_s4 + $0x20] sm:$0xff] %v2952_v27   ;;  %3008 = vst [vmem:[%s5130_s4 + $0x28] sm:$0xff] %v2957_v25   ;;  %v2987_v49 = vpack.c.bf16 %v2483_v7, %v2482_v8  ;;  %v2992_v17 = vpack.c.bf16 %v2485_v19, %v2484_v11  ;;  %v2997_v24 = vpack.c.bf16 %v2487_v30, %v2486_v38 }
 0x24c   :  { %3009 = vst [vmem:[%s5130_s4 + $0x30] sm:$0xff] %v2962_v34   ;;  %3010 = vst [vmem:[%s5130_s4 + $0x38] sm:$0xff] %v2967_v26   ;;  %v3002_v29 = vpack.c.bf16 %v2489_v53, %v2488_v43 }
 0x24d   :  { %3011 = vst [vmem:[%s5130_s4 + $0x40] sm:$0xff] %v2972_v6   ;;  %2646 = vst [vmem:[%s5130_s4 + $0x78] sm:$0xf] %v2928_v46 }
 0x24e   :  { %3012 = vst [vmem:[%s5130_s4 + $0x48] sm:$0xff] %v2977_v33   ;;  %3013 = vst [vmem:[%s5130_s4 + $0x50] sm:$0xff] %v2982_v32  }
 0x24f   :  { %3014 = vst [vmem:[%s5130_s4 + $0x58] sm:$0xff] %v2987_v49   ;;  %3015 = vst [vmem:[%s5130_s4 + $0x60] sm:$0xff] %v2992_v17  }
 0x250   :  { %3016 = vst [vmem:[%s5130_s4 + $0x68] sm:$0xff] %v2997_v24   ;;  %3017 = vst [vmem:[%s5130_s4 + $0x70] sm:$0xff] %v3002_v29  }

</bundles_post_ra>
